<compile_context>
chip_gen: v7x
topology: tpu7x:2x2x1
jax: 0.10.0
libtpu: 0.0.40
codegen_flags: <defaults>
</compile_context>

<pallas_src>
import functools
import math

import jax
import jax.numpy as jnp
from jax import lax
from jax.experimental import pallas as pl
from jax.experimental.pallas import tpu as pltpu


_VMEM_LIMIT = 48 * 1024 * 1024  # < 64 MiB physical on v7x, < 128 MiB on v5e/v6e


def _compiler_params(*semantics):
    return pltpu.CompilerParams(
        dimension_semantics=tuple(semantics),
        vmem_limit_bytes=_VMEM_LIMIT,
    )


def _row_tile(m):
    """Row-tile size for the projection matmuls.

    Small problems get a single block; large ones get an (8,128)-aligned tile.
    Non-dividing cases fall back to tm=128 with a pl.cdiv grid (Pallas masks
    the ragged tail) instead of the old tm=M fallback that killed pipelining.
    """
    if m <= 512:
        return m
    for t in (512, 256, 128):
        if m % t == 0:
            return t
    return 128


# ----------------------------------------------------------------------------
# k-th largest value along the last axis, counting duplicates exactly like
# torch.topk(x, k)[..., -1:].  Iterative row-max with exact-one-removal per
# step: O(k * numel), no cubic intermediates.  `row_max` lets callers reuse an
# already-computed row max (saves one full-width XLU reduction).
# ----------------------------------------------------------------------------
def _kth_largest(s, k, row_max=None):
    m = jnp.max(s, axis=-1, keepdims=True) if row_max is None else row_max
    if k <= 1:
        return m
    n = s.shape[-1]
    col = lax.broadcasted_iota(jnp.int32, s.shape, s.ndim - 1)
    work = s
    for _ in range(k - 1):
        is_max = work == m
        # Remove exactly ONE occurrence of the current max (the first column),
        # so duplicates count toward the rank exactly like torch.topk.
        first = jnp.min(jnp.where(is_max, col, n), axis=-1, keepdims=True)
        work = jnp.where(is_max & (col == first), -jnp.inf, work)
        m = jnp.max(work, axis=-1, keepdims=True)
    return m


# ----------------------------------------------------------------------------
# Shared projection kernel: lane-dense (tm, D_out) = (tm, K) @ (K, D_out) + b
# ----------------------------------------------------------------------------
def _matmul_bias_kernel(x_ref, w_ref, b_ref, o_ref):
    acc = jnp.dot(x_ref[...], w_ref[...], preferred_element_type=jnp.float32)
    o_ref[...] = (acc + b_ref[...]).astype(o_ref.dtype)


def qkv_projection(x2d, w_qkv, b_qkv, out_dtype):
    """x2d (M, D) @ w_qkv (3, D, D) + b -> (3, M, D).

    Heads are fused: each grid step computes a full D-wide (lane-dense) output
    block, filling the MXU N-dimension.  (3, M, D) reshapes for free to
    (3, B, S, D); per-head slabs are later static lane slices.
    """
    M, D = x2d.shape
    tm = _row_tile(M)
    return pl.pallas_call(
        _matmul_bias_kernel,
        out_shape=jax.ShapeDtypeStruct((3, M, D), out_dtype),
        grid=(pl.cdiv(M, tm), 3),  # g innermost: each x row-tile is DMA'd once
        in_specs=[
            pl.BlockSpec((tm, D), lambda m, g: (m, 0)),
            pl.BlockSpec((None, D, D), lambda m, g: (g, 0, 0)),
            pl.BlockSpec((None, 1, D), lambda m, g: (g, 0, 0)),
        ],
        out_specs=pl.BlockSpec((None, tm, D), lambda m, g: (g, m, 0)),
        compiler_params=_compiler_params("parallel", "parallel"),
    )(x2d, w_qkv, b_qkv)


def output_projection(x2d, w_proj, b_proj):
    """(M, D) @ (D, D) + b -> (M, D): ONE matmul with K = D (full MXU K),
    lane-dense (tm, D) output blocks, row-tiled grid."""
    M, D = x2d.shape
    Dout = w_proj.shape[-1]
    tm = _row_tile(M)
    return pl.pallas_call(
        _matmul_bias_kernel,
        out_shape=jax.ShapeDtypeStruct((M, Dout), jnp.float32),
        grid=(pl.cdiv(M, tm),),
        in_specs=[
            pl.BlockSpec((tm, D), lambda m: (m, 0)),
            pl.BlockSpec((D, Dout), lambda m: (0, 0)),
            pl.BlockSpec((1, Dout), lambda m: (0, 0)),
        ],
        out_specs=pl.BlockSpec((tm, Dout), lambda m: (m, 0)),
        compiler_params=_compiler_params("parallel"),
    )(x2d, w_proj, b_proj)


# ----------------------------------------------------------------------------
# Attention kernel: one batch per grid step; heads are a small static loop with
# static lane slices; output written lane-dense as (S, D) (heads along lanes).
# ----------------------------------------------------------------------------
def _make_attn_kernel(S, D, H, mxu_dtype, return_attn):
    Hd = D // H
    scale = 1.0 / math.sqrt(Hd)

    # Static sparsity hyper-parameters (exactly the reference formulas).
    if S > 1:
        k_local = max(1, min(S // 8, 3))
        k_global = max(1, min(S // 4, 5))
        window_size = min(max(S // 2, 2), 4)
        step = max(1, window_size // 2)
        windows = []
        for i in range(0, S, step):
            j = min(i + window_size, S)
            if j - i < k_local:  # reference skips short windows
                continue
            windows.append((i, j))

    def kernel(qkv_ref, o_ref, *rest):
        attn_ref = rest[0] if return_attn else None

        if S > 1:
            # Hoisted out of the head loop: window membership masks + constants.
            row_ids = lax.broadcasted_iota(jnp.int32, (S, S), 0)
            col_ids = lax.broadcasted_iota(jnp.int32, (S, S), 1)
            win_masks = [
                (row_ids >= i) & (row_ids < j) & (col_ids >= i) & (col_ids < j)
                for (i, j) in windows
            ]
            neg_inf = jnp.full((S, S), -jnp.inf, jnp.float32)

        for h in range(H):  # H is small & static; lane offsets stay static.
            c0 = h * Hd
            q = qkv_ref[0, :, c0:c0 + Hd]   # (S, Hd), stored dtype == mxu_dtype
            k = qkv_ref[1, :, c0:c0 + Hd]
            v = qkv_ref[2, :, c0:c0 + Hd]

            q32 = q.astype(jnp.float32)
            # Feature-importance gating uses the UNSCALED q (reference semantics).
            fi = jax.nn.sigmoid(jnp.mean(q32, axis=-1, keepdims=True))  # (S, 1)
            # Fold 1/sqrt(Hd) into q (S*Hd multiply instead of S^2 on scores).
            qs = (q32 * scale).astype(mxu_dtype)

            # scores = (q/sqrt(Hd)) @ k^T — NT dot_general, f32 accumulation.
            scores = lax.dot_general(
                qs, k,
                dimension_numbers=(((1,), (1,)), ((), ())),
                preferred_element_type=jnp.float32,
            )  # (S, S) f32

            row_max = jnp.max(scores, axis=-1, keepdims=True)  # reused twice

            if S > 1:
                # Local (windowed) top-k thresholds; later windows overwrite
                # earlier ones exactly like the reference's in-place slice
                # assignment.  Window width <= 4, so each kth works on a
                # narrow lane slab.
                thr = neg_inf
                for (i, j), in_win in zip(windows, win_masks):
                    kk = min(k_local, j - i)
                    kth_w = _kth_largest(scores[:, i:j], kk)  # (S, 1)
                    thr = jnp.where(in_win, kth_w, thr)
                # Global top-k threshold; reuse row_max for its first step.
                kth_g = _kth_largest(scores, k_global, row_max=row_max)
                keep = (scores >= thr) & (scores >= kth_g)
                scores = jnp.where(keep, scores, -1e9)  # single fused select
                # NOTE: the reference then re-applies the *shadowed* last-window
                # mask; for every shape where torch broadcasting succeeds this
                # is a provable no-op, so it is omitted here.

            # Softmax.  The row top-1 always survives the masks, so the raw
            # row_max is a valid shift; reciprocal runs on the EUP slot.
            p = jnp.exp(scores - row_max)
            attn = p * pl.reciprocal(jnp.sum(p, axis=-1, keepdims=True),
                                     approx=True)
            # TODO(synk): nn.Dropout(0.1) treated as eval-mode identity (inference).

            vg = (v.astype(jnp.float32) * fi).astype(mxu_dtype)
            out_h = jnp.dot(attn.astype(mxu_dtype), vg,
                            preferred_element_type=jnp.float32)  # (S, Hd)

            # Heads concatenated along lanes -> the (S, D) block written back to
            # HBM is lane-dense, and the output projection is a single K=D matmul.
            o_ref[:, c0:c0 + Hd] = out_h.astype(o_ref.dtype)
            if return_attn:
                attn_ref[h] = attn

    return kernel


def attention_core(qkv3, H, mxu_dtype, return_attn):
    """qkv3: (3, B, S, D).  Returns ((B, S, D) in mxu_dtype, (B,H,S,S)|None)."""
    _, B, S, D = qkv3.shape
    out_shape = [jax.ShapeDtypeStruct((B, S, D), mxu_dtype)]
    out_specs = [pl.BlockSpec((None, S, D), lambda b: (b, 0, 0))]
    if return_attn:
        out_shape.append(jax.ShapeDtypeStruct((B, H, S, S), jnp.float32))
        out_specs.append(pl.BlockSpec((None, H, S, S), lambda b: (b, 0, 0, 0)))

    res = pl.pallas_call(
        _make_attn_kernel(S, D, H, mxu_dtype, return_attn),
        out_shape=tuple(out_shape),
        grid=(B,),
        in_specs=[pl.BlockSpec((3, None, S, D), lambda b: (0, b, 0, 0))],
        out_specs=tuple(out_specs),
        compiler_params=_compiler_params("parallel"),
    )(qkv3)
    if return_attn:
        return res[0], res[1]
    return res[0], None


# ----------------------------------------------------------------------------
# Module-level wrapper (parameter init + glue; only free reshapes, no transposes)
# ----------------------------------------------------------------------------
def init_mha_params(key, dim, num_heads):
    """nn.Linear-style uniform(-1/sqrt(in), 1/sqrt(in)) init.

    Weights are stored pre-arranged for the kernels (head-fused layout):
      w_qkv : (3, dim, dim)   (== qkv.weight.T split per q/k/v chunk)
      b_qkv : (3, 1, dim)
      w_proj: (dim, dim)      (== proj.weight.T)
      b_proj: (1, dim)
    """
    assert dim % num_heads == 0, "dim must be divisible by num_heads"
    k1, k2, k3, k4 = jax.random.split(key, 4)
    lim = 1.0 / math.sqrt(dim)
    u = lambda k, shape: jax.random.uniform(k, shape, jnp.float32, -lim, lim)
    return dict(
        w_qkv=u(k1, (3, dim, dim)),
        b_qkv=u(k2, (3, 1, dim)),
        w_proj=u(k3, (dim, dim)),
        b_proj=u(k4, (1, dim)),
    )


def multi_head_attention(params, x, num_heads, *, mxu_dtype=jnp.bfloat16,
                         return_attn=True):
    """Forward pass of the sparse top-k MultiHeadAttention module (mask=None).

    mxu_dtype=jnp.bfloat16 (default, per the performance review) uses bf16 MXU
    operands and bf16 HBM intermediates with f32 accumulation; pass
    jnp.float32 to reproduce the PyTorch reference numerics more closely.
    Pass return_attn=False in production to skip the O(B*H*S^2) attn write.
    """
    B, S, D = x.shape
    H = num_heads
    assert D % H == 0

    cast = lambda a: a.astype(mxu_dtype)

    # QKV projection: heads fused, lane-dense (tm, D) blocks, bf16 HBM output.
    qkv = qkv_projection(cast(x.reshape(B * S, D)), cast(params["w_qkv"]),
                         params["b_qkv"], mxu_dtype)
    qkv = qkv.reshape(3, B, S, D)  # free reshape, no data movement

    # Attention: per-batch grid step, lane-dense (S, D) output (heads in lanes).
    out3, attn = attention_core(qkv, H, mxu_dtype, return_attn)  # (B, S, D)

    # Output projection: a single (B*S, D) @ (D, D) matmul.
    proj = output_projection(out3.reshape(B * S, D), cast(params["w_proj"]),
                             params["b_proj"])
    return proj.reshape(B, S, D), attn


if __name__ == "__main__":
    # Small shapes consistent with the module, chosen so the reference's own
    # last-window mask broadcasting is well-defined (S=4) and the projection
    # blocks are genuinely lane-dense (D=256): B=2, S=4, dim=256, H=8 (Hd=32).
    B, S, D, H = 2, 4, 256, 8
    key = jax.random.PRNGKey(0)
    kx, kp = jax.random.split(key)
    x = jax.random.normal(kx, (B, S, D), dtype=jnp.float32)
    params = init_mha_params(kp, D, H)

    fn = jax.jit(functools.partial(multi_head_attention, num_heads=H))
    proj, attn = fn(params, x)
    jax.block_until_ready((proj, attn))

    assert proj.shape == (B, S, D) and proj.dtype == jnp.float32
    assert attn.shape == (B, H, S, S)
    assert bool(jnp.all(jnp.isfinite(proj))) and bool(jnp.all(jnp.isfinite(attn)))
    print("KERNEL_OK")
</pallas_src>

<mosaic_0001>
module attributes {stable_mosaic.version = 11 : i64} {
  func.func @_matmul_bias_kernel(%arg0: i32, %arg1: i32, %arg2: memref<8x256xbf16, #tpu.memory_space<vmem>>, %arg3: memref<1x256x256xbf16, #tpu.memory_space<vmem>>, %arg4: memref<1x1x256xf32, #tpu.memory_space<vmem>>, %arg5: memref<1x8x256xbf16, #tpu.memory_space<vmem>>) attributes {dimension_semantics = [#tpu.dimension_semantics<parallel>, #tpu.dimension_semantics<parallel>], iteration_bounds = array<i64: 1, 3>, scalar_prefetch = 0 : i64, scratch_operands = 0 : i64, tpu.core_type = #tpu.core_type<tc>, window_params = [{transform_indices = @transform_0, window_bounds = array<i64: 8, 256>}, {transform_indices = @transform_1, window_bounds = array<i64: 1, 256, 256>}, {transform_indices = @transform_2, window_bounds = array<i64: 1, 1, 256>}, {transform_indices = @transform_3, window_bounds = array<i64: 1, 8, 256>}]} {
    %c0 = arith.constant 0 : index
    %c0_0 = arith.constant 0 : index
    %0 = vector.load %arg2[%c0, %c0_0] : memref<8x256xbf16, #tpu.memory_space<vmem>>, vector<8x256xbf16>
    %c0_1 = arith.constant 0 : index
    %c0_2 = arith.constant 0 : index
    %c0_3 = arith.constant 0 : index
    %1 = vector.load %arg3[%c0_1, %c0_2, %c0_3] : memref<1x256x256xbf16, #tpu.memory_space<vmem>>, vector<1x256x256xbf16>
    %2 = vector.shape_cast %1 : vector<1x256x256xbf16> to vector<256x256xbf16>
    %cst = arith.constant dense<0.000000e+00> : vector<8x256xf32>
    %3 = tpu.matmul %0, %2, %cst {dimension_numbers = #tpu.dot_dimension_numbers<[1], [0], [0], [1], [0, 0, 1, 1], [], []>} : vector<8x256xbf16>, vector<256x256xbf16>, vector<8x256xf32> -> vector<8x256xf32>
    %c0_4 = arith.constant 0 : index
    %c0_5 = arith.constant 0 : index
    %c0_6 = arith.constant 0 : index
    %4 = vector.load %arg4[%c0_4, %c0_5, %c0_6] : memref<1x1x256xf32, #tpu.memory_space<vmem>>, vector<1x1x256xf32>
    %5 = vector.shape_cast %4 : vector<1x1x256xf32> to vector<1x256xf32>
    %6 = vector.broadcast %5 : vector<1x256xf32> to vector<8x256xf32>
    %7 = arith.addf %3, %6 : vector<8x256xf32>
    %8 = arith.truncf %7 : vector<8x256xf32> to vector<8x256xbf16>
    %c0_7 = arith.constant 0 : index
    %c0_8 = arith.constant 0 : index
    %c0_9 = arith.constant 0 : index
    %9 = vector.load %arg5[%c0_7, %c0_8, %c0_9] : memref<1x8x256xbf16, #tpu.memory_space<vmem>>, vector<1x8x256xbf16>
    %10 = vector.shape_cast %9 : vector<1x8x256xbf16> to vector<8x256xbf16>
    %11 = vector.shape_cast %8 : vector<8x256xbf16> to vector<1x8x256xbf16>
    tpu.vector_store %arg5[%c0_7, %c0_8, %c0_9], %11 {strides = array<i32>} : memref<1x8x256xbf16, #tpu.memory_space<vmem>>, vector<1x8x256xbf16>,
    return
  }
  func.func @transform_0(%arg0: i32, %arg1: i32) -> (i32, i32) {
    %c0_i32 = arith.constant 0 : i32
    %c0_i32_0 = arith.constant 0 : i32
    return %arg0, %c0_i32 : i32, i32
  }
  func.func @transform_1(%arg0: i32, %arg1: i32) -> (i32, i32, i32) {
    %c0_i32 = arith.constant 0 : i32
    %c0_i32_0 = arith.constant 0 : i32
    %c0_i32_1 = arith.constant 0 : i32
    return %arg1, %c0_i32, %c0_i32_0 : i32, i32, i32
  }
  func.func @transform_2(%arg0: i32, %arg1: i32) -> (i32, i32, i32) {
    %c0_i32 = arith.constant 0 : i32
    %c0_i32_0 = arith.constant 0 : i32
    %c0_i32_1 = arith.constant 0 : i32
    return %arg1, %c0_i32, %c0_i32_0 : i32, i32, i32
  }
  func.func @transform_3(%arg0: i32, %arg1: i32) -> (i32, i32, i32) {
    %c0_i32 = arith.constant 0 : i32
    %c0_i32_0 = arith.constant 0 : i32
    return %arg1, %arg0, %c0_i32 : i32, i32, i32
  }
}

module attributes {stable_mosaic.version = 11 : i64} {
  func.func @_matmul_bias_kernel(%arg0: i32, %arg1: memref<8x256xbf16, #tpu.memory_space<vmem>>, %arg2: memref<256x256xbf16, #tpu.memory_space<vmem>>, %arg3: memref<1x256xf32, #tpu.memory_space<vmem>>, %arg4: memref<8x256xf32, #tpu.memory_space<vmem>>) attributes {dimension_semantics = [#tpu.dimension_semantics<parallel>], iteration_bounds = array<i64: 1>, scalar_prefetch = 0 : i64, scratch_operands = 0 : i64, tpu.core_type = #tpu.core_type<tc>, window_params = [{transform_indices = @transform_0, window_bounds = array<i64: 8, 256>}, {pipeline_mode = #tpu.pipeline_mode<synchronous>, transform_indices = @transform_1, window_bounds = array<i64: 256, 256>}, {pipeline_mode = #tpu.pipeline_mode<synchronous>, transform_indices = @transform_2, window_bounds = array<i64: 1, 256>}, {transform_indices = @transform_3, window_bounds = array<i64: 8, 256>}]} {
    %c0 = arith.constant 0 : index
    %c0_0 = arith.constant 0 : index
    %0 = vector.load %arg1[%c0, %c0_0] : memref<8x256xbf16, #tpu.memory_space<vmem>>, vector<8x256xbf16>
    %c0_1 = arith.constant 0 : index
    %c0_2 = arith.constant 0 : index
    %1 = vector.load %arg2[%c0_1, %c0_2] : memref<256x256xbf16, #tpu.memory_space<vmem>>, vector<256x256xbf16>
    %cst = arith.constant dense<0.000000e+00> : vector<8x256xf32>
    %2 = tpu.matmul %0, %1, %cst {dimension_numbers = #tpu.dot_dimension_numbers<[1], [0], [0], [1], [0, 0, 1, 1], [], []>} : vector<8x256xbf16>, vector<256x256xbf16>, vector<8x256xf32> -> vector<8x256xf32>
    %c0_3 = arith.constant 0 : index
    %c0_4 = arith.constant 0 : index
    %3 = vector.load %arg3[%c0_3, %c0_4] : memref<1x256xf32, #tpu.memory_space<vmem>>, vector<1x256xf32>
    %4 = vector.broadcast %3 : vector<1x256xf32> to vector<8x256xf32>
    %5 = arith.addf %2, %4 : vector<8x256xf32>
    %c0_5 = arith.constant 0 : index
    %c0_6 = arith.constant 0 : index
    %6 = vector.load %arg4[%c0_5, %c0_6] : memref<8x256xf32, #tpu.memory_space<vmem>>, vector<8x256xf32>
    tpu.vector_store %arg4[%c0_5, %c0_6], %5 {strides = array<i32>} : memref<8x256xf32, #tpu.memory_space<vmem>>, vector<8x256xf32>,
    return
  }
  func.func @transform_0(%arg0: i32) -> (i32, i32) {
    %c0_i32 = arith.constant 0 : i32
    %c0_i32_0 = arith.constant 0 : i32
    return %arg0, %c0_i32 : i32, i32
  }
  func.func @transform_1(%arg0: i32) -> (i32, i32) {
    %c0_i32 = arith.constant 0 : i32
    %c0_i32_0 = arith.constant 0 : i32
    %c0_i32_1 = arith.constant 0 : i32
    return %c0_i32, %c0_i32_0 : i32, i32
  }
  func.func @transform_2(%arg0: i32) -> (i32, i32) {
    %c0_i32 = arith.constant 0 : i32
    %c0_i32_0 = arith.constant 0 : i32
    %c0_i32_1 = arith.constant 0 : i32
    return %c0_i32, %c0_i32_0 : i32, i32
  }
  func.func @transform_3(%arg0: i32) -> (i32, i32) {
    %c0_i32 = arith.constant 0 : i32
    %c0_i32_0 = arith.constant 0 : i32
    return %arg0, %c0_i32 : i32, i32
  }
}

module attributes {stable_mosaic.version = 11 : i64} {
  func.func @kernel(%arg0: i32, %arg1: memref<3x1x4x256xbf16, #tpu.memory_space<vmem>>, %arg2: memref<1x4x256xbf16, #tpu.memory_space<vmem>>, %arg3: memref<1x8x4x4xf32, #tpu.memory_space<vmem>>) attributes {dimension_semantics = [#tpu.dimension_semantics<parallel>], iteration_bounds = array<i64: 2>, scalar_prefetch = 0 : i64, scratch_operands = 0 : i64, tpu.core_type = #tpu.core_type<tc>, window_params = [{transform_indices = @transform_0, window_bounds = array<i64: 3, 1, 4, 256>}, {transform_indices = @transform_1, window_bounds = array<i64: 1, 4, 256>}, {transform_indices = @transform_2, window_bounds = array<i64: 1, 8, 4, 4>}]} {
    %0 = tpu.iota {dimensions = array<i32: 0>} : vector<4x4xi32>
    %1 = tpu.iota {dimensions = array<i32: 1>} : vector<4x4xi32>
    %c0_i32 = arith.constant 0 : i32
    %2 = vector.broadcast %c0_i32 : i32 to vector<4x4xi32>
    %3 = arith.cmpi sge, %0, %2 : vector<4x4xi32>
    %c2_i32 = arith.constant 2 : i32
    %4 = vector.broadcast %c2_i32 : i32 to vector<4x4xi32>
    %5 = arith.cmpi slt, %0, %4 : vector<4x4xi32>
    %6 = arith.andi %3, %5 : vector<4x4xi1>
    %c0_i32_0 = arith.constant 0 : i32
    %7 = vector.broadcast %c0_i32_0 : i32 to vector<4x4xi32>
    %8 = arith.cmpi sge, %1, %7 : vector<4x4xi32>
    %9 = arith.andi %6, %8 : vector<4x4xi1>
    %c2_i32_1 = arith.constant 2 : i32
    %10 = vector.broadcast %c2_i32_1 : i32 to vector<4x4xi32>
    %11 = arith.cmpi slt, %1, %10 : vector<4x4xi32>
    %12 = arith.andi %9, %11 : vector<4x4xi1>
    %c1_i32 = arith.constant 1 : i32
    %13 = vector.broadcast %c1_i32 : i32 to vector<4x4xi32>
    %14 = arith.cmpi sge, %0, %13 : vector<4x4xi32>
    %c3_i32 = arith.constant 3 : i32
    %15 = vector.broadcast %c3_i32 : i32 to vector<4x4xi32>
    %16 = arith.cmpi slt, %0, %15 : vector<4x4xi32>
    %17 = arith.andi %14, %16 : vector<4x4xi1>
    %c1_i32_2 = arith.constant 1 : i32
    %18 = vector.broadcast %c1_i32_2 : i32 to vector<4x4xi32>
    %19 = arith.cmpi sge, %1, %18 : vector<4x4xi32>
    %20 = arith.andi %17, %19 : vector<4x4xi1>
    %c3_i32_3 = arith.constant 3 : i32
    %21 = vector.broadcast %c3_i32_3 : i32 to vector<4x4xi32>
    %22 = arith.cmpi slt, %1, %21 : vector<4x4xi32>
    %23 = arith.andi %20, %22 : vector<4x4xi1>
    %c2_i32_4 = arith.constant 2 : i32
    %24 = vector.broadcast %c2_i32_4 : i32 to vector<4x4xi32>
    %25 = arith.cmpi sge, %0, %24 : vector<4x4xi32>
    %c4_i32 = arith.constant 4 : i32
    %26 = vector.broadcast %c4_i32 : i32 to vector<4x4xi32>
    %27 = arith.cmpi slt, %0, %26 : vector<4x4xi32>
    %28 = arith.andi %25, %27 : vector<4x4xi1>
    %c2_i32_5 = arith.constant 2 : i32
    %29 = vector.broadcast %c2_i32_5 : i32 to vector<4x4xi32>
    %30 = arith.cmpi sge, %1, %29 : vector<4x4xi32>
    %31 = arith.andi %28, %30 : vector<4x4xi1>
    %c4_i32_6 = arith.constant 4 : i32
    %32 = vector.broadcast %c4_i32_6 : i32 to vector<4x4xi32>
    %33 = arith.cmpi slt, %1, %32 : vector<4x4xi32>
    %34 = arith.andi %31, %33 : vector<4x4xi1>
    %c3_i32_7 = arith.constant 3 : i32
    %35 = vector.broadcast %c3_i32_7 : i32 to vector<4x4xi32>
    %36 = arith.cmpi sge, %0, %35 : vector<4x4xi32>
    %c4_i32_8 = arith.constant 4 : i32
    %37 = vector.broadcast %c4_i32_8 : i32 to vector<4x4xi32>
    %38 = arith.cmpi slt, %0, %37 : vector<4x4xi32>
    %39 = arith.andi %36, %38 : vector<4x4xi1>
    %c3_i32_9 = arith.constant 3 : i32
    %40 = vector.broadcast %c3_i32_9 : i32 to vector<4x4xi32>
    %41 = arith.cmpi sge, %1, %40 : vector<4x4xi32>
    %42 = arith.andi %39, %41 : vector<4x4xi1>
    %c4_i32_10 = arith.constant 4 : i32
    %43 = vector.broadcast %c4_i32_10 : i32 to vector<4x4xi32>
    %44 = arith.cmpi slt, %1, %43 : vector<4x4xi32>
    %45 = arith.andi %42, %44 : vector<4x4xi1>
    %cst = arith.constant 0xFF800000 : f32
    %46 = vector.broadcast %cst : f32 to vector<4x4xf32>
    %c0 = arith.constant 0 : index
    %c0_11 = arith.constant 0 : index
    %c0_12 = arith.constant 0 : index
    %c0_13 = arith.constant 0 : index
    %47 = vector.load %arg1[%c0, %c0_11, %c0_12, %c0_13] : memref<3x1x4x256xbf16, #tpu.memory_space<vmem>>, vector<1x1x4x32xbf16>
    %48 = vector.shape_cast %47 : vector<1x1x4x32xbf16> to vector<4x32xbf16>
    %c1 = arith.constant 1 : index
    %c0_14 = arith.constant 0 : index
    %c0_15 = arith.constant 0 : index
    %c0_16 = arith.constant 0 : index
    %49 = vector.load %arg1[%c1, %c0_14, %c0_15, %c0_16] : memref<3x1x4x256xbf16, #tpu.memory_space<vmem>>, vector<1x1x4x32xbf16>
    %50 = vector.shape_cast %49 : vector<1x1x4x32xbf16> to vector<4x32xbf16>
    %c2 = arith.constant 2 : index
    %c0_17 = arith.constant 0 : index
    %c0_18 = arith.constant 0 : index
    %c0_19 = arith.constant 0 : index
    %51 = vector.load %arg1[%c2, %c0_17, %c0_18, %c0_19] : memref<3x1x4x256xbf16, #tpu.memory_space<vmem>>, vector<1x1x4x32xbf16>
    %52 = vector.shape_cast %51 : vector<1x1x4x32xbf16> to vector<4x32xbf16>
    %53 = arith.extf %48 : vector<4x32xbf16> to vector<4x32xf32>
    %cst_20 = arith.constant dense<0.000000e+00> : vector<4xf32>
    %54 = vector.multi_reduction <add>, %53, %cst_20 [1] : vector<4x32xf32> to vector<4xf32>
    %55 = vector.shape_cast %54 : vector<4xf32> to vector<4x1xf32>
    %cst_21 = arith.constant 3.200000e+01 : f32
    %56 = vector.broadcast %cst_21 : f32 to vector<4x1xf32>
    %57 = arith.divf %55, %56 : vector<4x1xf32>
    %58 = arith.negf %57 : vector<4x1xf32>
    %59 = math.exp %58 : vector<4x1xf32>
    %cst_22 = arith.constant 1.000000e+00 : f32
    %60 = vector.broadcast %cst_22 : f32 to vector<4x1xf32>
    %61 = arith.addf %60, %59 : vector<4x1xf32>
    %62 = arith.divf %60, %61 : vector<4x1xf32>
    %cst_23 = arith.constant 0.176776692 : f32
    %63 = vector.broadcast %cst_23 : f32 to vector<4x32xf32>
    %64 = arith.mulf %53, %63 : vector<4x32xf32>
    %65 = arith.truncf %64 : vector<4x32xf32> to vector<4x32xbf16>
    %cst_24 = arith.constant dense<0.000000e+00> : vector<4x4xf32>
    %66 = tpu.matmul %65, %50, %cst_24 {dimension_numbers = #tpu.dot_dimension_numbers<[1], [1], [0], [0], [0, 0, 1, 0], [], []>} : vector<4x32xbf16>, vector<4x32xbf16>, vector<4x4xf32> -> vector<4x4xf32>
    %cst_25 = arith.constant dense<0xFF800000> : vector<4xf32>
    %67 = vector.multi_reduction <maximumf>, %66, %cst_25 [1] : vector<4x4xf32> to vector<4xf32>
    %68 = vector.shape_cast %67 : vector<4xf32> to vector<4x1xf32>
    %69 = vector.extract_strided_slice %66 {offsets = [0, 0], sizes = [4, 2], strides = [1, 1]} : vector<4x4xf32> to vector<4x2xf32>
    %cst_26 = arith.constant dense<0xFF800000> : vector<4xf32>
    %70 = vector.multi_reduction <maximumf>, %69, %cst_26 [1] : vector<4x2xf32> to vector<4xf32>
    %71 = vector.shape_cast %70 : vector<4xf32> to vector<4x1xf32>
    %72 = vector.shape_cast %71 : vector<4x1xf32> to vector<4x1xf32>
    %73 = vector.broadcast %72 : vector<4x1xf32> to vector<4x4xf32>
    %74 = arith.select %12, %73, %46 : vector<4x4xi1>, vector<4x4xf32>
    %75 = vector.extract_strided_slice %66 {offsets = [0, 1], sizes = [4, 2], strides = [1, 1]} : vector<4x4xf32> to vector<4x2xf32>
    %cst_27 = arith.constant dense<0xFF800000> : vector<4xf32>
    %76 = vector.multi_reduction <maximumf>, %75, %cst_27 [1] : vector<4x2xf32> to vector<4xf32>
    %77 = vector.shape_cast %76 : vector<4xf32> to vector<4x1xf32>
    %78 = vector.shape_cast %77 : vector<4x1xf32> to vector<4x1xf32>
    %79 = vector.broadcast %78 : vector<4x1xf32> to vector<4x4xf32>
    %80 = arith.select %23, %79, %74 : vector<4x4xi1>, vector<4x4xf32>
    %81 = vector.extract_strided_slice %66 {offsets = [0, 2], sizes = [4, 2], strides = [1, 1]} : vector<4x4xf32> to vector<4x2xf32>
    %cst_28 = arith.constant dense<0xFF800000> : vector<4xf32>
    %82 = vector.multi_reduction <maximumf>, %81, %cst_28 [1] : vector<4x2xf32> to vector<4xf32>
    %83 = vector.shape_cast %82 : vector<4xf32> to vector<4x1xf32>
    %84 = vector.shape_cast %83 : vector<4x1xf32> to vector<4x1xf32>
    %85 = vector.broadcast %84 : vector<4x1xf32> to vector<4x4xf32>
    %86 = arith.select %34, %85, %80 : vector<4x4xi1>, vector<4x4xf32>
    %87 = vector.extract_strided_slice %66 {offsets = [0, 3], sizes = [4, 1], strides = [1, 1]} : vector<4x4xf32> to vector<4x1xf32>
    %cst_29 = arith.constant dense<0xFF800000> : vector<4xf32>
    %88 = vector.multi_reduction <maximumf>, %87, %cst_29 [1] : vector<4x1xf32> to vector<4xf32>
    %89 = vector.shape_cast %88 : vector<4xf32> to vector<4x1xf32>
    %90 = vector.shape_cast %89 : vector<4x1xf32> to vector<4x1xf32>
    %91 = vector.broadcast %90 : vector<4x1xf32> to vector<4x4xf32>
    %92 = arith.select %45, %91, %86 : vector<4x4xi1>, vector<4x4xf32>
    %93 = arith.cmpf oge, %66, %92 : vector<4x4xf32>
    %94 = vector.broadcast %68 : vector<4x1xf32> to vector<4x4xf32>
    %95 = arith.cmpf oge, %66, %94 : vector<4x4xf32>
    %96 = arith.andi %93, %95 : vector<4x4xi1>
    %cst_30 = arith.constant -1.000000e+09 : f32
    %97 = vector.broadcast %cst_30 : f32 to vector<4x4xf32>
    %98 = arith.select %96, %66, %97 : vector<4x4xi1>, vector<4x4xf32>
    %99 = vector.broadcast %68 : vector<4x1xf32> to vector<4x4xf32>
    %100 = arith.subf %98, %99 : vector<4x4xf32>
    %101 = math.exp %100 : vector<4x4xf32>
    %cst_31 = arith.constant dense<0.000000e+00> : vector<4xf32>
    %102 = vector.multi_reduction <add>, %101, %cst_31 [1] : vector<4x4xf32> to vector<4xf32>
    %103 = vector.shape_cast %102 : vector<4xf32> to vector<4x1xf32>
    %104 = tpu.reciprocal %103 {approx = true} : vector<4x1xf32> -> vector<4x1xf32>
    %105 = vector.broadcast %104 : vector<4x1xf32> to vector<4x4xf32>
    %106 = arith.mulf %101, %105 : vector<4x4xf32>
    %107 = arith.extf %52 : vector<4x32xbf16> to vector<4x32xf32>
    %108 = vector.broadcast %62 : vector<4x1xf32> to vector<4x32xf32>
    %109 = arith.mulf %107, %108 : vector<4x32xf32>
    %110 = arith.truncf %109 : vector<4x32xf32> to vector<4x32xbf16>
    %111 = arith.truncf %106 : vector<4x4xf32> to vector<4x4xbf16>
    %cst_32 = arith.constant dense<0.000000e+00> : vector<4x32xf32>
    %112 = tpu.matmul %111, %110, %cst_32 {dimension_numbers = #tpu.dot_dimension_numbers<[1], [0], [0], [1], [0, 0, 1, 1], [], []>} : vector<4x4xbf16>, vector<4x32xbf16>, vector<4x32xf32> -> vector<4x32xf32>
    %113 = arith.truncf %112 : vector<4x32xf32> to vector<4x32xbf16>
    %c0_33 = arith.constant 0 : index
    %c0_34 = arith.constant 0 : index
    %c0_35 = arith.constant 0 : index
    %114 = vector.load %arg2[%c0_33, %c0_34, %c0_35] : memref<1x4x256xbf16, #tpu.memory_space<vmem>>, vector<1x4x32xbf16>
    %115 = vector.shape_cast %114 : vector<1x4x32xbf16> to vector<4x32xbf16>
    %116 = vector.shape_cast %113 : vector<4x32xbf16> to vector<1x4x32xbf16>
    tpu.vector_store %arg2[%c0_33, %c0_34, %c0_35], %116 {strides = array<i32>} : memref<1x4x256xbf16, #tpu.memory_space<vmem>>, vector<1x4x32xbf16>,
    %c0_36 = arith.constant 0 : index
    %c0_37 = arith.constant 0 : index
    %c0_38 = arith.constant 0 : index
    %c0_39 = arith.constant 0 : index
    %117 = vector.load %arg3[%c0_36, %c0_37, %c0_38, %c0_39] : memref<1x8x4x4xf32, #tpu.memory_space<vmem>>, vector<1x1x4x4xf32>
    %118 = vector.shape_cast %117 : vector<1x1x4x4xf32> to vector<4x4xf32>
    %119 = vector.shape_cast %106 : vector<4x4xf32> to vector<1x1x4x4xf32>
    tpu.vector_store %arg3[%c0_36, %c0_37, %c0_38, %c0_39], %119 {strides = array<i32>} : memref<1x8x4x4xf32, #tpu.memory_space<vmem>>, vector<1x1x4x4xf32>,
    %c0_40 = arith.constant 0 : index
    %c0_41 = arith.constant 0 : index
    %c0_42 = arith.constant 0 : index
    %c32 = arith.constant 32 : index
    %120 = vector.load %arg1[%c0_40, %c0_41, %c0_42, %c32] : memref<3x1x4x256xbf16, #tpu.memory_space<vmem>>, vector<1x1x4x32xbf16>
    %121 = vector.shape_cast %120 : vector<1x1x4x32xbf16> to vector<4x32xbf16>
    %c1_43 = arith.constant 1 : index
    %c0_44 = arith.constant 0 : index
    %c0_45 = arith.constant 0 : index
    %c32_46 = arith.constant 32 : index
    %122 = vector.load %arg1[%c1_43, %c0_44, %c0_45, %c32_46] : memref<3x1x4x256xbf16, #tpu.memory_space<vmem>>, vector<1x1x4x32xbf16>
    %123 = vector.shape_cast %122 : vector<1x1x4x32xbf16> to vector<4x32xbf16>
    %c2_47 = arith.constant 2 : index
    %c0_48 = arith.constant 0 : index
    %c0_49 = arith.constant 0 : index
    %c32_50 = arith.constant 32 : index
    %124 = vector.load %arg1[%c2_47, %c0_48, %c0_49, %c32_50] : memref<3x1x4x256xbf16, #tpu.memory_space<vmem>>, vector<1x1x4x32xbf16>
    %125 = vector.shape_cast %124 : vector<1x1x4x32xbf16> to vector<4x32xbf16>
    %126 = arith.extf %121 : vector<4x32xbf16> to vector<4x32xf32>
    %cst_51 = arith.constant dense<0.000000e+00> : vector<4xf32>
    %127 = vector.multi_reduction <add>, %126, %cst_51 [1] : vector<4x32xf32> to vector<4xf32>
    %128 = vector.shape_cast %127 : vector<4xf32> to vector<4x1xf32>
    %cst_52 = arith.constant 3.200000e+01 : f32
    %129 = vector.broadcast %cst_52 : f32 to vector<4x1xf32>
    %130 = arith.divf %128, %129 : vector<4x1xf32>
    %131 = arith.negf %130 : vector<4x1xf32>
    %132 = math.exp %131 : vector<4x1xf32>
    %cst_53 = arith.constant 1.000000e+00 : f32
    %133 = vector.broadcast %cst_53 : f32 to vector<4x1xf32>
    %134 = arith.addf %133, %132 : vector<4x1xf32>
    %135 = arith.divf %133, %134 : vector<4x1xf32>
    %cst_54 = arith.constant 0.176776692 : f32
    %136 = vector.broadcast %cst_54 : f32 to vector<4x32xf32>
    %137 = arith.mulf %126, %136 : vector<4x32xf32>
    %138 = arith.truncf %137 : vector<4x32xf32> to vector<4x32xbf16>
    %cst_55 = arith.constant dense<0.000000e+00> : vector<4x4xf32>
    %139 = tpu.matmul %138, %123, %cst_55 {dimension_numbers = #tpu.dot_dimension_numbers<[1], [1], [0], [0], [0, 0, 1, 0], [], []>} : vector<4x32xbf16>, vector<4x32xbf16>, vector<4x4xf32> -> vector<4x4xf32>
    %cst_56 = arith.constant dense<0xFF800000> : vector<4xf32>
    %140 = vector.multi_reduction <maximumf>, %139, %cst_56 [1] : vector<4x4xf32> to vector<4xf32>
    %141 = vector.shape_cast %140 : vector<4xf32> to vector<4x1xf32>
    %142 = vector.extract_strided_slice %139 {offsets = [0, 0], sizes = [4, 2], strides = [1, 1]} : vector<4x4xf32> to vector<4x2xf32>
    %cst_57 = arith.constant dense<0xFF800000> : vector<4xf32>
    %143 = vector.multi_reduction <maximumf>, %142, %cst_57 [1] : vector<4x2xf32> to vector<4xf32>
    %144 = vector.shape_cast %143 : vector<4xf32> to vector<4x1xf32>
    %145 = vector.shape_cast %144 : vector<4x1xf32> to vector<4x1xf32>
    %146 = vector.broadcast %145 : vector<4x1xf32> to vector<4x4xf32>
    %147 = arith.select %12, %146, %46 : vector<4x4xi1>, vector<4x4xf32>
    %148 = vector.extract_strided_slice %139 {offsets = [0, 1], sizes = [4, 2], strides = [1, 1]} : vector<4x4xf32> to vector<4x2xf32>
    %cst_58 = arith.constant dense<0xFF800000> : vector<4xf32>
    %149 = vector.multi_reduction <maximumf>, %148, %cst_58 [1] : vector<4x2xf32> to vector<4xf32>
    %150 = vector.shape_cast %149 : vector<4xf32> to vector<4x1xf32>
    %151 = vector.shape_cast %150 : vector<4x1xf32> to vector<4x1xf32>
    %152 = vector.broadcast %151 : vector<4x1xf32> to vector<4x4xf32>
    %153 = arith.select %23, %152, %147 : vector<4x4xi1>, vector<4x4xf32>
    %154 = vector.extract_strided_slice %139 {offsets = [0, 2], sizes = [4, 2], strides = [1, 1]} : vector<4x4xf32> to vector<4x2xf32>
    %cst_59 = arith.constant dense<0xFF800000> : vector<4xf32>
    %155 = vector.multi_reduction <maximumf>, %154, %cst_59 [1] : vector<4x2xf32> to vector<4xf32>
    %156 = vector.shape_cast %155 : vector<4xf32> to vector<4x1xf32>
    %157 = vector.shape_cast %156 : vector<4x1xf32> to vector<4x1xf32>
    %158 = vector.broadcast %157 : vector<4x1xf32> to vector<4x4xf32>
    %159 = arith.select %34, %158, %153 : vector<4x4xi1>, vector<4x4xf32>
    %160 = vector.extract_strided_slice %139 {offsets = [0, 3], sizes = [4, 1], strides = [1, 1]} : vector<4x4xf32> to vector<4x1xf32>
    %cst_60 = arith.constant dense<0xFF800000> : vector<4xf32>
    %161 = vector.multi_reduction <maximumf>, %160, %cst_60 [1] : vector<4x1xf32> to vector<4xf32>
    %162 = vector.shape_cast %161 : vector<4xf32> to vector<4x1xf32>
    %163 = vector.shape_cast %162 : vector<4x1xf32> to vector<4x1xf32>
    %164 = vector.broadcast %163 : vector<4x1xf32> to vector<4x4xf32>
    %165 = arith.select %45, %164, %159 : vector<4x4xi1>, vector<4x4xf32>
    %166 = arith.cmpf oge, %139, %165 : vector<4x4xf32>
    %167 = vector.broadcast %141 : vector<4x1xf32> to vector<4x4xf32>
    %168 = arith.cmpf oge, %139, %167 : vector<4x4xf32>
    %169 = arith.andi %166, %168 : vector<4x4xi1>
    %cst_61 = arith.constant -1.000000e+09 : f32
    %170 = vector.broadcast %cst_61 : f32 to vector<4x4xf32>
    %171 = arith.select %169, %139, %170 : vector<4x4xi1>, vector<4x4xf32>
    %172 = vector.broadcast %141 : vector<4x1xf32> to vector<4x4xf32>
    %173 = arith.subf %171, %172 : vector<4x4xf32>
    %174 = math.exp %173 : vector<4x4xf32>
    %cst_62 = arith.constant dense<0.000000e+00> : vector<4xf32>
    %175 = vector.multi_reduction <add>, %174, %cst_62 [1] : vector<4x4xf32> to vector<4xf32>
    %176 = vector.shape_cast %175 : vector<4xf32> to vector<4x1xf32>
    %177 = tpu.reciprocal %176 {approx = true} : vector<4x1xf32> -> vector<4x1xf32>
    %178 = vector.broadcast %177 : vector<4x1xf32> to vector<4x4xf32>
    %179 = arith.mulf %174, %178 : vector<4x4xf32>
    %180 = arith.extf %125 : vector<4x32xbf16> to vector<4x32xf32>
    %181 = vector.broadcast %135 : vector<4x1xf32> to vector<4x32xf32>
    %182 = arith.mulf %180, %181 : vector<4x32xf32>
    %183 = arith.truncf %182 : vector<4x32xf32> to vector<4x32xbf16>
    %184 = arith.truncf %179 : vector<4x4xf32> to vector<4x4xbf16>
    %cst_63 = arith.constant dense<0.000000e+00> : vector<4x32xf32>
    %185 = tpu.matmul %184, %183, %cst_63 {dimension_numbers = #tpu.dot_dimension_numbers<[1], [0], [0], [1], [0, 0, 1, 1], [], []>} : vector<4x4xbf16>, vector<4x32xbf16>, vector<4x32xf32> -> vector<4x32xf32>
    %186 = arith.truncf %185 : vector<4x32xf32> to vector<4x32xbf16>
    %c0_64 = arith.constant 0 : index
    %c0_65 = arith.constant 0 : index
    %c32_66 = arith.constant 32 : index
    %187 = vector.load %arg2[%c0_64, %c0_65, %c32_66] : memref<1x4x256xbf16, #tpu.memory_space<vmem>>, vector<1x4x32xbf16>
    %188 = vector.shape_cast %187 : vector<1x4x32xbf16> to vector<4x32xbf16>
    %189 = vector.shape_cast %186 : vector<4x32xbf16> to vector<1x4x32xbf16>
    tpu.vector_store %arg2[%c0_64, %c0_65, %c32_66], %189 {strides = array<i32>} : memref<1x4x256xbf16, #tpu.memory_space<vmem>>, vector<1x4x32xbf16>,
    %c0_67 = arith.constant 0 : index
    %c1_68 = arith.constant 1 : index
    %c0_69 = arith.constant 0 : index
    %c0_70 = arith.constant 0 : index
    %190 = vector.load %arg3[%c0_67, %c1_68, %c0_69, %c0_70] : memref<1x8x4x4xf32, #tpu.memory_space<vmem>>, vector<1x1x4x4xf32>
    %191 = vector.shape_cast %190 : vector<1x1x4x4xf32> to vector<4x4xf32>
    %192 = vector.shape_cast %179 : vector<4x4xf32> to vector<1x1x4x4xf32>
    tpu.vector_store %arg3[%c0_67, %c1_68, %c0_69, %c0_70], %192 {strides = array<i32>} : memref<1x8x4x4xf32, #tpu.memory_space<vmem>>, vector<1x1x4x4xf32>,
    %c0_71 = arith.constant 0 : index
    %c0_72 = arith.constant 0 : index
    %c0_73 = arith.constant 0 : index
    %c64 = arith.constant 64 : index
    %193 = vector.load %arg1[%c0_71, %c0_72, %c0_73, %c64] : memref<3x1x4x256xbf16, #tpu.memory_space<vmem>>, vector<1x1x4x32xbf16>
    %194 = vector.shape_cast %193 : vector<1x1x4x32xbf16> to vector<4x32xbf16>
    %c1_74 = arith.constant 1 : index
    %c0_75 = arith.constant 0 : index
    %c0_76 = arith.constant 0 : index
    %c64_77 = arith.constant 64 : index
    %195 = vector.load %arg1[%c1_74, %c0_75, %c0_76, %c64_77] : memref<3x1x4x256xbf16, #tpu.memory_space<vmem>>, vector<1x1x4x32xbf16>
    %196 = vector.shape_cast %195 : vector<1x1x4x32xbf16> to vector<4x32xbf16>
    %c2_78 = arith.constant 2 : index
    %c0_79 = arith.constant 0 : index
    %c0_80 = arith.constant 0 : index
    %c64_81 = arith.constant 64 : index
    %197 = vector.load %arg1[%c2_78, %c0_79, %c0_80, %c64_81] : memref<3x1x4x256xbf16, #tpu.memory_space<vmem>>, vector<1x1x4x32xbf16>
    %198 = vector.shape_cast %197 : vector<1x1x4x32xbf16> to vector<4x32xbf16>
    %199 = arith.extf %194 : vector<4x32xbf16> to vector<4x32xf32>
    %cst_82 = arith.constant dense<0.000000e+00> : vector<4xf32>
    %200 = vector.multi_reduction <add>, %199, %cst_82 [1] : vector<4x32xf32> to vector<4xf32>
    %201 = vector.shape_cast %200 : vector<4xf32> to vector<4x1xf32>
    %cst_83 = arith.constant 3.200000e+01 : f32
    %202 = vector.broadcast %cst_83 : f32 to vector<4x1xf32>
    %203 = arith.divf %201, %202 : vector<4x1xf32>
    %204 = arith.negf %203 : vector<4x1xf32>
    %205 = math.exp %204 : vector<4x1xf32>
    %cst_84 = arith.constant 1.000000e+00 : f32
    %206 = vector.broadcast %cst_84 : f32 to vector<4x1xf32>
    %207 = arith.addf %206, %205 : vector<4x1xf32>
    %208 = arith.divf %206, %207 : vector<4x1xf32>
    %cst_85 = arith.constant 0.176776692 : f32
    %209 = vector.broadcast %cst_85 : f32 to vector<4x32xf32>
    %210 = arith.mulf %199, %209 : vector<4x32xf32>
    %211 = arith.truncf %210 : vector<4x32xf32> to vector<4x32xbf16>
    %cst_86 = arith.constant dense<0.000000e+00> : vector<4x4xf32>
    %212 = tpu.matmul %211, %196, %cst_86 {dimension_numbers = #tpu.dot_dimension_numbers<[1], [1], [0], [0], [0, 0, 1, 0], [], []>} : vector<4x32xbf16>, vector<4x32xbf16>, vector<4x4xf32> -> vector<4x4xf32>
    %cst_87 = arith.constant dense<0xFF800000> : vector<4xf32>
    %213 = vector.multi_reduction <maximumf>, %212, %cst_87 [1] : vector<4x4xf32> to vector<4xf32>
    %214 = vector.shape_cast %213 : vector<4xf32> to vector<4x1xf32>
    %215 = vector.extract_strided_slice %212 {offsets = [0, 0], sizes = [4, 2], strides = [1, 1]} : vector<4x4xf32> to vector<4x2xf32>
    %cst_88 = arith.constant dense<0xFF800000> : vector<4xf32>
    %216 = vector.multi_reduction <maximumf>, %215, %cst_88 [1] : vector<4x2xf32> to vector<4xf32>
    %217 = vector.shape_cast %216 : vector<4xf32> to vector<4x1xf32>
    %218 = vector.shape_cast %217 : vector<4x1xf32> to vector<4x1xf32>
    %219 = vector.broadcast %218 : vector<4x1xf32> to vector<4x4xf32>
    %220 = arith.select %12, %219, %46 : vector<4x4xi1>, vector<4x4xf32>
    %221 = vector.extract_strided_slice %212 {offsets = [0, 1], sizes = [4, 2], strides = [1, 1]} : vector<4x4xf32> to vector<4x2xf32>
    %cst_89 = arith.constant dense<0xFF800000> : vector<4xf32>
    %222 = vector.multi_reduction <maximumf>, %221, %cst_89 [1] : vector<4x2xf32> to vector<4xf32>
    %223 = vector.shape_cast %222 : vector<4xf32> to vector<4x1xf32>
    %224 = vector.shape_cast %223 : vector<4x1xf32> to vector<4x1xf32>
    %225 = vector.broadcast %224 : vector<4x1xf32> to vector<4x4xf32>
    %226 = arith.select %23, %225, %220 : vector<4x4xi1>, vector<4x4xf32>
    %227 = vector.extract_strided_slice %212 {offsets = [0, 2], sizes = [4, 2], strides = [1, 1]} : vector<4x4xf32> to vector<4x2xf32>
    %cst_90 = arith.constant dense<0xFF800000> : vector<4xf32>
    %228 = vector.multi_reduction <maximumf>, %227, %cst_90 [1] : vector<4x2xf32> to vector<4xf32>
    %229 = vector.shape_cast %228 : vector<4xf32> to vector<4x1xf32>
    %230 = vector.shape_cast %229 : vector<4x1xf32> to vector<4x1xf32>
    %231 = vector.broadcast %230 : vector<4x1xf32> to vector<4x4xf32>
    %232 = arith.select %34, %231, %226 : vector<4x4xi1>, vector<4x4xf32>
    %233 = vector.extract_strided_slice %212 {offsets = [0, 3], sizes = [4, 1], strides = [1, 1]} : vector<4x4xf32> to vector<4x1xf32>
    %cst_91 = arith.constant dense<0xFF800000> : vector<4xf32>
    %234 = vector.multi_reduction <maximumf>, %233, %cst_91 [1] : vector<4x1xf32> to vector<4xf32>
    %235 = vector.shape_cast %234 : vector<4xf32> to vector<4x1xf32>
    %236 = vector.shape_cast %235 : vector<4x1xf32> to vector<4x1xf32>
    %237 = vector.broadcast %236 : vector<4x1xf32> to vector<4x4xf32>
    %238 = arith.select %45, %237, %232 : vector<4x4xi1>, vector<4x4xf32>
    %239 = arith.cmpf oge, %212, %238 : vector<4x4xf32>
    %240 = vector.broadcast %214 : vector<4x1xf32> to vector<4x4xf32>
    %241 = arith.cmpf oge, %212, %240 : vector<4x4xf32>
    %242 = arith.andi %239, %241 : vector<4x4xi1>
    %cst_92 = arith.constant -1.000000e+09 : f32
    %243 = vector.broadcast %cst_92 : f32 to vector<4x4xf32>
    %244 = arith.select %242, %212, %243 : vector<4x4xi1>, vector<4x4xf32>
    %245 = vector.broadcast %214 : vector<4x1xf32> to vector<4x4xf32>
    %246 = arith.subf %244, %245 : vector<4x4xf32>
    %247 = math.exp %246 : vector<4x4xf32>
    %cst_93 = arith.constant dense<0.000000e+00> : vector<4xf32>
    %248 = vector.multi_reduction <add>, %247, %cst_93 [1] : vector<4x4xf32> to vector<4xf32>
    %249 = vector.shape_cast %248 : vector<4xf32> to vector<4x1xf32>
    %250 = tpu.reciprocal %249 {approx = true} : vector<4x1xf32> -> vector<4x1xf32>
    %251 = vector.broadcast %250 : vector<4x1xf32> to vector<4x4xf32>
    %252 = arith.mulf %247, %251 : vector<4x4xf32>
    %253 = arith.extf %198 : vector<4x32xbf16> to vector<4x32xf32>
    %254 = vector.broadcast %208 : vector<4x1xf32> to vector<4x32xf32>
    %255 = arith.mulf %253, %254 : vector<4x32xf32>
    %256 = arith.truncf %255 : vector<4x32xf32> to vector<4x32xbf16>
    %257 = arith.truncf %252 : vector<4x4xf32> to vector<4x4xbf16>
    %cst_94 = arith.constant dense<0.000000e+00> : vector<4x32xf32>
    %258 = tpu.matmul %257, %256, %cst_94 {dimension_numbers = #tpu.dot_dimension_numbers<[1], [0], [0], [1], [0, 0, 1, 1], [], []>} : vector<4x4xbf16>, vector<4x32xbf16>, vector<4x32xf32> -> vector<4x32xf32>
    %259 = arith.truncf %258 : vector<4x32xf32> to vector<4x32xbf16>
    %c0_95 = arith.constant 0 : index
    %c0_96 = arith.constant 0 : index
    %c64_97 = arith.constant 64 : index
    %260 = vector.load %arg2[%c0_95, %c0_96, %c64_97] : memref<1x4x256xbf16, #tpu.memory_space<vmem>>, vector<1x4x32xbf16>
    %261 = vector.shape_cast %260 : vector<1x4x32xbf16> to vector<4x32xbf16>
    %262 = vector.shape_cast %259 : vector<4x32xbf16> to vector<1x4x32xbf16>
    tpu.vector_store %arg2[%c0_95, %c0_96, %c64_97], %262 {strides = array<i32>} : memref<1x4x256xbf16, #tpu.memory_space<vmem>>, vector<1x4x32xbf16>,
    %c0_98 = arith.constant 0 : index
    %c2_99 = arith.constant 2 : index
    %c0_100 = arith.constant 0 : index
    %c0_101 = arith.constant 0 : index
    %263 = vector.load %arg3[%c0_98, %c2_99, %c0_100, %c0_101] : memref<1x8x4x4xf32, #tpu.memory_space<vmem>>, vector<1x1x4x4xf32>
    %264 = vector.shape_cast %263 : vector<1x1x4x4xf32> to vector<4x4xf32>
    %265 = vector.shape_cast %252 : vector<4x4xf32> to vector<1x1x4x4xf32>
    tpu.vector_store %arg3[%c0_98, %c2_99, %c0_100, %c0_101], %265 {strides = array<i32>} : memref<1x8x4x4xf32, #tpu.memory_space<vmem>>, vector<1x1x4x4xf32>,
    %c0_102 = arith.constant 0 : index
    %c0_103 = arith.constant 0 : index
    %c0_104 = arith.constant 0 : index
    %c96 = arith.constant 96 : index
    %266 = vector.load %arg1[%c0_102, %c0_103, %c0_104, %c96] : memref<3x1x4x256xbf16, #tpu.memory_space<vmem>>, vector<1x1x4x32xbf16>
    %267 = vector.shape_cast %266 : vector<1x1x4x32xbf16> to vector<4x32xbf16>
    %c1_105 = arith.constant 1 : index
    %c0_106 = arith.constant 0 : index
    %c0_107 = arith.constant 0 : index
    %c96_108 = arith.constant 96 : index
    %268 = vector.load %arg1[%c1_105, %c0_106, %c0_107, %c96_108] : memref<3x1x4x256xbf16, #tpu.memory_space<vmem>>, vector<1x1x4x32xbf16>
    %269 = vector.shape_cast %268 : vector<1x1x4x32xbf16> to vector<4x32xbf16>
    %c2_109 = arith.constant 2 : index
    %c0_110 = arith.constant 0 : index
    %c0_111 = arith.constant 0 : index
    %c96_112 = arith.constant 96 : index
    %270 = vector.load %arg1[%c2_109, %c0_110, %c0_111, %c96_112] : memref<3x1x4x256xbf16, #tpu.memory_space<vmem>>, vector<1x1x4x32xbf16>
    %271 = vector.shape_cast %270 : vector<1x1x4x32xbf16> to vector<4x32xbf16>
    %272 = arith.extf %267 : vector<4x32xbf16> to vector<4x32xf32>
    %cst_113 = arith.constant dense<0.000000e+00> : vector<4xf32>
    %273 = vector.multi_reduction <add>, %272, %cst_113 [1] : vector<4x32xf32> to vector<4xf32>
    %274 = vector.shape_cast %273 : vector<4xf32> to vector<4x1xf32>
    %cst_114 = arith.constant 3.200000e+01 : f32
    %275 = vector.broadcast %cst_114 : f32 to vector<4x1xf32>
    %276 = arith.divf %274, %275 : vector<4x1xf32>
    %277 = arith.negf %276 : vector<4x1xf32>
    %278 = math.exp %277 : vector<4x1xf32>
    %cst_115 = arith.constant 1.000000e+00 : f32
    %279 = vector.broadcast %cst_115 : f32 to vector<4x1xf32>
    %280 = arith.addf %279, %278 : vector<4x1xf32>
    %281 = arith.divf %279, %280 : vector<4x1xf32>
    %cst_116 = arith.constant 0.176776692 : f32
    %282 = vector.broadcast %cst_116 : f32 to vector<4x32xf32>
    %283 = arith.mulf %272, %282 : vector<4x32xf32>
    %284 = arith.truncf %283 : vector<4x32xf32> to vector<4x32xbf16>
    %cst_117 = arith.constant dense<0.000000e+00> : vector<4x4xf32>
    %285 = tpu.matmul %284, %269, %cst_117 {dimension_numbers = #tpu.dot_dimension_numbers<[1], [1], [0], [0], [0, 0, 1, 0], [], []>} : vector<4x32xbf16>, vector<4x32xbf16>, vector<4x4xf32> -> vector<4x4xf32>
    %cst_118 = arith.constant dense<0xFF800000> : vector<4xf32>
    %286 = vector.multi_reduction <maximumf>, %285, %cst_118 [1] : vector<4x4xf32> to vector<4xf32>
    %287 = vector.shape_cast %286 : vector<4xf32> to vector<4x1xf32>
    %288 = vector.extract_strided_slice %285 {offsets = [0, 0], sizes = [4, 2], strides = [1, 1]} : vector<4x4xf32> to vector<4x2xf32>
    %cst_119 = arith.constant dense<0xFF800000> : vector<4xf32>
    %289 = vector.multi_reduction <maximumf>, %288, %cst_119 [1] : vector<4x2xf32> to vector<4xf32>
    %290 = vector.shape_cast %289 : vector<4xf32> to vector<4x1xf32>
    %291 = vector.shape_cast %290 : vector<4x1xf32> to vector<4x1xf32>
    %292 = vector.broadcast %291 : vector<4x1xf32> to vector<4x4xf32>
    %293 = arith.select %12, %292, %46 : vector<4x4xi1>, vector<4x4xf32>
    %294 = vector.extract_strided_slice %285 {offsets = [0, 1], sizes = [4, 2], strides = [1, 1]} : vector<4x4xf32> to vector<4x2xf32>
    %cst_120 = arith.constant dense<0xFF800000> : vector<4xf32>
    %295 = vector.multi_reduction <maximumf>, %294, %cst_120 [1] : vector<4x2xf32> to vector<4xf32>
    %296 = vector.shape_cast %295 : vector<4xf32> to vector<4x1xf32>
    %297 = vector.shape_cast %296 : vector<4x1xf32> to vector<4x1xf32>
    %298 = vector.broadcast %297 : vector<4x1xf32> to vector<4x4xf32>
    %299 = arith.select %23, %298, %293 : vector<4x4xi1>, vector<4x4xf32>
    %300 = vector.extract_strided_slice %285 {offsets = [0, 2], sizes = [4, 2], strides = [1, 1]} : vector<4x4xf32> to vector<4x2xf32>
    %cst_121 = arith.constant dense<0xFF800000> : vector<4xf32>
    %301 = vector.multi_reduction <maximumf>, %300, %cst_121 [1] : vector<4x2xf32> to vector<4xf32>
    %302 = vector.shape_cast %301 : vector<4xf32> to vector<4x1xf32>
    %303 = vector.shape_cast %302 : vector<4x1xf32> to vector<4x1xf32>
    %304 = vector.broadcast %303 : vector<4x1xf32> to vector<4x4xf32>
    %305 = arith.select %34, %304, %299 : vector<4x4xi1>, vector<4x4xf32>
    %306 = vector.extract_strided_slice %285 {offsets = [0, 3], sizes = [4, 1], strides = [1, 1]} : vector<4x4xf32> to vector<4x1xf32>
    %cst_122 = arith.constant dense<0xFF800000> : vector<4xf32>
    %307 = vector.multi_reduction <maximumf>, %306, %cst_122 [1] : vector<4x1xf32> to vector<4xf32>
    %308 = vector.shape_cast %307 : vector<4xf32> to vector<4x1xf32>
    %309 = vector.shape_cast %308 : vector<4x1xf32> to vector<4x1xf32>
    %310 = vector.broadcast %309 : vector<4x1xf32> to vector<4x4xf32>
    %311 = arith.select %45, %310, %305 : vector<4x4xi1>, vector<4x4xf32>
    %312 = arith.cmpf oge, %285, %311 : vector<4x4xf32>
    %313 = vector.broadcast %287 : vector<4x1xf32> to vector<4x4xf32>
    %314 = arith.cmpf oge, %285, %313 : vector<4x4xf32>
    %315 = arith.andi %312, %314 : vector<4x4xi1>
    %cst_123 = arith.constant -1.000000e+09 : f32
    %316 = vector.broadcast %cst_123 : f32 to vector<4x4xf32>
    %317 = arith.select %315, %285, %316 : vector<4x4xi1>, vector<4x4xf32>
    %318 = vector.broadcast %287 : vector<4x1xf32> to vector<4x4xf32>
    %319 = arith.subf %317, %318 : vector<4x4xf32>
    %320 = math.exp %319 : vector<4x4xf32>
    %cst_124 = arith.constant dense<0.000000e+00> : vector<4xf32>
    %321 = vector.multi_reduction <add>, %320, %cst_124 [1] : vector<4x4xf32> to vector<4xf32>
    %322 = vector.shape_cast %321 : vector<4xf32> to vector<4x1xf32>
    %323 = tpu.reciprocal %322 {approx = true} : vector<4x1xf32> -> vector<4x1xf32>
    %324 = vector.broadcast %323 : vector<4x1xf32> to vector<4x4xf32>
    %325 = arith.mulf %320, %324 : vector<4x4xf32>
    %326 = arith.extf %271 : vector<4x32xbf16> to vector<4x32xf32>
    %327 = vector.broadcast %281 : vector<4x1xf32> to vector<4x32xf32>
    %328 = arith.mulf %326, %327 : vector<4x32xf32>
    %329 = arith.truncf %328 : vector<4x32xf32> to vector<4x32xbf16>
    %330 = arith.truncf %325 : vector<4x4xf32> to vector<4x4xbf16>
    %cst_125 = arith.constant dense<0.000000e+00> : vector<4x32xf32>
    %331 = tpu.matmul %330, %329, %cst_125 {dimension_numbers = #tpu.dot_dimension_numbers<[1], [0], [0], [1], [0, 0, 1, 1], [], []>} : vector<4x4xbf16>, vector<4x32xbf16>, vector<4x32xf32> -> vector<4x32xf32>
    %332 = arith.truncf %331 : vector<4x32xf32> to vector<4x32xbf16>
    %c0_126 = arith.constant 0 : index
    %c0_127 = arith.constant 0 : index
    %c96_128 = arith.constant 96 : index
    %333 = vector.load %arg2[%c0_126, %c0_127, %c96_128] : memref<1x4x256xbf16, #tpu.memory_space<vmem>>, vector<1x4x32xbf16>
    %334 = vector.shape_cast %333 : vector<1x4x32xbf16> to vector<4x32xbf16>
    %335 = vector.shape_cast %332 : vector<4x32xbf16> to vector<1x4x32xbf16>
    tpu.vector_store %arg2[%c0_126, %c0_127, %c96_128], %335 {strides = array<i32>} : memref<1x4x256xbf16, #tpu.memory_space<vmem>>, vector<1x4x32xbf16>,
    %c0_129 = arith.constant 0 : index
    %c3 = arith.constant 3 : index
    %c0_130 = arith.constant 0 : index
    %c0_131 = arith.constant 0 : index
    %336 = vector.load %arg3[%c0_129, %c3, %c0_130, %c0_131] : memref<1x8x4x4xf32, #tpu.memory_space<vmem>>, vector<1x1x4x4xf32>
    %337 = vector.shape_cast %336 : vector<1x1x4x4xf32> to vector<4x4xf32>
    %338 = vector.shape_cast %325 : vector<4x4xf32> to vector<1x1x4x4xf32>
    tpu.vector_store %arg3[%c0_129, %c3, %c0_130, %c0_131], %338 {strides = array<i32>} : memref<1x8x4x4xf32, #tpu.memory_space<vmem>>, vector<1x1x4x4xf32>,
    %c0_132 = arith.constant 0 : index
    %c0_133 = arith.constant 0 : index
    %c0_134 = arith.constant 0 : index
    %c128 = arith.constant 128 : index
    %339 = vector.load %arg1[%c0_132, %c0_133, %c0_134, %c128] : memref<3x1x4x256xbf16, #tpu.memory_space<vmem>>, vector<1x1x4x32xbf16>
    %340 = vector.shape_cast %339 : vector<1x1x4x32xbf16> to vector<4x32xbf16>
    %c1_135 = arith.constant 1 : index
    %c0_136 = arith.constant 0 : index
    %c0_137 = arith.constant 0 : index
    %c128_138 = arith.constant 128 : index
    %341 = vector.load %arg1[%c1_135, %c0_136, %c0_137, %c128_138] : memref<3x1x4x256xbf16, #tpu.memory_space<vmem>>, vector<1x1x4x32xbf16>
    %342 = vector.shape_cast %341 : vector<1x1x4x32xbf16> to vector<4x32xbf16>
    %c2_139 = arith.constant 2 : index
    %c0_140 = arith.constant 0 : index
    %c0_141 = arith.constant 0 : index
    %c128_142 = arith.constant 128 : index
    %343 = vector.load %arg1[%c2_139, %c0_140, %c0_141, %c128_142] : memref<3x1x4x256xbf16, #tpu.memory_space<vmem>>, vector<1x1x4x32xbf16>
    %344 = vector.shape_cast %343 : vector<1x1x4x32xbf16> to vector<4x32xbf16>
    %345 = arith.extf %340 : vector<4x32xbf16> to vector<4x32xf32>
    %cst_143 = arith.constant dense<0.000000e+00> : vector<4xf32>
    %346 = vector.multi_reduction <add>, %345, %cst_143 [1] : vector<4x32xf32> to vector<4xf32>
    %347 = vector.shape_cast %346 : vector<4xf32> to vector<4x1xf32>
    %cst_144 = arith.constant 3.200000e+01 : f32
    %348 = vector.broadcast %cst_144 : f32 to vector<4x1xf32>
    %349 = arith.divf %347, %348 : vector<4x1xf32>
    %350 = arith.negf %349 : vector<4x1xf32>
    %351 = math.exp %350 : vector<4x1xf32>
    %cst_145 = arith.constant 1.000000e+00 : f32
    %352 = vector.broadcast %cst_145 : f32 to vector<4x1xf32>
    %353 = arith.addf %352, %351 : vector<4x1xf32>
    %354 = arith.divf %352, %353 : vector<4x1xf32>
    %cst_146 = arith.constant 0.176776692 : f32
    %355 = vector.broadcast %cst_146 : f32 to vector<4x32xf32>
    %356 = arith.mulf %345, %355 : vector<4x32xf32>
    %357 = arith.truncf %356 : vector<4x32xf32> to vector<4x32xbf16>
    %cst_147 = arith.constant dense<0.000000e+00> : vector<4x4xf32>
    %358 = tpu.matmul %357, %342, %cst_147 {dimension_numbers = #tpu.dot_dimension_numbers<[1], [1], [0], [0], [0, 0, 1, 0], [], []>} : vector<4x32xbf16>, vector<4x32xbf16>, vector<4x4xf32> -> vector<4x4xf32>
    %cst_148 = arith.constant dense<0xFF800000> : vector<4xf32>
    %359 = vector.multi_reduction <maximumf>, %358, %cst_148 [1] : vector<4x4xf32> to vector<4xf32>
    %360 = vector.shape_cast %359 : vector<4xf32> to vector<4x1xf32>
    %361 = vector.extract_strided_slice %358 {offsets = [0, 0], sizes = [4, 2], strides = [1, 1]} : vector<4x4xf32> to vector<4x2xf32>
    %cst_149 = arith.constant dense<0xFF800000> : vector<4xf32>
    %362 = vector.multi_reduction <maximumf>, %361, %cst_149 [1] : vector<4x2xf32> to vector<4xf32>
    %363 = vector.shape_cast %362 : vector<4xf32> to vector<4x1xf32>
    %364 = vector.shape_cast %363 : vector<4x1xf32> to vector<4x1xf32>
    %365 = vector.broadcast %364 : vector<4x1xf32> to vector<4x4xf32>
    %366 = arith.select %12, %365, %46 : vector<4x4xi1>, vector<4x4xf32>
    %367 = vector.extract_strided_slice %358 {offsets = [0, 1], sizes = [4, 2], strides = [1, 1]} : vector<4x4xf32> to vector<4x2xf32>
    %cst_150 = arith.constant dense<0xFF800000> : vector<4xf32>
    %368 = vector.multi_reduction <maximumf>, %367, %cst_150 [1] : vector<4x2xf32> to vector<4xf32>
    %369 = vector.shape_cast %368 : vector<4xf32> to vector<4x1xf32>
    %370 = vector.shape_cast %369 : vector<4x1xf32> to vector<4x1xf32>
    %371 = vector.broadcast %370 : vector<4x1xf32> to vector<4x4xf32>
    %372 = arith.select %23, %371, %366 : vector<4x4xi1>, vector<4x4xf32>
    %373 = vector.extract_strided_slice %358 {offsets = [0, 2], sizes = [4, 2], strides = [1, 1]} : vector<4x4xf32> to vector<4x2xf32>
    %cst_151 = arith.constant dense<0xFF800000> : vector<4xf32>
    %374 = vector.multi_reduction <maximumf>, %373, %cst_151 [1] : vector<4x2xf32> to vector<4xf32>
    %375 = vector.shape_cast %374 : vector<4xf32> to vector<4x1xf32>
    %376 = vector.shape_cast %375 : vector<4x1xf32> to vector<4x1xf32>
    %377 = vector.broadcast %376 : vector<4x1xf32> to vector<4x4xf32>
    %378 = arith.select %34, %377, %372 : vector<4x4xi1>, vector<4x4xf32>
    %379 = vector.extract_strided_slice %358 {offsets = [0, 3], sizes = [4, 1], strides = [1, 1]} : vector<4x4xf32> to vector<4x1xf32>
    %cst_152 = arith.constant dense<0xFF800000> : vector<4xf32>
    %380 = vector.multi_reduction <maximumf>, %379, %cst_152 [1] : vector<4x1xf32> to vector<4xf32>
    %381 = vector.shape_cast %380 : vector<4xf32> to vector<4x1xf32>
    %382 = vector.shape_cast %381 : vector<4x1xf32> to vector<4x1xf32>
    %383 = vector.broadcast %382 : vector<4x1xf32> to vector<4x4xf32>
    %384 = arith.select %45, %383, %378 : vector<4x4xi1>, vector<4x4xf32>
    %385 = arith.cmpf oge, %358, %384 : vector<4x4xf32>
    %386 = vector.broadcast %360 : vector<4x1xf32> to vector<4x4xf32>
    %387 = arith.cmpf oge, %358, %386 : vector<4x4xf32>
    %388 = arith.andi %385, %387 : vector<4x4xi1>
    %cst_153 = arith.constant -1.000000e+09 : f32
    %389 = vector.broadcast %cst_153 : f32 to vector<4x4xf32>
    %390 = arith.select %388, %358, %389 : vector<4x4xi1>, vector<4x4xf32>
    %391 = vector.broadcast %360 : vector<4x1xf32> to vector<4x4xf32>
    %392 = arith.subf %390, %391 : vector<4x4xf32>
    %393 = math.exp %392 : vector<4x4xf32>
    %cst_154 = arith.constant dense<0.000000e+00> : vector<4xf32>
    %394 = vector.multi_reduction <add>, %393, %cst_154 [1] : vector<4x4xf32> to vector<4xf32>
    %395 = vector.shape_cast %394 : vector<4xf32> to vector<4x1xf32>
    %396 = tpu.reciprocal %395 {approx = true} : vector<4x1xf32> -> vector<4x1xf32>
    %397 = vector.broadcast %396 : vector<4x1xf32> to vector<4x4xf32>
    %398 = arith.mulf %393, %397 : vector<4x4xf32>
    %399 = arith.extf %344 : vector<4x32xbf16> to vector<4x32xf32>
    %400 = vector.broadcast %354 : vector<4x1xf32> to vector<4x32xf32>
    %401 = arith.mulf %399, %400 : vector<4x32xf32>
    %402 = arith.truncf %401 : vector<4x32xf32> to vector<4x32xbf16>
    %403 = arith.truncf %398 : vector<4x4xf32> to vector<4x4xbf16>
    %cst_155 = arith.constant dense<0.000000e+00> : vector<4x32xf32>
    %404 = tpu.matmul %403, %402, %cst_155 {dimension_numbers = #tpu.dot_dimension_numbers<[1], [0], [0], [1], [0, 0, 1, 1], [], []>} : vector<4x4xbf16>, vector<4x32xbf16>, vector<4x32xf32> -> vector<4x32xf32>
    %405 = arith.truncf %404 : vector<4x32xf32> to vector<4x32xbf16>
    %c0_156 = arith.constant 0 : index
    %c0_157 = arith.constant 0 : index
    %c128_158 = arith.constant 128 : index
    %406 = vector.load %arg2[%c0_156, %c0_157, %c128_158] : memref<1x4x256xbf16, #tpu.memory_space<vmem>>, vector<1x4x32xbf16>
    %407 = vector.shape_cast %406 : vector<1x4x32xbf16> to vector<4x32xbf16>
    %408 = vector.shape_cast %405 : vector<4x32xbf16> to vector<1x4x32xbf16>
    tpu.vector_store %arg2[%c0_156, %c0_157, %c128_158], %408 {strides = array<i32>} : memref<1x4x256xbf16, #tpu.memory_space<vmem>>, vector<1x4x32xbf16>,
    %c0_159 = arith.constant 0 : index
    %c4 = arith.constant 4 : index
    %c0_160 = arith.constant 0 : index
    %c0_161 = arith.constant 0 : index
    %409 = vector.load %arg3[%c0_159, %c4, %c0_160, %c0_161] : memref<1x8x4x4xf32, #tpu.memory_space<vmem>>, vector<1x1x4x4xf32>
    %410 = vector.shape_cast %409 : vector<1x1x4x4xf32> to vector<4x4xf32>
    %411 = vector.shape_cast %398 : vector<4x4xf32> to vector<1x1x4x4xf32>
    tpu.vector_store %arg3[%c0_159, %c4, %c0_160, %c0_161], %411 {strides = array<i32>} : memref<1x8x4x4xf32, #tpu.memory_space<vmem>>, vector<1x1x4x4xf32>,
    %c0_162 = arith.constant 0 : index
    %c0_163 = arith.constant 0 : index
    %c0_164 = arith.constant 0 : index
    %c160 = arith.constant 160 : index
    %412 = vector.load %arg1[%c0_162, %c0_163, %c0_164, %c160] : memref<3x1x4x256xbf16, #tpu.memory_space<vmem>>, vector<1x1x4x32xbf16>
    %413 = vector.shape_cast %412 : vector<1x1x4x32xbf16> to vector<4x32xbf16>
    %c1_165 = arith.constant 1 : index
    %c0_166 = arith.constant 0 : index
    %c0_167 = arith.constant 0 : index
    %c160_168 = arith.constant 160 : index
    %414 = vector.load %arg1[%c1_165, %c0_166, %c0_167, %c160_168] : memref<3x1x4x256xbf16, #tpu.memory_space<vmem>>, vector<1x1x4x32xbf16>
    %415 = vector.shape_cast %414 : vector<1x1x4x32xbf16> to vector<4x32xbf16>
    %c2_169 = arith.constant 2 : index
    %c0_170 = arith.constant 0 : index
    %c0_171 = arith.constant 0 : index
    %c160_172 = arith.constant 160 : index
    %416 = vector.load %arg1[%c2_169, %c0_170, %c0_171, %c160_172] : memref<3x1x4x256xbf16, #tpu.memory_space<vmem>>, vector<1x1x4x32xbf16>
    %417 = vector.shape_cast %416 : vector<1x1x4x32xbf16> to vector<4x32xbf16>
    %418 = arith.extf %413 : vector<4x32xbf16> to vector<4x32xf32>
    %cst_173 = arith.constant dense<0.000000e+00> : vector<4xf32>
    %419 = vector.multi_reduction <add>, %418, %cst_173 [1] : vector<4x32xf32> to vector<4xf32>
    %420 = vector.shape_cast %419 : vector<4xf32> to vector<4x1xf32>
    %cst_174 = arith.constant 3.200000e+01 : f32
    %421 = vector.broadcast %cst_174 : f32 to vector<4x1xf32>
    %422 = arith.divf %420, %421 : vector<4x1xf32>
    %423 = arith.negf %422 : vector<4x1xf32>
    %424 = math.exp %423 : vector<4x1xf32>
    %cst_175 = arith.constant 1.000000e+00 : f32
    %425 = vector.broadcast %cst_175 : f32 to vector<4x1xf32>
    %426 = arith.addf %425, %424 : vector<4x1xf32>
    %427 = arith.divf %425, %426 : vector<4x1xf32>
    %cst_176 = arith.constant 0.176776692 : f32
    %428 = vector.broadcast %cst_176 : f32 to vector<4x32xf32>
    %429 = arith.mulf %418, %428 : vector<4x32xf32>
    %430 = arith.truncf %429 : vector<4x32xf32> to vector<4x32xbf16>
    %cst_177 = arith.constant dense<0.000000e+00> : vector<4x4xf32>
    %431 = tpu.matmul %430, %415, %cst_177 {dimension_numbers = #tpu.dot_dimension_numbers<[1], [1], [0], [0], [0, 0, 1, 0], [], []>} : vector<4x32xbf16>, vector<4x32xbf16>, vector<4x4xf32> -> vector<4x4xf32>
    %cst_178 = arith.constant dense<0xFF800000> : vector<4xf32>
    %432 = vector.multi_reduction <maximumf>, %431, %cst_178 [1] : vector<4x4xf32> to vector<4xf32>
    %433 = vector.shape_cast %432 : vector<4xf32> to vector<4x1xf32>
    %434 = vector.extract_strided_slice %431 {offsets = [0, 0], sizes = [4, 2], strides = [1, 1]} : vector<4x4xf32> to vector<4x2xf32>
    %cst_179 = arith.constant dense<0xFF800000> : vector<4xf32>
    %435 = vector.multi_reduction <maximumf>, %434, %cst_179 [1] : vector<4x2xf32> to vector<4xf32>
    %436 = vector.shape_cast %435 : vector<4xf32> to vector<4x1xf32>
    %437 = vector.shape_cast %436 : vector<4x1xf32> to vector<4x1xf32>
    %438 = vector.broadcast %437 : vector<4x1xf32> to vector<4x4xf32>
    %439 = arith.select %12, %438, %46 : vector<4x4xi1>, vector<4x4xf32>
    %440 = vector.extract_strided_slice %431 {offsets = [0, 1], sizes = [4, 2], strides = [1, 1]} : vector<4x4xf32> to vector<4x2xf32>
    %cst_180 = arith.constant dense<0xFF800000> : vector<4xf32>
    %441 = vector.multi_reduction <maximumf>, %440, %cst_180 [1] : vector<4x2xf32> to vector<4xf32>
    %442 = vector.shape_cast %441 : vector<4xf32> to vector<4x1xf32>
    %443 = vector.shape_cast %442 : vector<4x1xf32> to vector<4x1xf32>
    %444 = vector.broadcast %443 : vector<4x1xf32> to vector<4x4xf32>
    %445 = arith.select %23, %444, %439 : vector<4x4xi1>, vector<4x4xf32>
    %446 = vector.extract_strided_slice %431 {offsets = [0, 2], sizes = [4, 2], strides = [1, 1]} : vector<4x4xf32> to vector<4x2xf32>
    %cst_181 = arith.constant dense<0xFF800000> : vector<4xf32>
    %447 = vector.multi_reduction <maximumf>, %446, %cst_181 [1] : vector<4x2xf32> to vector<4xf32>
    %448 = vector.shape_cast %447 : vector<4xf32> to vector<4x1xf32>
    %449 = vector.shape_cast %448 : vector<4x1xf32> to vector<4x1xf32>
    %450 = vector.broadcast %449 : vector<4x1xf32> to vector<4x4xf32>
    %451 = arith.select %34, %450, %445 : vector<4x4xi1>, vector<4x4xf32>
    %452 = vector.extract_strided_slice %431 {offsets = [0, 3], sizes = [4, 1], strides = [1, 1]} : vector<4x4xf32> to vector<4x1xf32>
    %cst_182 = arith.constant dense<0xFF800000> : vector<4xf32>
    %453 = vector.multi_reduction <maximumf>, %452, %cst_182 [1] : vector<4x1xf32> to vector<4xf32>
    %454 = vector.shape_cast %453 : vector<4xf32> to vector<4x1xf32>
    %455 = vector.shape_cast %454 : vector<4x1xf32> to vector<4x1xf32>
    %456 = vector.broadcast %455 : vector<4x1xf32> to vector<4x4xf32>
    %457 = arith.select %45, %456, %451 : vector<4x4xi1>, vector<4x4xf32>
    %458 = arith.cmpf oge, %431, %457 : vector<4x4xf32>
    %459 = vector.broadcast %433 : vector<4x1xf32> to vector<4x4xf32>
    %460 = arith.cmpf oge, %431, %459 : vector<4x4xf32>
    %461 = arith.andi %458, %460 : vector<4x4xi1>
    %cst_183 = arith.constant -1.000000e+09 : f32
    %462 = vector.broadcast %cst_183 : f32 to vector<4x4xf32>
    %463 = arith.select %461, %431, %462 : vector<4x4xi1>, vector<4x4xf32>
    %464 = vector.broadcast %433 : vector<4x1xf32> to vector<4x4xf32>
    %465 = arith.subf %463, %464 : vector<4x4xf32>
    %466 = math.exp %465 : vector<4x4xf32>
    %cst_184 = arith.constant dense<0.000000e+00> : vector<4xf32>
    %467 = vector.multi_reduction <add>, %466, %cst_184 [1] : vector<4x4xf32> to vector<4xf32>
    %468 = vector.shape_cast %467 : vector<4xf32> to vector<4x1xf32>
    %469 = tpu.reciprocal %468 {approx = true} : vector<4x1xf32> -> vector<4x1xf32>
    %470 = vector.broadcast %469 : vector<4x1xf32> to vector<4x4xf32>
    %471 = arith.mulf %466, %470 : vector<4x4xf32>
    %472 = arith.extf %417 : vector<4x32xbf16> to vector<4x32xf32>
    %473 = vector.broadcast %427 : vector<4x1xf32> to vector<4x32xf32>
    %474 = arith.mulf %472, %473 : vector<4x32xf32>
    %475 = arith.truncf %474 : vector<4x32xf32> to vector<4x32xbf16>
    %476 = arith.truncf %471 : vector<4x4xf32> to vector<4x4xbf16>
    %cst_185 = arith.constant dense<0.000000e+00> : vector<4x32xf32>
    %477 = tpu.matmul %476, %475, %cst_185 {dimension_numbers = #tpu.dot_dimension_numbers<[1], [0], [0], [1], [0, 0, 1, 1], [], []>} : vector<4x4xbf16>, vector<4x32xbf16>, vector<4x32xf32> -> vector<4x32xf32>
    %478 = arith.truncf %477 : vector<4x32xf32> to vector<4x32xbf16>
    %c0_186 = arith.constant 0 : index
    %c0_187 = arith.constant 0 : index
    %c160_188 = arith.constant 160 : index
    %479 = vector.load %arg2[%c0_186, %c0_187, %c160_188] : memref<1x4x256xbf16, #tpu.memory_space<vmem>>, vector<1x4x32xbf16>
    %480 = vector.shape_cast %479 : vector<1x4x32xbf16> to vector<4x32xbf16>
    %481 = vector.shape_cast %478 : vector<4x32xbf16> to vector<1x4x32xbf16>
    tpu.vector_store %arg2[%c0_186, %c0_187, %c160_188], %481 {strides = array<i32>} : memref<1x4x256xbf16, #tpu.memory_space<vmem>>, vector<1x4x32xbf16>,
    %c0_189 = arith.constant 0 : index
    %c5 = arith.constant 5 : index
    %c0_190 = arith.constant 0 : index
    %c0_191 = arith.constant 0 : index
    %482 = vector.load %arg3[%c0_189, %c5, %c0_190, %c0_191] : memref<1x8x4x4xf32, #tpu.memory_space<vmem>>, vector<1x1x4x4xf32>
    %483 = vector.shape_cast %482 : vector<1x1x4x4xf32> to vector<4x4xf32>
    %484 = vector.shape_cast %471 : vector<4x4xf32> to vector<1x1x4x4xf32>
    tpu.vector_store %arg3[%c0_189, %c5, %c0_190, %c0_191], %484 {strides = array<i32>} : memref<1x8x4x4xf32, #tpu.memory_space<vmem>>, vector<1x1x4x4xf32>,
    %c0_192 = arith.constant 0 : index
    %c0_193 = arith.constant 0 : index
    %c0_194 = arith.constant 0 : index
    %c192 = arith.constant 192 : index
    %485 = vector.load %arg1[%c0_192, %c0_193, %c0_194, %c192] : memref<3x1x4x256xbf16, #tpu.memory_space<vmem>>, vector<1x1x4x32xbf16>
    %486 = vector.shape_cast %485 : vector<1x1x4x32xbf16> to vector<4x32xbf16>
    %c1_195 = arith.constant 1 : index
    %c0_196 = arith.constant 0 : index
    %c0_197 = arith.constant 0 : index
    %c192_198 = arith.constant 192 : index
    %487 = vector.load %arg1[%c1_195, %c0_196, %c0_197, %c192_198] : memref<3x1x4x256xbf16, #tpu.memory_space<vmem>>, vector<1x1x4x32xbf16>
    %488 = vector.shape_cast %487 : vector<1x1x4x32xbf16> to vector<4x32xbf16>
    %c2_199 = arith.constant 2 : index
    %c0_200 = arith.constant 0 : index
    %c0_201 = arith.constant 0 : index
    %c192_202 = arith.constant 192 : index
    %489 = vector.load %arg1[%c2_199, %c0_200, %c0_201, %c192_202] : memref<3x1x4x256xbf16, #tpu.memory_space<vmem>>, vector<1x1x4x32xbf16>
    %490 = vector.shape_cast %489 : vector<1x1x4x32xbf16> to vector<4x32xbf16>
    %491 = arith.extf %486 : vector<4x32xbf16> to vector<4x32xf32>
    %cst_203 = arith.constant dense<0.000000e+00> : vector<4xf32>
    %492 = vector.multi_reduction <add>, %491, %cst_203 [1] : vector<4x32xf32> to vector<4xf32>
    %493 = vector.shape_cast %492 : vector<4xf32> to vector<4x1xf32>
    %cst_204 = arith.constant 3.200000e+01 : f32
    %494 = vector.broadcast %cst_204 : f32 to vector<4x1xf32>
    %495 = arith.divf %493, %494 : vector<4x1xf32>
    %496 = arith.negf %495 : vector<4x1xf32>
    %497 = math.exp %496 : vector<4x1xf32>
    %cst_205 = arith.constant 1.000000e+00 : f32
    %498 = vector.broadcast %cst_205 : f32 to vector<4x1xf32>
    %499 = arith.addf %498, %497 : vector<4x1xf32>
    %500 = arith.divf %498, %499 : vector<4x1xf32>
    %cst_206 = arith.constant 0.176776692 : f32
    %501 = vector.broadcast %cst_206 : f32 to vector<4x32xf32>
    %502 = arith.mulf %491, %501 : vector<4x32xf32>
    %503 = arith.truncf %502 : vector<4x32xf32> to vector<4x32xbf16>
    %cst_207 = arith.constant dense<0.000000e+00> : vector<4x4xf32>
    %504 = tpu.matmul %503, %488, %cst_207 {dimension_numbers = #tpu.dot_dimension_numbers<[1], [1], [0], [0], [0, 0, 1, 0], [], []>} : vector<4x32xbf16>, vector<4x32xbf16>, vector<4x4xf32> -> vector<4x4xf32>
    %cst_208 = arith.constant dense<0xFF800000> : vector<4xf32>
    %505 = vector.multi_reduction <maximumf>, %504, %cst_208 [1] : vector<4x4xf32> to vector<4xf32>
    %506 = vector.shape_cast %505 : vector<4xf32> to vector<4x1xf32>
    %507 = vector.extract_strided_slice %504 {offsets = [0, 0], sizes = [4, 2], strides = [1, 1]} : vector<4x4xf32> to vector<4x2xf32>
    %cst_209 = arith.constant dense<0xFF800000> : vector<4xf32>
    %508 = vector.multi_reduction <maximumf>, %507, %cst_209 [1] : vector<4x2xf32> to vector<4xf32>
    %509 = vector.shape_cast %508 : vector<4xf32> to vector<4x1xf32>
    %510 = vector.shape_cast %509 : vector<4x1xf32> to vector<4x1xf32>
    %511 = vector.broadcast %510 : vector<4x1xf32> to vector<4x4xf32>
    %512 = arith.select %12, %511, %46 : vector<4x4xi1>, vector<4x4xf32>
    %513 = vector.extract_strided_slice %504 {offsets = [0, 1], sizes = [4, 2], strides = [1, 1]} : vector<4x4xf32> to vector<4x2xf32>
    %cst_210 = arith.constant dense<0xFF800000> : vector<4xf32>
    %514 = vector.multi_reduction <maximumf>, %513, %cst_210 [1] : vector<4x2xf32> to vector<4xf32>
    %515 = vector.shape_cast %514 : vector<4xf32> to vector<4x1xf32>
    %516 = vector.shape_cast %515 : vector<4x1xf32> to vector<4x1xf32>
    %517 = vector.broadcast %516 : vector<4x1xf32> to vector<4x4xf32>
    %518 = arith.select %23, %517, %512 : vector<4x4xi1>, vector<4x4xf32>
    %519 = vector.extract_strided_slice %504 {offsets = [0, 2], sizes = [4, 2], strides = [1, 1]} : vector<4x4xf32> to vector<4x2xf32>
    %cst_211 = arith.constant dense<0xFF800000> : vector<4xf32>
    %520 = vector.multi_reduction <maximumf>, %519, %cst_211 [1] : vector<4x2xf32> to vector<4xf32>
    %521 = vector.shape_cast %520 : vector<4xf32> to vector<4x1xf32>
    %522 = vector.shape_cast %521 : vector<4x1xf32> to vector<4x1xf32>
    %523 = vector.broadcast %522 : vector<4x1xf32> to vector<4x4xf32>
    %524 = arith.select %34, %523, %518 : vector<4x4xi1>, vector<4x4xf32>
    %525 = vector.extract_strided_slice %504 {offsets = [0, 3], sizes = [4, 1], strides = [1, 1]} : vector<4x4xf32> to vector<4x1xf32>
    %cst_212 = arith.constant dense<0xFF800000> : vector<4xf32>
    %526 = vector.multi_reduction <maximumf>, %525, %cst_212 [1] : vector<4x1xf32> to vector<4xf32>
    %527 = vector.shape_cast %526 : vector<4xf32> to vector<4x1xf32>
    %528 = vector.shape_cast %527 : vector<4x1xf32> to vector<4x1xf32>
    %529 = vector.broadcast %528 : vector<4x1xf32> to vector<4x4xf32>
    %530 = arith.select %45, %529, %524 : vector<4x4xi1>, vector<4x4xf32>
    %531 = arith.cmpf oge, %504, %530 : vector<4x4xf32>
    %532 = vector.broadcast %506 : vector<4x1xf32> to vector<4x4xf32>
    %533 = arith.cmpf oge, %504, %532 : vector<4x4xf32>
    %534 = arith.andi %531, %533 : vector<4x4xi1>
    %cst_213 = arith.constant -1.000000e+09 : f32
    %535 = vector.broadcast %cst_213 : f32 to vector<4x4xf32>
    %536 = arith.select %534, %504, %535 : vector<4x4xi1>, vector<4x4xf32>
    %537 = vector.broadcast %506 : vector<4x1xf32> to vector<4x4xf32>
    %538 = arith.subf %536, %537 : vector<4x4xf32>
    %539 = math.exp %538 : vector<4x4xf32>
    %cst_214 = arith.constant dense<0.000000e+00> : vector<4xf32>
    %540 = vector.multi_reduction <add>, %539, %cst_214 [1] : vector<4x4xf32> to vector<4xf32>
    %541 = vector.shape_cast %540 : vector<4xf32> to vector<4x1xf32>
    %542 = tpu.reciprocal %541 {approx = true} : vector<4x1xf32> -> vector<4x1xf32>
    %543 = vector.broadcast %542 : vector<4x1xf32> to vector<4x4xf32>
    %544 = arith.mulf %539, %543 : vector<4x4xf32>
    %545 = arith.extf %490 : vector<4x32xbf16> to vector<4x32xf32>
    %546 = vector.broadcast %500 : vector<4x1xf32> to vector<4x32xf32>
    %547 = arith.mulf %545, %546 : vector<4x32xf32>
    %548 = arith.truncf %547 : vector<4x32xf32> to vector<4x32xbf16>
    %549 = arith.truncf %544 : vector<4x4xf32> to vector<4x4xbf16>
    %cst_215 = arith.constant dense<0.000000e+00> : vector<4x32xf32>
    %550 = tpu.matmul %549, %548, %cst_215 {dimension_numbers = #tpu.dot_dimension_numbers<[1], [0], [0], [1], [0, 0, 1, 1], [], []>} : vector<4x4xbf16>, vector<4x32xbf16>, vector<4x32xf32> -> vector<4x32xf32>
    %551 = arith.truncf %550 : vector<4x32xf32> to vector<4x32xbf16>
    %c0_216 = arith.constant 0 : index
    %c0_217 = arith.constant 0 : index
    %c192_218 = arith.constant 192 : index
    %552 = vector.load %arg2[%c0_216, %c0_217, %c192_218] : memref<1x4x256xbf16, #tpu.memory_space<vmem>>, vector<1x4x32xbf16>
    %553 = vector.shape_cast %552 : vector<1x4x32xbf16> to vector<4x32xbf16>
    %554 = vector.shape_cast %551 : vector<4x32xbf16> to vector<1x4x32xbf16>
    tpu.vector_store %arg2[%c0_216, %c0_217, %c192_218], %554 {strides = array<i32>} : memref<1x4x256xbf16, #tpu.memory_space<vmem>>, vector<1x4x32xbf16>,
    %c0_219 = arith.constant 0 : index
    %c6 = arith.constant 6 : index
    %c0_220 = arith.constant 0 : index
    %c0_221 = arith.constant 0 : index
    %555 = vector.load %arg3[%c0_219, %c6, %c0_220, %c0_221] : memref<1x8x4x4xf32, #tpu.memory_space<vmem>>, vector<1x1x4x4xf32>
    %556 = vector.shape_cast %555 : vector<1x1x4x4xf32> to vector<4x4xf32>
    %557 = vector.shape_cast %544 : vector<4x4xf32> to vector<1x1x4x4xf32>
    tpu.vector_store %arg3[%c0_219, %c6, %c0_220, %c0_221], %557 {strides = array<i32>} : memref<1x8x4x4xf32, #tpu.memory_space<vmem>>, vector<1x1x4x4xf32>,
    %c0_222 = arith.constant 0 : index
    %c0_223 = arith.constant 0 : index
    %c0_224 = arith.constant 0 : index
    %c224 = arith.constant 224 : index
    %558 = vector.load %arg1[%c0_222, %c0_223, %c0_224, %c224] : memref<3x1x4x256xbf16, #tpu.memory_space<vmem>>, vector<1x1x4x32xbf16>
    %559 = vector.shape_cast %558 : vector<1x1x4x32xbf16> to vector<4x32xbf16>
    %c1_225 = arith.constant 1 : index
    %c0_226 = arith.constant 0 : index
    %c0_227 = arith.constant 0 : index
    %c224_228 = arith.constant 224 : index
    %560 = vector.load %arg1[%c1_225, %c0_226, %c0_227, %c224_228] : memref<3x1x4x256xbf16, #tpu.memory_space<vmem>>, vector<1x1x4x32xbf16>
    %561 = vector.shape_cast %560 : vector<1x1x4x32xbf16> to vector<4x32xbf16>
    %c2_229 = arith.constant 2 : index
    %c0_230 = arith.constant 0 : index
    %c0_231 = arith.constant 0 : index
    %c224_232 = arith.constant 224 : index
    %562 = vector.load %arg1[%c2_229, %c0_230, %c0_231, %c224_232] : memref<3x1x4x256xbf16, #tpu.memory_space<vmem>>, vector<1x1x4x32xbf16>
    %563 = vector.shape_cast %562 : vector<1x1x4x32xbf16> to vector<4x32xbf16>
    %564 = arith.extf %559 : vector<4x32xbf16> to vector<4x32xf32>
    %cst_233 = arith.constant dense<0.000000e+00> : vector<4xf32>
    %565 = vector.multi_reduction <add>, %564, %cst_233 [1] : vector<4x32xf32> to vector<4xf32>
    %566 = vector.shape_cast %565 : vector<4xf32> to vector<4x1xf32>
    %cst_234 = arith.constant 3.200000e+01 : f32
    %567 = vector.broadcast %cst_234 : f32 to vector<4x1xf32>
    %568 = arith.divf %566, %567 : vector<4x1xf32>
    %569 = arith.negf %568 : vector<4x1xf32>
    %570 = math.exp %569 : vector<4x1xf32>
    %cst_235 = arith.constant 1.000000e+00 : f32
    %571 = vector.broadcast %cst_235 : f32 to vector<4x1xf32>
    %572 = arith.addf %571, %570 : vector<4x1xf32>
    %573 = arith.divf %571, %572 : vector<4x1xf32>
    %cst_236 = arith.constant 0.176776692 : f32
    %574 = vector.broadcast %cst_236 : f32 to vector<4x32xf32>
    %575 = arith.mulf %564, %574 : vector<4x32xf32>
    %576 = arith.truncf %575 : vector<4x32xf32> to vector<4x32xbf16>
    %cst_237 = arith.constant dense<0.000000e+00> : vector<4x4xf32>
    %577 = tpu.matmul %576, %561, %cst_237 {dimension_numbers = #tpu.dot_dimension_numbers<[1], [1], [0], [0], [0, 0, 1, 0], [], []>} : vector<4x32xbf16>, vector<4x32xbf16>, vector<4x4xf32> -> vector<4x4xf32>
    %cst_238 = arith.constant dense<0xFF800000> : vector<4xf32>
    %578 = vector.multi_reduction <maximumf>, %577, %cst_238 [1] : vector<4x4xf32> to vector<4xf32>
    %579 = vector.shape_cast %578 : vector<4xf32> to vector<4x1xf32>
    %580 = vector.extract_strided_slice %577 {offsets = [0, 0], sizes = [4, 2], strides = [1, 1]} : vector<4x4xf32> to vector<4x2xf32>
    %cst_239 = arith.constant dense<0xFF800000> : vector<4xf32>
    %581 = vector.multi_reduction <maximumf>, %580, %cst_239 [1] : vector<4x2xf32> to vector<4xf32>
    %582 = vector.shape_cast %581 : vector<4xf32> to vector<4x1xf32>
    %583 = vector.shape_cast %582 : vector<4x1xf32> to vector<4x1xf32>
    %584 = vector.broadcast %583 : vector<4x1xf32> to vector<4x4xf32>
    %585 = arith.select %12, %584, %46 : vector<4x4xi1>, vector<4x4xf32>
    %586 = vector.extract_strided_slice %577 {offsets = [0, 1], sizes = [4, 2], strides = [1, 1]} : vector<4x4xf32> to vector<4x2xf32>
    %cst_240 = arith.constant dense<0xFF800000> : vector<4xf32>
    %587 = vector.multi_reduction <maximumf>, %586, %cst_240 [1] : vector<4x2xf32> to vector<4xf32>
    %588 = vector.shape_cast %587 : vector<4xf32> to vector<4x1xf32>
    %589 = vector.shape_cast %588 : vector<4x1xf32> to vector<4x1xf32>
    %590 = vector.broadcast %589 : vector<4x1xf32> to vector<4x4xf32>
    %591 = arith.select %23, %590, %585 : vector<4x4xi1>, vector<4x4xf32>
    %592 = vector.extract_strided_slice %577 {offsets = [0, 2], sizes = [4, 2], strides = [1, 1]} : vector<4x4xf32> to vector<4x2xf32>
    %cst_241 = arith.constant dense<0xFF800000> : vector<4xf32>
    %593 = vector.multi_reduction <maximumf>, %592, %cst_241 [1] : vector<4x2xf32> to vector<4xf32>
    %594 = vector.shape_cast %593 : vector<4xf32> to vector<4x1xf32>
    %595 = vector.shape_cast %594 : vector<4x1xf32> to vector<4x1xf32>
    %596 = vector.broadcast %595 : vector<4x1xf32> to vector<4x4xf32>
    %597 = arith.select %34, %596, %591 : vector<4x4xi1>, vector<4x4xf32>
    %598 = vector.extract_strided_slice %577 {offsets = [0, 3], sizes = [4, 1], strides = [1, 1]} : vector<4x4xf32> to vector<4x1xf32>
    %cst_242 = arith.constant dense<0xFF800000> : vector<4xf32>
    %599 = vector.multi_reduction <maximumf>, %598, %cst_242 [1] : vector<4x1xf32> to vector<4xf32>
    %600 = vector.shape_cast %599 : vector<4xf32> to vector<4x1xf32>
    %601 = vector.shape_cast %600 : vector<4x1xf32> to vector<4x1xf32>
    %602 = vector.broadcast %601 : vector<4x1xf32> to vector<4x4xf32>
    %603 = arith.select %45, %602, %597 : vector<4x4xi1>, vector<4x4xf32>
    %604 = arith.cmpf oge, %577, %603 : vector<4x4xf32>
    %605 = vector.broadcast %579 : vector<4x1xf32> to vector<4x4xf32>
    %606 = arith.cmpf oge, %577, %605 : vector<4x4xf32>
    %607 = arith.andi %604, %606 : vector<4x4xi1>
    %cst_243 = arith.constant -1.000000e+09 : f32
    %608 = vector.broadcast %cst_243 : f32 to vector<4x4xf32>
    %609 = arith.select %607, %577, %608 : vector<4x4xi1>, vector<4x4xf32>
    %610 = vector.broadcast %579 : vector<4x1xf32> to vector<4x4xf32>
    %611 = arith.subf %609, %610 : vector<4x4xf32>
    %612 = math.exp %611 : vector<4x4xf32>
    %cst_244 = arith.constant dense<0.000000e+00> : vector<4xf32>
    %613 = vector.multi_reduction <add>, %612, %cst_244 [1] : vector<4x4xf32> to vector<4xf32>
    %614 = vector.shape_cast %613 : vector<4xf32> to vector<4x1xf32>
    %615 = tpu.reciprocal %614 {approx = true} : vector<4x1xf32> -> vector<4x1xf32>
    %616 = vector.broadcast %615 : vector<4x1xf32> to vector<4x4xf32>
    %617 = arith.mulf %612, %616 : vector<4x4xf32>
    %618 = arith.extf %563 : vector<4x32xbf16> to vector<4x32xf32>
    %619 = vector.broadcast %573 : vector<4x1xf32> to vector<4x32xf32>
    %620 = arith.mulf %618, %619 : vector<4x32xf32>
    %621 = arith.truncf %620 : vector<4x32xf32> to vector<4x32xbf16>
    %622 = arith.truncf %617 : vector<4x4xf32> to vector<4x4xbf16>
    %cst_245 = arith.constant dense<0.000000e+00> : vector<4x32xf32>
    %623 = tpu.matmul %622, %621, %cst_245 {dimension_numbers = #tpu.dot_dimension_numbers<[1], [0], [0], [1], [0, 0, 1, 1], [], []>} : vector<4x4xbf16>, vector<4x32xbf16>, vector<4x32xf32> -> vector<4x32xf32>
    %624 = arith.truncf %623 : vector<4x32xf32> to vector<4x32xbf16>
    %c0_246 = arith.constant 0 : index
    %c0_247 = arith.constant 0 : index
    %c224_248 = arith.constant 224 : index
    %625 = vector.load %arg2[%c0_246, %c0_247, %c224_248] : memref<1x4x256xbf16, #tpu.memory_space<vmem>>, vector<1x4x32xbf16>
    %626 = vector.shape_cast %625 : vector<1x4x32xbf16> to vector<4x32xbf16>
    %627 = vector.shape_cast %624 : vector<4x32xbf16> to vector<1x4x32xbf16>
    tpu.vector_store %arg2[%c0_246, %c0_247, %c224_248], %627 {strides = array<i32>} : memref<1x4x256xbf16, #tpu.memory_space<vmem>>, vector<1x4x32xbf16>,
    %c0_249 = arith.constant 0 : index
    %c7 = arith.constant 7 : index
    %c0_250 = arith.constant 0 : index
    %c0_251 = arith.constant 0 : index
    %628 = vector.load %arg3[%c0_249, %c7, %c0_250, %c0_251] : memref<1x8x4x4xf32, #tpu.memory_space<vmem>>, vector<1x1x4x4xf32>
    %629 = vector.shape_cast %628 : vector<1x1x4x4xf32> to vector<4x4xf32>
    %630 = vector.shape_cast %617 : vector<4x4xf32> to vector<1x1x4x4xf32>
    tpu.vector_store %arg3[%c0_249, %c7, %c0_250, %c0_251], %630 {strides = array<i32>} : memref<1x8x4x4xf32, #tpu.memory_space<vmem>>, vector<1x1x4x4xf32>,
    return
  }
  func.func @transform_0(%arg0: i32) -> (i32, i32, i32, i32) {
    %c0_i32 = arith.constant 0 : i32
    %c0_i32_0 = arith.constant 0 : i32
    %c0_i32_1 = arith.constant 0 : i32
    %c0_i32_2 = arith.constant 0 : i32
    return %c0_i32, %arg0, %c0_i32_0, %c0_i32_1 : i32, i32, i32, i32
  }
  func.func @transform_1(%arg0: i32) -> (i32, i32, i32) {
    %c0_i32 = arith.constant 0 : i32
    %c0_i32_0 = arith.constant 0 : i32
    %c0_i32_1 = arith.constant 0 : i32
    return %arg0, %c0_i32, %c0_i32_0 : i32, i32, i32
  }
  func.func @transform_2(%arg0: i32) -> (i32, i32, i32, i32) {
    %c0_i32 = arith.constant 0 : i32
    %c0_i32_0 = arith.constant 0 : i32
    %c0_i32_1 = arith.constant 0 : i32
    %c0_i32_2 = arith.constant 0 : i32
    return %arg0, %c0_i32, %c0_i32_0, %c0_i32_1 : i32, i32, i32, i32
  }
}

</mosaic_0001>

<bundles_post_ra>
// kernel: multi_head_attention.3
= control target key start
LH: loop header
LB: loop body
LE: loop exit
PB: predicated region body
PF: predicated region fallthrough
CT: control target
= control target key end

     0   :  { %s772_s12 = smov 0   ;;  %s774_s13 = smov 0   ;;  %s856_s0 = inlined_call_operand.vmem [shape: bf16[8,256], index: 0, kind: input, shape index: {}]   ;;  %s857_s1 = inlined_call_operand.vmem [shape: bf16[3,256,256], index: 1, kind: input, shape index: {}]   ;;  %s858_s2 = inlined_call_operand.vmem [shape: f32[3,1,256], index: 2, kind: input, shape index: {}]   ;;  %s859_s3 = inlined_call_operand.vmem [shape: bf16[3,8,256], index: 3, kind: output, shape index: {}]  }
   0x1   :  { %s776_s14 = smov 0  }
   0x2 LB: > { %s22_s15 = sadd.s32 1, %s746_s13  ;;  %p608_p0 = scmp.ge.s32.totalorder %s750_s14, 1  ;;  %s750_s14 = sphi %s776_s14, %s13_s14   ;;  %s746_s13 = sphi %s774_s13, %s861_s13   ;;  %s742_s12 = sphi %s772_s12, %s860_s12  }
   0x3   : > { %p23_p1 = scmp.ge.s32.totalorder %s22_s15, 3  ;;  %p170_p2 = scmp.lt.s32.totalorder %s750_s14, 4 }
   0x5   : > { %s863_s15 = smov (%p23_p1, %s22_s15), 0  ;;  %p171_p3 = pnand %p608_p0, %p170_p2 }
   0x6   : > { %p212_p4 = scmp.lt.s32.totalorder (!%p171_p3), %s742_s12, 2  ;;  %v793_v0 = vld [vmem:[%s856_s0] sm:$0xff] (!%p171_p3)  ;;  %v265_v35 = vlaneseq (!%p171_p3) }
   0x7   : > { %174 = sbr.rel (%p171_p3) target bundleno = 300 (0x12c), region = 32  ;;  %v615_v1 = vcombine.high (!%p171_p3), %v793_v0, %v793_v0  ;;  %v614_v34 = vcombine.low (!%p171_p3), %v793_v0, %v793_v0 }
   0x8   : > { %v266_v36 = vshrl.u32 (!%p171_p3), %v265_v35, 7 }
   0x9   : > { %474 = vmatprep.mubr.bf16.mxu0 (!%p171_p3), %v615_v1 }
   0xa   : > { %v267_v37 = vsub.s32 (!%p171_p3), 0, %v266_v36  ;;  %v271_v39 = vsub.s32 (!%p171_p3), 1, %v266_v36 }
   0xe   : > { %s865_s12 = smov (!%p212_p4, %s742_s12), 2 }
   0xf   : > { %s651_s18 = sshll.u32 %s865_s12, 8  ;;  %s611_s22 = sshll.u32 %s865_s12, 1 }
  0x10   : > { %s803_s21 = scalar_lea.vmem %s857_s1, %s651_s18  ;;  %s220_s25 = scalar_lea.vmem %s858_s2, %s611_s22 }
  0x11   : > { %v678_v2 = vld [vmem:[%s803_s21 + $0x4] ss:$8 sps:$4 sm:$0xff]   ;;  %v680_v3 = vld [vmem:[%s803_s21] ss:$8 sps:$4 sm:$0xff]   ;;  %v681_v4 = vld [vmem:[%s803_s21 + $0x14] ss:$8 sps:$4 sm:$0xff]  }
  0x12   : > { %442 = vmatprep.subr.bf16.mxu0 %v678_v2  ;;  %v683_v5 = vld [vmem:[%s803_s21 + $0x10] ss:$8 sps:$4 sm:$0xff]   ;;  %v684_v6 = vld [vmem:[%s803_s21 + $0x24] ss:$8 sps:$4 sm:$0xff]   ;;  %v686_v7 = vld [vmem:[%s803_s21 + $0x20] ss:$8 sps:$4 sm:$0xff]  }
  0x13   : > { %443 = vmatpush1.bf16.msra.mxu0 %v680_v3  ;;  %v687_v8 = vld [vmem:[%s803_s21 + $0x34] ss:$8 sps:$4 sm:$0xff]   ;;  %v689_v9 = vld [vmem:[%s803_s21 + $0x30] ss:$8 sps:$4 sm:$0xff]   ;;  %v690_v10 = vld [vmem:[%s803_s21 + $0x44] ss:$8 sps:$4 sm:$0xff]  }
  0x14   : > { %444 = vmatprep.subr.bf16.mxu0 %v681_v4  ;;  %v692_v11 = vld [vmem:[%s803_s21 + $0x40] ss:$8 sps:$4 sm:$0xff]   ;;  %v693_v12 = vld [vmem:[%s803_s21 + $0x54] ss:$8 sps:$4 sm:$0xff]   ;;  %v695_v13 = vld [vmem:[%s803_s21 + $0x50] ss:$8 sps:$4 sm:$0xff]  }
  0x15   : > { %v696_v14 = vld [vmem:[%s803_s21 + $0x64] ss:$8 sps:$4 sm:$0xff]   ;;  %v698_v15 = vld [vmem:[%s803_s21 + $0x60] ss:$8 sps:$4 sm:$0xff]   ;;  %v699_v16 = vld [vmem:[%s803_s21 + $0x74] ss:$8 sps:$4 sm:$0xff]  }
  0x16   : > { %v701_v17 = vld [vmem:[%s803_s21 + $0x70] ss:$8 sps:$4 sm:$0xff]   ;;  %v702_v18 = vld [vmem:[%s803_s21 + $0x84] ss:$8 sps:$4 sm:$0xff]   ;;  %v704_v19 = vld [vmem:[%s803_s21 + $0x80] ss:$8 sps:$4 sm:$0xff]  }
  0x17   : > { %445 = vmatpush1.bf16.msra.mxu0 %v683_v5  ;;  %v705_v20 = vld [vmem:[%s803_s21 + $0x94] ss:$8 sps:$4 sm:$0xff]   ;;  %v707_v21 = vld [vmem:[%s803_s21 + $0x90] ss:$8 sps:$4 sm:$0xff]   ;;  %v708_v22 = vld [vmem:[%s803_s21 + $0xa4] ss:$8 sps:$4 sm:$0xff]  }
  0x18   : > { %446 = vmatprep.subr.bf16.mxu0 %v684_v6  ;;  %v710_v23 = vld [vmem:[%s803_s21 + $0xa0] ss:$8 sps:$4 sm:$0xff]   ;;  %v711_v24 = vld [vmem:[%s803_s21 + $0xb4] ss:$8 sps:$4 sm:$0xff]   ;;  %v713_v25 = vld [vmem:[%s803_s21 + $0xb0] ss:$8 sps:$4 sm:$0xff]  }
  0x19   : > { %v714_v26 = vld [vmem:[%s803_s21 + $0xc4] ss:$8 sps:$4 sm:$0xff]   ;;  %v716_v27 = vld [vmem:[%s803_s21 + $0xc0] ss:$8 sps:$4 sm:$0xff]   ;;  %v717_v28 = vld [vmem:[%s803_s21 + $0xd4] ss:$8 sps:$4 sm:$0xff]  }
  0x1a   : > { %v719_v29 = vld [vmem:[%s803_s21 + $0xd0] ss:$8 sps:$4 sm:$0xff]   ;;  %v720_v30 = vld [vmem:[%s803_s21 + $0xe4] ss:$8 sps:$4 sm:$0xff]   ;;  %v722_v31 = vld [vmem:[%s803_s21 + $0xe0] ss:$8 sps:$4 sm:$0xff]  }
  0x1b   : > { %447 = vmatpush1.bf16.msra.mxu0 %v686_v7  ;;  %v723_v32 = vld [vmem:[%s803_s21 + $0xf4] ss:$8 sps:$4 sm:$0xff]   ;;  %v725_v33 = vld [vmem:[%s803_s21 + $0xf0] ss:$8 sps:$4 sm:$0xff]   ;;  %v263_v38 = vld [vmem:[%s220_s25] sm:$0x3] }
  0x1c   : > { %448 = vmatprep.subr.bf16.mxu0 %v687_v8  ;;  %v268_v40 = vrot.slane %v263_v38, %v267_v37  ;;  %v272_v41 = vrot.slane %v263_v38, %v271_v39  ;;  %s652_s26 = sshll.u32 %s865_s12, 3 }
  0x1d   : > { %s229_s29 = scalar_lea.vmem %s859_s3, %s652_s26 }
  0x1f   : > { %449 = vmatpush1.bf16.msra.mxu0 %v689_v9 }
  0x20   : > { %450 = vmatprep.subr.bf16.mxu0 %v690_v10 }
  0x23   : > { %451 = vmatpush1.bf16.msra.mxu0 %v692_v11 }
  0x24   : > { %452 = vmatprep.subr.bf16.mxu0 %v693_v12 }
  0x27   : > { %453 = vmatpush1.bf16.msra.mxu0 %v695_v13 }
  0x28   : > { %454 = vmatprep.subr.bf16.mxu0 %v696_v14 }
  0x2b   : > { %455 = vmatpush1.bf16.msra.mxu0 %v698_v15 }
  0x2c   : > { %456 = vmatprep.subr.bf16.mxu0 %v699_v16 }
  0x2f   : > { %457 = vmatpush1.bf16.msra.mxu0 %v701_v17 }
  0x30   : > { %458 = vmatprep.subr.bf16.mxu0 %v702_v18 }
  0x33   : > { %459 = vmatpush1.bf16.msra.mxu0 %v704_v19 }
  0x34   : > { %460 = vmatprep.subr.bf16.mxu0 %v705_v20 }
  0x37   : > { %461 = vmatpush1.bf16.msra.mxu0 %v707_v21 }
  0x38   : > { %462 = vmatprep.subr.bf16.mxu0 %v708_v22 }
  0x3b   : > { %463 = vmatpush1.bf16.msra.mxu0 %v710_v23 }
  0x3c   : > { %464 = vmatprep.subr.bf16.mxu0 %v711_v24 }
  0x3f   : > { %465 = vmatpush1.bf16.msra.mxu0 %v713_v25 }
  0x40   : > { %466 = vmatprep.subr.bf16.mxu0 %v714_v26 }
  0x43   : > { %467 = vmatpush1.bf16.msra.mxu0 %v716_v27 }
  0x44   : > { %468 = vmatprep.subr.bf16.mxu0 %v717_v28 }
  0x47   : > { %469 = vmatpush1.bf16.msra.mxu0 %v719_v29 }
  0x48   : > { %470 = vmatprep.subr.bf16.mxu0 %v720_v30 }
  0x4b   : > { %471 = vmatpush1.bf16.msra.mxu0 %v722_v31 }
  0x4c   : > { %472 = vmatprep.subr.bf16.mxu0 %v723_v32 }
  0x4f   : > { %473 = vmatpush1.bf16.msra.mxu0 %v725_v33 }
  0x52   : > { %475 = vmatmul.mubr.bf16.vlgmr.msra.gmra.mrb[0].mxu0 %v614_v34 }
 0x125   : > { %v476_v42 = vpop.f32.mrb[0].mxu0 }
 0x126   : > { %v477_v43 = vadd.f32 %v476_v42, %v268_v40  ;;  %v478_v44 = vpop.f32.mrb[1].mxu0 }
 0x127   : > { %v479_v45 = vadd.f32 %v478_v44, %v272_v41  ;;  %v480_v46 = vpop.f32.mrb[2].mxu0 }
 0x128   : > { %v481_v47 = vpop.f32.mrb[3].mxu0 }
 0x129   : > { %v653_v48 = vpack.c.bf16 %v479_v45, %v477_v43 }
 0x12b   : > { %491 = vst [vmem:[%s229_s29] sm:$0xff] %v653_v48 }
 0x12c PF: > { %s13_s14 = sadd.s32 1, %s750_s14   ;;  %s860_s12 = smov %s746_s13 }
 0x12d   : > { %p10_p5 = scmp.ge.s32.totalorder %s13_s14, 5   ;;  %s861_s13 = smov %s863_s15 }
 0x12f   :  { %12 = sbr.rel (!%p10_p5) target bundleno = 2 (0x2), region = 68 }

// kernel: multi_head_attention.5
= control target key start
LH: loop header
LB: loop body
LE: loop exit
PB: predicated region body
PF: predicated region fallthrough
CT: control target
= control target key end

     0   :  { %v49_v35 = vlaneseq  ;;  %s485_s1 = inlined_call_operand.vmem [shape: bf16[256,256], index: 1, kind: input, shape index: {}]   ;;  %s486_s0 = inlined_call_operand.vmem [shape: bf16[8,256], index: 0, kind: input, shape index: {}]   ;;  %s487_s2 = inlined_call_operand.vmem [shape: f32[1,256], index: 2, kind: input, shape index: {}]   ;;  %s488_s3 = inlined_call_operand.vmem [shape: f32[8,256], index: 3, kind: output, shape index: {}]  }
   0x1   :  { %v307_v0 = vld [vmem:[%s485_s1 + $0x4] ss:$8 sps:$4 sm:$0xff]   ;;  %v309_v1 = vld [vmem:[%s485_s1] ss:$8 sps:$4 sm:$0xff]   ;;  %v310_v2 = vld [vmem:[%s485_s1 + $0x14] ss:$8 sps:$4 sm:$0xff]  }
   0x2   :  { %226 = vmatprep.subr.bf16.mxu0 %v307_v0  ;;  %v312_v3 = vld [vmem:[%s485_s1 + $0x10] ss:$8 sps:$4 sm:$0xff]   ;;  %v313_v4 = vld [vmem:[%s485_s1 + $0x24] ss:$8 sps:$4 sm:$0xff]   ;;  %v315_v5 = vld [vmem:[%s485_s1 + $0x20] ss:$8 sps:$4 sm:$0xff]  }
   0x3   :  { %227 = vmatpush1.bf16.msra.mxu0 %v309_v1  ;;  %v316_v6 = vld [vmem:[%s485_s1 + $0x34] ss:$8 sps:$4 sm:$0xff]   ;;  %v318_v7 = vld [vmem:[%s485_s1 + $0x30] ss:$8 sps:$4 sm:$0xff]   ;;  %v319_v8 = vld [vmem:[%s485_s1 + $0x44] ss:$8 sps:$4 sm:$0xff]  }
   0x4   :  { %228 = vmatprep.subr.bf16.mxu0 %v310_v2  ;;  %v321_v9 = vld [vmem:[%s485_s1 + $0x40] ss:$8 sps:$4 sm:$0xff]   ;;  %v322_v10 = vld [vmem:[%s485_s1 + $0x54] ss:$8 sps:$4 sm:$0xff]   ;;  %v324_v11 = vld [vmem:[%s485_s1 + $0x50] ss:$8 sps:$4 sm:$0xff]  }
   0x5   :  { %v325_v12 = vld [vmem:[%s485_s1 + $0x64] ss:$8 sps:$4 sm:$0xff]   ;;  %v327_v15 = vld [vmem:[%s485_s1 + $0x60] ss:$8 sps:$4 sm:$0xff]   ;;  %v328_v16 = vld [vmem:[%s485_s1 + $0x74] ss:$8 sps:$4 sm:$0xff]  }
   0x6   :  { %v14_v13 = vld [vmem:[%s486_s0] sm:$0xff]  ;;  %v330_v17 = vld [vmem:[%s485_s1 + $0x70] ss:$8 sps:$4 sm:$0xff]   ;;  %v334_v20 = vld [vmem:[%s485_s1 + $0x94] ss:$8 sps:$4 sm:$0xff]   ;;  %v50_v36 = vshrl.u32 %v49_v35, 7 }
   0x7   :  { %229 = vmatpush1.bf16.msra.mxu0 %v312_v3  ;;  %v274_v14 = vcombine.high %v14_v13, %v14_v13  ;;  %v331_v18 = vld [vmem:[%s485_s1 + $0x84] ss:$8 sps:$4 sm:$0xff]   ;;  %v333_v19 = vld [vmem:[%s485_s1 + $0x80] ss:$8 sps:$4 sm:$0xff]   ;;  %v336_v21 = vld [vmem:[%s485_s1 + $0x90] ss:$8 sps:$4 sm:$0xff]   ;;  %v273_v34 = vcombine.low %v14_v13, %v14_v13 }
   0x8   :  { %230 = vmatprep.subr.bf16.mxu0 %v313_v4  ;;  %v337_v22 = vld [vmem:[%s485_s1 + $0xa4] ss:$8 sps:$4 sm:$0xff]   ;;  %v339_v23 = vld [vmem:[%s485_s1 + $0xa0] ss:$8 sps:$4 sm:$0xff]   ;;  %v340_v24 = vld [vmem:[%s485_s1 + $0xb4] ss:$8 sps:$4 sm:$0xff]  }
   0x9   :  { %258 = vmatprep.mubr.bf16.mxu0 %v274_v14  ;;  %v342_v25 = vld [vmem:[%s485_s1 + $0xb0] ss:$8 sps:$4 sm:$0xff]   ;;  %v343_v26 = vld [vmem:[%s485_s1 + $0xc4] ss:$8 sps:$4 sm:$0xff]   ;;  %v345_v27 = vld [vmem:[%s485_s1 + $0xc0] ss:$8 sps:$4 sm:$0xff]  }
   0xa   :  { %v346_v28 = vld [vmem:[%s485_s1 + $0xd4] ss:$8 sps:$4 sm:$0xff]   ;;  %v348_v29 = vld [vmem:[%s485_s1 + $0xd0] ss:$8 sps:$4 sm:$0xff]   ;;  %v349_v30 = vld [vmem:[%s485_s1 + $0xe4] ss:$8 sps:$4 sm:$0xff]  }
   0xb   :  { %231 = vmatpush1.bf16.msra.mxu0 %v315_v5  ;;  %v351_v31 = vld [vmem:[%s485_s1 + $0xe0] ss:$8 sps:$4 sm:$0xff]   ;;  %v352_v32 = vld [vmem:[%s485_s1 + $0xf4] ss:$8 sps:$4 sm:$0xff]   ;;  %v354_v33 = vld [vmem:[%s485_s1 + $0xf0] ss:$8 sps:$4 sm:$0xff]  }
   0xc   :  { %232 = vmatprep.subr.bf16.mxu0 %v316_v6  ;;  %v51_v37 = vsub.s32 0, %v50_v36  ;;  %v47_v38 = vld [vmem:[%s487_s2] sm:$0x3]  ;;  %v55_v39 = vsub.s32 1, %v50_v36 }
   0xe   :  { %v52_v40 = vrot.slane %v47_v38, %v51_v37  ;;  %v56_v41 = vrot.slane %v47_v38, %v55_v39 }
   0xf   :  { %233 = vmatpush1.bf16.msra.mxu0 %v318_v7 }
  0x10   :  { %234 = vmatprep.subr.bf16.mxu0 %v319_v8 }
  0x13   :  { %235 = vmatpush1.bf16.msra.mxu0 %v321_v9 }
  0x14   :  { %236 = vmatprep.subr.bf16.mxu0 %v322_v10 }
  0x17   :  { %237 = vmatpush1.bf16.msra.mxu0 %v324_v11 }
  0x18   :  { %238 = vmatprep.subr.bf16.mxu0 %v325_v12 }
  0x1b   :  { %239 = vmatpush1.bf16.msra.mxu0 %v327_v15 }
  0x1c   :  { %240 = vmatprep.subr.bf16.mxu0 %v328_v16 }
  0x1f   :  { %241 = vmatpush1.bf16.msra.mxu0 %v330_v17 }
  0x20   :  { %242 = vmatprep.subr.bf16.mxu0 %v331_v18 }
  0x23   :  { %243 = vmatpush1.bf16.msra.mxu0 %v333_v19 }
  0x24   :  { %244 = vmatprep.subr.bf16.mxu0 %v334_v20 }
  0x27   :  { %245 = vmatpush1.bf16.msra.mxu0 %v336_v21 }
  0x28   :  { %246 = vmatprep.subr.bf16.mxu0 %v337_v22 }
  0x2b   :  { %247 = vmatpush1.bf16.msra.mxu0 %v339_v23 }
  0x2c   :  { %248 = vmatprep.subr.bf16.mxu0 %v340_v24 }
  0x2f   :  { %249 = vmatpush1.bf16.msra.mxu0 %v342_v25 }
  0x30   :  { %250 = vmatprep.subr.bf16.mxu0 %v343_v26 }
  0x33   :  { %251 = vmatpush1.bf16.msra.mxu0 %v345_v27 }
  0x34   :  { %252 = vmatprep.subr.bf16.mxu0 %v346_v28 }
  0x37   :  { %253 = vmatpush1.bf16.msra.mxu0 %v348_v29 }
  0x38   :  { %254 = vmatprep.subr.bf16.mxu0 %v349_v30 }
  0x3b   :  { %255 = vmatpush1.bf16.msra.mxu0 %v351_v31 }
  0x3c   :  { %256 = vmatprep.subr.bf16.mxu0 %v352_v32 }
  0x3f   :  { %257 = vmatpush1.bf16.msra.mxu0 %v354_v33 }
  0x42   :  { %259 = vmatmul.mubr.bf16.vlgmr.msra.gmra.mrb[0].mxu0 %v273_v34 }
 0x115   :  { %v260_v42 = vpop.f32.mrb[0].mxu0 }
 0x116   :  { %v261_v43 = vadd.f32 %v260_v42, %v52_v40  ;;  %v262_v44 = vpop.f32.mrb[1].mxu0 }
 0x117   :  { %v263_v45 = vadd.f32 %v262_v44, %v56_v41  ;;  %v264_v46 = vpop.f32.mrb[2].mxu0 }
 0x118   :  { %267 = vst [vmem:[%s488_s3] sm:$0xff] %v261_v43  ;;  %v265_v47 = vpop.f32.mrb[3].mxu0 }
 0x119   :  { %268 = vst [vmem:[%s488_s3 + $0x8] sm:$0xff] %v263_v45 }

// kernel: multi_head_attention.4
= control target key start
LH: loop header
LB: loop body
LE: loop exit
PB: predicated region body
PF: predicated region fallthrough
CT: control target
= control target key end

     0   :  { %s2081_s9 = smov 0   ;;  %s2083_s10 = smov 0   ;;  %s2701_s0 = inlined_call_operand.vmem [shape: bf16[3,2,4,256], index: 0, kind: input, shape index: {}]   ;;  %s2702_s1 = inlined_call_operand.vmem [shape: bf16[2,4,256], index: 1, kind: output, shape index: {0}]   ;;  %s2703_s2 = inlined_call_operand.vmem [shape: f32[2,8,4,4], index: 2, kind: output, shape index: {1}]  }
   0x1   :  { %s2085_s11 = smov 0  }
   0x2 LB: > { %s1724_s12 = sadd.s32 4294967295, %s2057_s11   ;;  %s2098_s13 = sadd.s32 1, %s2057_s11   ;;  %s2057_s11 = sphi %s2085_s11, %s2795_s11   ;;  %s2053_s10 = sphi %s2083_s10, %s2794_s10   ;;  %s2049_s9 = sphi %s2081_s9, %s2793_s9  }
   0x3   : > { %s17_s14 = ssub.s32 %s2057_s11, %s2098_s13  ;;  %s20_s15 = sadd.s32 1, %s2053_s10 }
   0x4   : > { %p18_p0 = scmp.eq.s32.totalorder %s17_s14, 0  ;;  %p27_p1 = scmp.ne.s32.totalorder %s2053_s10, %s2049_s9 }
   0x5   : > { %p28_p2 = scmp.eq.s32.totalorder %s2057_s11, 0  ;;  %p1727_p4 = scmp.ge.s32.totalorder %s2057_s11, 2 }
   0x6   : > { %s2107_s16 = scalar_select %p18_p0, %s2053_s10, %s20_s15  }
   0x7   : > { %p29_p3 = por %p28_p2, %p27_p1  ;;  %105 = sbr.rel (%p1727_p4) target bundleno = 21 (0x15), region = 16 }
   0xe   : > { %108 = sbr.rel (!%p29_p3) target bundleno = 21 (0x15), region = 20  ;;  %s110_s17 = sand.u32 (%p29_p3), 1, %s2053_s10  }
   0xf   : > { %s1790_s18 = sshll.u32 (%p29_p3), %s2057_s11, 2  ;;  %s1921_s19 = smul.u32 (%p29_p3), 12, %s110_s17 }
  0x10   : > { %s115_s22 = scalar_lea.vmem (%p29_p3), %s2701_s0, %s1790_s18 }
  0x11   : > { %v131_v0 = vld [vmem:[%s115_s22] sm:$0xf] (%p29_p3)  ;;  %v133_v1 = vld [vmem:[%s115_s22 + $0x8] sm:$0xf] (%p29_p3)  ;;  %v135_v2 = vld [vmem:[%s115_s22 + $0x10] sm:$0xf] (%p29_p3) }
  0x12   : > { %s112_s23 = scalar_lea.vmem (%p29_p3), [#allocation2], %s1921_s19 }
  0x13   : > { %132 = vst [vmem:[%s112_s23] sm:$0xf] (%p29_p3), %v131_v0  ;;  %134 = vst [vmem:[%s112_s23 + $0x4] sm:$0xf] (%p29_p3), %v133_v1 }
  0x14   : > { %136 = vst [vmem:[%s112_s23 + $0x8] sm:$0xf] (%p29_p3), %v135_v2 }
  0x15 PF: > { %p1730_p5 = scmp.ge.s32.totalorder %s2057_s11, 1  ;;  %p164_p6 = scmp.lt.s32.totalorder %s2057_s11, 3 }
  0x17   : > { %p165_p7 = pnand %p1730_p5, %p164_p6 }
  0x18   : > { %s171_s24 = sand.u32 (!%p165_p7), 1, %s2049_s9   ;;  %v2059_v3 = vmov (!%p165_p7), 0.0   ;;  %vm2708_vm0 = vmmov (!%p165_p7), 0   ;;  %vm2710_vm1 = vcmask (!%p165_p7), 261120   ;;  %vm2712_vm2 = vcmask (!%p165_p7), 257024   ;;  %s2061_s27 = smov (!%p165_p7), 96  }
  0x19   : > { %168 = sbr.rel (%p165_p7) target bundleno = 1726 (0x6be), region = 61  ;;  %1825 = vmatprep.subr.bf16.mxu0 (!%p165_p7), %v2059_v3  ;;  %1827 = vmatprep.mubr.msk.bf16.mxu0 (!%p165_p7), %vm2708_vm0, %v2059_v3  ;;  %s2062_s28 = smov (!%p165_p7), 64   ;;  %v2064_v24 = vmov (!%p165_p7), 3   ;;  %vm2707_vm3 = vcmask (!%p165_p7), 1041408   ;;  %vm2706_vm4 = vcmask (!%p165_p7), 11264   ;;  %vm2705_vm5 = vcmask (!%p165_p7), 27664  }
  0x1a   : > { %s1922_s25 = smul.u32 (!%p165_p7), 12, %s171_s24  ;;  %1831 = vmatprep.subr.bf16.mxu1 (!%p165_p7), %v2059_v3  ;;  %1833 = vmatprep.mubr.msk.bf16.mxu1 (!%p165_p7), %vm2708_vm0, %v2059_v3  ;;  %s2063_s29 = smov (!%p165_p7), 32   ;;  %vm2704_vm6 = vcmask (!%p165_p7), 19464   ;;  %vm2711_vm7 = vcmask (!%p165_p7), 27648   ;;  %v208_v62 = vlaneseq (!%p165_p7) }
  0x1b   : > { %1954 = vset.pattern.permute.xlu0 (!%p165_p7), %v2064_v24  ;;  %1970 = vset.pattern.permute.xlu1 (!%p165_p7), %v2064_v24  ;;  %p197_p8 = scmp.lt.s32.totalorder (!%p165_p7), %s1724_s12, 1 }
  0x1c   : > { %s2124_s26 = scalar_lea.vmem (!%p165_p7), [#allocation2], %s1922_s25  ;;  %v2204_v63 = vshrl.u32 (!%p165_p7), %v208_v62, 7  ;;  %v211_v0 = vand.u32 (!%p165_p7), 127, %v208_v62 }
  0x1d   : > { %v1735_v4 = vld [vmem:[%s2124_s26 + $0x4] sm:$0x3] (!%p165_p7)  ;;  %v238_v5 = vld [vmem:[%s2124_s26] sm:$0x3] (!%p165_p7)  ;;  %v1736_v30 = vld [vmem:[%s2124_s26 + $0x8] sm:$0x3] (!%p165_p7) }
  0x1e   : > { %v263_v6 = vsel (!%p165_p7), %vm2710_vm1, %v1735_v4, 0  ;;  %v243_v7 = vunpack.c.l.bf16 (!%p165_p7), %v238_v5  ;;  %v2133_v11 = vld [vmem:[%s2124_s26] sm:$0x3] (!%p165_p7)  ;;  %v342_v31 = vunpack.c.l.bf16 (!%p165_p7), %v1736_v30  ;;  %v1090_v44 = vld [vmem:[%s2124_s26 + $0x2] sm:$0x3] (!%p165_p7)  ;;  %vm219_vm8 = vcmp.ge.s32.totalorder (!%p165_p7), %v2204_v63, 1 }
  0x1f   : > { %1826 = vmatpush3.bf16.xpose.msra.mxu0 (!%p165_p7), %v263_v6  ;;  %v401_v12 = vunpack.c.l.bf16 (!%p165_p7), %v2133_v11  ;;  %v1743_v14 = vld.sshfl [vmem:[%s2124_s26 + $0x4] sm:$0x3 pattern:$0x76325410] (!%p165_p7)  ;;  %v2142_v15 = vld [vmem:[%s2124_s26] sm:$0x3] (!%p165_p7)  ;;  %v1093_v46 = vunpack.c.l.bf16 (!%p165_p7), %v1090_v44 }
  0x20   : > { %v256_v8 = vmul.f32 0.17677669, %v243_v7  ;;  %v245_v9 = vsel %vm2712_vm2, %v243_v7, 0.0  ;;  %1843 = vmatprep.subr.bf16.mxu0 %v2059_v3  ;;  %v582_v17 = vunpack.c.l.bf16 %v2142_v15  ;;  %v2150_v19 = vld [vmem:[%s2124_s26] sm:$0x3]  ;;  %vm220_vm9 = vcmp.lt.s32.totalorder %v2204_v63, 3 }
  0x21   : > { %246 = vadd.xlane.f32.xlu1 %v245_v9  ;;  %v416_v13 = vmul.f32 0.17677669, %v401_v12  ;;  %v763_v21 = vunpack.c.l.bf16 %v2150_v19  ;;  %v2174_v45 = vld [vmem:[%s2124_s26 + $0x2] sm:$0x3]  ;;  %v1108_v47 = vmul.f32 0.17677669, %v1093_v46  ;;  %v1955_v57 = vpack.i.bf16 %v1093_v46, %v401_v12  ;;  %vm221_vm12 = vmand %vm219_vm8, %vm220_vm9 }
  0x22   : > { %v257_v10 = vpack.c.bf16 %v256_v8, %v256_v8  ;;  %v597_v18 = vmul.f32 0.17677669, %v582_v17  ;;  %v1273_v48 = vunpack.c.l.bf16 %v2174_v45  ;;  %v2178_v49 = vld [vmem:[%s2124_s26 + $0x2] sm:$0x3]  ;;  %vm213_vm10 = vcmp.lt.s32.totalorder %v2204_v63, 2  ;;  %s2797_s12 = smov (!%p197_p8, %s1724_s12), 1 }
  0x23   : > { %v417_v16 = vpack.c.bf16 %v416_v13, %v416_v13  ;;  %v778_v22 = vmul.f32 0.17677669, %v763_v21  ;;  %v1109_v50 = vpack.c.bf16 %v1108_v47, %v1108_v47  ;;  %v1453_v52 = vunpack.c.l.bf16 %v2178_v49  ;;  %v1770_v56 = vld.sshfl [vmem:[%s2124_s26 + $0x6] sm:$0x3 pattern:$0x76325410] }
  0x24   : > { %v598_v20 = vpack.c.bf16 %v597_v18, %v597_v18  ;;  %v1288_v51 = vmul.f32 0.17677669, %v1273_v48  ;;  %vm217_vm11 = vcmp.lt.s32.totalorder %v211_v0, 2  ;;  %vm222_vm13 = vcmp.ge.s32.totalorder %v211_v0, 1  ;;  %s1792_s30 = sshll.u32 %s2797_s12, 5  ;;  %s1791_s6 = sshll.u32 %s2797_s12, 2 }
  0x25   : > { %v779_v23 = vpack.c.bf16 %v778_v22, %v778_v22  ;;  %v1468_v54 = vmul.f32 0.17677669, %v1453_v52  ;;  %vm226_vm14 = vcmp.ge.s32.totalorder %v2204_v63, 2  ;;  %vm227_vm15 = vcmp.lt.s32.totalorder %v2204_v63, 4  ;;  %s2279_s5 = scalar_lea.vmem %s2703_s2, %s1792_s30  ;;  %v1741_v47 = vld [vmem:[%s2124_s26 + $0x8] sm:$0x3]  ;;  %s2358_s9 = scalar_lea.vmem %s2702_s1, %s1791_s6 }
  0x26   : > { %1828 = vmatmul.mubr.msk.bf16.vlgmr.msra.gmra.mrb[0].mxu0 %vm2710_vm1, %v257_v10  ;;  %v1289_v53 = vpack.c.bf16 %v1288_v51, %v1288_v51  ;;  %vm229_vm1 = vcmp.ge.s32.totalorder %v211_v0, 2  ;;  %vm235_vm8 = vcmp.ge.s32.totalorder %v211_v0, 3  ;;  %v1761_v19 = vld [vmem:[%s2124_s26 + $0x6] sm:$0x3] }
  0x27   : > { %1845 = vmatprep.mubr.msk.bf16.mxu0 %vm2708_vm0, %v2059_v3  ;;  %v1469_v55 = vpack.c.bf16 %v1468_v54, %v1468_v54  ;;  %vm228_vm0 = vmand %vm226_vm14, %vm227_vm15 }
  0x28   : > { %vm230_vm2 = vmand %vm228_vm0, %vm229_vm1 }
  0x32   : > { %429 = vrot.lane.b32.xlu1 %v1743_v14, %s2061_s27 }
  0x36   : > { %419 = vrot.lane.b32.xlu1 %v417_v16, %s2061_s27 }
  0x3a   : > { %610 = vrot.lane.b32.xlu1 %v1743_v14, %s2062_s28 }
  0x3e   : > { %600 = vrot.lane.b32.xlu1 %v598_v20, %s2062_s28 }
  0x42   : > { %791 = vrot.lane.b32.xlu1 %v1743_v14, %s2063_s29 }
  0x46   : > { %781 = vrot.lane.b32.xlu1 %v779_v23, %s2063_s29 }
  0xae   : > { %v247_v25 = vpop.xlane.xlu1 %246 }
  0xaf   : > { %v1737_v26 = vmul.f32 -0.03125, %v247_v25 }
  0xb1   : > { %v251_v27 = vmul.f32 1.442695, %v1737_v26 }
  0xb2   : > { %v2196_v58 = vpop.permute.xlu1 %429 }
  0xb3   : > { %1971 = vpow2.f32 %v251_v27 }
  0xb6   : > { %v2198_v59 = vpop.permute.xlu1 %419 }
  0xba   : > { %v2200_v60 = vpop.permute.xlu1 %610 }
  0xbd   : > { %v1972_v28 = vpop.eup %1971 }
  0xbe   : > { %v253_v29 = vadd.f32 1.0, %v1972_v28  ;;  %v2202_v61 = vpop.permute.xlu1 %600 }
  0xc0   : > { %1973 = vrcp.f32 %v253_v29 }
  0xc2   : > { %v2206_v1 = vpop.permute.xlu1 %791 }
  0xc6   : > { %v2213_v4 = vpop.permute.xlu1 %781 }
  0xca   : > { %v1974_v32 = vpop.eup %1973 }
  0xcb   : > { %v343_v33 = vmul.f32 %v1974_v32, %v342_v31  ;;  %v1960_v32 = vpack.i.bf16 %v1273_v48, %v582_v17  ;;  %v510_v48 = vunpack.c.l.bf16 %v1741_v47 }
  0xcd   : > { %v344_v34 = vpack.c.bf16 %v343_v33, %v343_v33 }
  0xcf   : > { %v352_v35 = vsel %vm2707_vm3, %v344_v34, 0  ;;  %vm224_vm3 = vcmp.lt.s32.totalorder %v211_v0, 3 }
  0xd0   : > { %1832 = vmatpush3.bf16.msra.mxu1 %v352_v35 }
  0xd1   : > { %1837 = vmatprep.subr.bf16.mxu1 %v2059_v3 }
  0xf9   : > { %v2162_v36 = vpop.f32.mrb[0].mxu0 }
  0xfa   : > { %v1829_v37 = vpop.f32.mrb[1].mxu0  ;;  %v310_v38 = vsel %vm2706_vm4, %v2162_v36, -inf  ;;  %v320_v39 = vsel %vm2705_vm5, %v2162_v36, -inf  ;;  %v315_v42 = vsel %vm2704_vm6, %v2162_v36, -inf  ;;  %v306_v43 = vsel %vm2711_vm7, %v2162_v36, -inf  ;;  %vm2215_vm6 = vmand %vm213_vm10, %vm217_vm11 }
  0xfb   : > { %311 = vmax.xlane.f32.xlu0 %v310_v38  ;;  %v302_v40 = vpop.f32.mrb[2].mxu0  ;;  %321 = vmax.xlane.f32.xlu1 %v320_v39  ;;  %vm233_vm5 = vcmp.ge.s32.totalorder %v2204_v63, 3  ;;  %vm223_vm4 = vmand %vm221_vm12, %vm222_vm13  ;;  %vm231_vm10 = vcmp.lt.s32.totalorder %v211_v0, 4  ;;  %vm346_vm13 = vcmask 31744  }
  0xfc   : > { %v1830_v41 = vpop.f32.mrb[3].mxu0  ;;  %vm234_vm7 = vmand %vm233_vm5, %vm227_vm15  ;;  %vm2725_vm15 = vcmask 261120  }
  0xfd   : > { %vm2220_vm9 = vmand %vm223_vm4, %vm224_vm3  ;;  %vm2721_vm3 = vcmask 257024   ;;  %vm2722_vm4 = vcmask 27648   ;;  %v435_v46 = vsel %vm2725_vm15, %v2196_v58, 0 }
  0xfe   : > { %vm236_vm11 = vmand %vm234_vm7, %vm235_vm8  ;;  %vm2726_vm8 = vmmov 0  }
  0xff   : > { %316 = vmax.xlane.f32.xlu0 %v315_v42  ;;  %307 = vmax.xlane.f32.xlu1 %v306_v43  ;;  %vm2228_vm12 = vmand %vm230_vm2, %vm231_vm10 }
 0x100   : > { %vm2232_vm5 = vmand %vm236_vm11, %vm231_vm10 }
 0x101   : > { %vm2723_vm7 = vmmov %vm2721_vm3 }
 0x102   : > { %vm2724_vm14 = vmmov %vm2722_vm4 }
 0x103   : > { %vm2727_vm10 = vmmov %vm2725_vm15 }
 0x104   : > { %v616_v51 = vsel %vm2727_vm10, %v2200_v60, 0  ;;  %vm2728_vm11 = vmmov %vm2727_vm10 }
 0x110   : > { %1111 = vrot.lane.b32.xlu1 %v1109_v50, %s2061_s27 }
 0x114   : > { %1291 = vrot.lane.b32.xlu1 %v1289_v53, %s2062_s28 }
 0x115   : > { %326 = vperm.xlu0 %1954, %v2162_v36  }
 0x118   : > { %1471 = vrot.lane.b32.xlu1 %v1469_v55, %s2063_s29  ;;  %v1965_v55 = vpack.i.bf16 %v1453_v52, %v763_v21 }
 0x119   : > { %1121 = vrot.lane.b32.xlu0 %v1770_v56, %s2061_s27 }
 0x11d   : > { %1301 = vrot.lane.b32.xlu0 %v1770_v56, %s2062_s28 }
 0x121   : > { %1481 = vrot.lane.b32.xlu0 %v1770_v56, %s2063_s29 }
 0x125   : > { %1956 = vrot.lane.b32.xlu0 %v1955_v57, %s2061_s27  ;;  %v2310_v57 = vld [vmem:[%s2124_s26 + $0x2] sm:$0x3] }
 0x126   : > { %v944_v49 = vunpack.c.l.bf16 %v2310_v57 }
 0x128   : > { %v955_v52 = vmul.f32 0.17677669, %v944_v49 }
 0x12a   : > { %v956_v58 = vpack.c.bf16 %v955_v52, %v955_v52 }
 0x188   : > { %v312_v2 = vpop.xlane.xlu0 %311  ;;  %v322_v6 = vpop.xlane.xlu1 %321 }
 0x189   : > { %v313_v9 = vsel %vm2215_vm6, %v312_v2, -inf }
 0x18c   : > { %v317_v8 = vpop.xlane.xlu0 %316  ;;  %v308_v13 = vpop.xlane.xlu1 %307 }
 0x18d   : > { %v318_v10 = vsel %vm2220_vm9, %v317_v8, %v313_v9  ;;  %vm331_vm0 = vcmp.ge.f32.partialorder %v2162_v36, %v308_v13  ;;  %v1748_v9 = vld [vmem:[%s2124_s26 + $0x8] sm:$0x3] }
 0x18e   : > { %v323_v16 = vsel %vm2228_vm12, %v322_v6, %v318_v10  ;;  %v691_v10 = vunpack.c.l.bf16 %v1748_v9 }
 0x190   : > { %v2259_v33 = vpop.permute.xlu1 %1111 }
 0x194   : > { %v327_v14 = vpop.permute.xlu0 %326  ;;  %v2261_v34 = vpop.permute.xlu1 %1291 }
 0x195   : > { %v329_v18 = vsel %vm2232_vm5, %v327_v14, %v323_v16 }
 0x196   : > { %vm330_vm1 = vcmp.ge.f32.partialorder %v2162_v36, %v329_v18 }
 0x197   : > { %vm332_vm2 = vmand %vm330_vm1, %vm331_vm0 }
 0x198   : > { %v333_v20 = vsel %vm332_vm2, %v2162_v36, -1e+09  ;;  %v2243_v22 = vpop.permute.xlu0 %1121  ;;  %v2263_v35 = vpop.permute.xlu1 %1471  ;;  %vm2729_vm0 = vmmov %vm2727_vm10 }
 0x199   : > { %v334_v23 = vsub.f32 %v333_v20, %v308_v13  ;;  %v797_v56 = vsel %vm2729_vm0, %v2206_v1, 0  ;;  %vm2730_vm1 = vmmov %vm2729_vm0 }
 0x19a   : > { %vm2731_vm2 = vmmov %vm2729_vm0 }
 0x19b   : > { %v335_v24 = vmul.f32 1.442695, %v334_v23  ;;  %v961_v21 = vsel %vm2731_vm2, %v1761_v19, 0  ;;  %vm2736_vm15 = vmmov %vm2729_vm0  ;;  %vm2740_vm2 = vcmask 257024  }
 0x19c   : > { %v2245_v25 = vpop.permute.xlu0 %1301  ;;  %vm2737_vm10 = vmmov %vm2729_vm0 }
 0x19d   : > { %1975 = vpow2.f32 %v335_v24 }
 0x1a0   : > { %v2247_v26 = vpop.permute.xlu0 %1481 }
 0x1a4   : > { %v2249_v27 = vpop.permute.xlu0 %1956 }
 0x1a5   : > { %v1958_v28 = vunpack.i.l.bf16 %v2249_v27  ;;  %v1959_v23 = vunpack.i.h.bf16 %v2249_v27 }
 0x1a7   : > { %v406_v29 = vsel %vm2721_vm3, %v1958_v28, 0.0  ;;  %v1976_v30 = vpop.eup %1975  ;;  %vm2732_vm3 = vmmov %vm2729_vm0 }
 0x1a8   : > { %407 = vadd.xlane.f32.xlu1 %v406_v29  ;;  %v337_v31 = vsel %vm2722_vm4, %v1976_v30, 0.0  ;;  %vm2733_vm4 = vmmov %vm2729_vm0 }
 0x1ac   : > { %338 = vadd.xlane.f32.xlu1 %v337_v31 }
 0x1bd   : > { %1961 = vrot.lane.b32.xlu1 %v1960_v32, %s2062_s28 }
 0x235   : > { %v408_v36 = vpop.xlane.xlu1 %407 }
 0x236   : > { %v1742_v37 = vmul.f32 -0.03125, %v408_v36 }
 0x238   : > { %v411_v38 = vmul.f32 1.442695, %v1742_v37 }
 0x239   : > { %v339_v39 = vpop.xlane.xlu1 %338 }
 0x23a   : > { %1977 = vpow2.f32 %v411_v38 }
 0x23b   : > { %1979 = vrcp.f32 %v339_v39 }
 0x23d   : > { %v2267_v15 = vpop.permute.xlu1 %1961 }
 0x23e   : > { %v1963_v17 = vunpack.i.l.bf16 %v2267_v15 }
 0x240   : > { %v587_v40 = vsel %vm2723_vm7, %v1963_v17, 0.0  ;;  %vm2734_vm7 = vmmov %vm2729_vm0 }
 0x241   : > { %588 = vadd.xlane.f32.xlu1 %v587_v40 }
 0x244   : > { %v1978_v41 = vpop.eup %1977 }
 0x245   : > { %v1980_v42 = vpop.eup %1979  ;;  %v413_v43 = vadd.f32 1.0, %v1978_v41 }
 0x246   : > { %v341_v44 = vmul.f32 %v1980_v42, %v1976_v30 }
 0x247   : > { %1981 = vrcp.f32 %v413_v43 }
 0x248   : > { %v345_v45 = vpack.c.bf16 %v341_v44, %v341_v44  ;;  %397 = vst.msk [vmem:[%s2279_s5] sm:$0xf] %vm2724_vm14, %v341_v44  ;;  %vm2735_vm14 = vmmov %vm2729_vm0 }
 0x249   : > { %v1307_v60 = vsel %vm2735_vm14, %v2245_v25, 0  ;;  %vm2743_vm14 = vcmask 11264  }
 0x24a   : > { %1834 = vmatmul.mubr.msk.bf16.vlgmr.msra.gmra.mrb[0].mxu1 %vm346_vm13, %v345_v45 }
 0x24b   : > { %1838 = vmatpush3.bf16.xpose.msra.mxu1 %v435_v46  ;;  %1839 = vmatprep.mubr.msk.bf16.mxu1 %vm2726_vm8, %v2059_v3 }
 0x24c   : > { %1849 = vmatprep.subr.bf16.mxu1 %v2059_v3 }
 0x251   : > { %v1982_v50 = vpop.eup %1981 }
 0x252   : > { %1840 = vmatmul.mubr.msk.bf16.vlgmr.msra.gmra.mrb[4].mxu1 %vm2728_vm11, %v2198_v59  ;;  %v511_v53 = vmul.f32 %v1982_v50, %v510_v48  ;;  %v1127_v59 = vsel %vm2733_vm4, %v2243_v22, 0  ;;  %vm2738_vm11 = vmmov %vm2729_vm0  ;;  %vm395_vm4 = vcmask 254976  }
 0x253   : > { %1850 = vmatpush3.bf16.xpose.msra.mxu1 %v616_v51  ;;  %1851 = vmatprep.mubr.msk.bf16.mxu1 %vm2726_vm8, %v2059_v3 }
 0x254   : > { %v512_v54 = vpack.c.bf16 %v511_v53, %v511_v53  ;;  %1861 = vmatprep.subr.bf16.mxu1 %v2059_v3 }
 0x256   : > { %515 = vrot.lane.b32.xlu0 %v512_v54, %s2061_s27 }
 0x25a   : > { %1852 = vmatmul.mubr.msk.bf16.vlgmr.msra.gmra.mrb[8].mxu1 %vm2730_vm1, %v2202_v61  ;;  %1966 = vrot.lane.b32.xlu0 %v1965_v55, %s2063_s29  ;;  %v1487_v61 = vsel %vm2737_vm10, %v2247_v26, 0  ;;  %vm2739_vm1 = vcmask 1041408  }
 0x25b   : > { %1862 = vmatpush3.bf16.xpose.msra.mxu1 %v797_v56  ;;  %1863 = vmatprep.mubr.msk.bf16.mxu1 %vm2726_vm8, %v2059_v3 }
 0x25c   : > { %1873 = vmatprep.subr.bf16.mxu1 %v2059_v3 }
 0x262   : > { %1864 = vmatmul.mubr.msk.bf16.vlgmr.msra.gmra.mrb[12].mxu1 %vm2732_vm3, %v2213_v4  ;;  %vm2741_vm3 = vmmov %vm2740_vm2 }
 0x263   : > { %1874 = vmatpush3.bf16.xpose.msra.mxu1 %v961_v21  ;;  %1875 = vmatprep.mubr.msk.bf16.mxu1 %vm2726_vm8, %v2059_v3  ;;  %v1098_v24 = vsel %vm2741_vm3, %v1959_v23, 0.0 }
 0x264   : > { %1885 = vmatprep.subr.bf16.mxu1 %v2059_v3 }
 0x26a   : > { %1876 = vmatmul.mubr.msk.bf16.vlgmr.msra.gmra.mrb[16].mxu1 %vm2734_vm7, %v956_v58  ;;  %vm2742_vm7 = vcmask 27648  }
 0x26b   : > { %1886 = vmatpush3.bf16.xpose.msra.mxu1 %v1127_v59  ;;  %1887 = vmatprep.mubr.msk.bf16.mxu1 %vm2726_vm8, %v2059_v3  ;;  %vm2745_vm10 = vmmov %vm2742_vm7 }
 0x26c   : > { %1897 = vmatprep.subr.bf16.mxu1 %v2059_v3  ;;  %vm2750_vm3 = vmmov %vm2742_vm7 }
 0x272   : > { %1888 = vmatmul.mubr.msk.bf16.vlgmr.msra.gmra.mrb[20].mxu1 %vm2736_vm15, %v2259_v33  ;;  %vm2744_vm15 = vcmask 27664  }
 0x273   : > { %1898 = vmatpush3.bf16.xpose.msra.mxu1 %v1307_v60  ;;  %1899 = vmatprep.mubr.msk.bf16.mxu1 %vm2726_vm8, %v2059_v3 }
 0x274   : > { %1909 = vmatprep.subr.bf16.mxu1 %v2059_v3 }
 0x27a   : > { %1900 = vmatmul.mubr.msk.bf16.vlgmr.msra.gmra.mrb[24].mxu1 %vm2738_vm11, %v2261_v34  ;;  %vm2746_vm11 = vmmov %vm2743_vm14 }
 0x27b   : > { %1910 = vmatpush3.bf16.xpose.msra.mxu1 %v1487_v61  ;;  %1911 = vmatprep.mubr.msk.bf16.mxu1 %vm2726_vm8, %v2059_v3 }
 0x282   : > { %1912 = vmatmul.mubr.msk.bf16.vlgmr.msra.gmra.mrb[28].mxu1 %vm2729_vm0, %v2263_v35  ;;  %vm2747_vm0 = vmmov %vm2744_vm15 }
 0x2c8   : > { %v516_v62 = vpop.permute.xlu0 %515 }
 0x2c9   : > { %v521_v0 = vsel %vm2739_vm1, %v516_v62, 0  ;;  %vm2748_vm1 = vmmov %vm2746_vm11 }
 0x2ca   : > { %1844 = vmatpush3.bf16.msra.mxu0 %v521_v0 }
 0x2cb   : > { %1855 = vmatprep.subr.bf16.mxu0 %v2059_v3 }
 0x2cc   : > { %v2348_v18 = vpop.permute.xlu0 %1966 }
 0x2cd   : > { %v1968_v20 = vunpack.i.l.bf16 %v2348_v18 }
 0x2ce   : > { %v589_v1 = vpop.xlane.xlu1 %588 }
 0x2cf   : > { %v1749_v2 = vmul.f32 -0.03125, %v589_v1  ;;  %v768_v22 = vsel %vm2740_vm2, %v1968_v20, 0.0  ;;  %vm2749_vm2 = vcmask 19464  }
 0x2d1   : > { %v592_v4 = vmul.f32 1.442695, %v1749_v2 }
 0x2d3   : > { %1983 = vpow2.f32 %v592_v4 }
 0x2dd   : > { %v1984_v6 = vpop.eup %1983 }
 0x2de   : > { %v594_v8 = vadd.f32 1.0, %v1984_v6 }
 0x2e0   : > { %1985 = vrcp.f32 %v594_v8 }
 0x2ea   : > { %v1986_v13 = vpop.eup %1985 }
 0x2eb   : > { %v692_v14 = vmul.f32 %v1986_v13, %v691_v10 }
 0x2ed   : > { %v693_v16 = vpack.c.bf16 %v692_v14, %v692_v14 }
 0x2ef   : > { %696 = vrot.lane.b32.xlu1 %v693_v16, %s2062_s28 }
 0x313   : > { %769 = vadd.xlane.f32.xlu1 %v768_v22 }
 0x317   : > { %1099 = vadd.xlane.f32.xlu1 %v1098_v24 }
 0x31d   : > { %v388_v25 = vpop.f32.mrb[0].mxu1 }
 0x31e   : > { %v394_v26 = vpack.c.bf16 %v388_v25, %v388_v25  ;;  %v1835_v28 = vpop.f32.mrb[1].mxu1 }
 0x31f   : > { %v391_v29 = vpop.f32.mrb[2].mxu1 }
 0x320   : > { %396 = vst.msk [vmem:[%s2358_s9] sm:$0x3] %vm395_vm4, %v394_v26  ;;  %v1836_v30 = vpop.f32.mrb[3].mxu1 }
 0x325   : > { %v2362_v27 = vpop.f32.mrb[4].mxu1 }
 0x326   : > { %v1841_v31 = vpop.f32.mrb[5].mxu1  ;;  %v477_v32 = vsel %vm2742_vm7, %v2362_v27, -inf  ;;  %v480_v35 = vsel %vm2743_vm14, %v2362_v27, -inf  ;;  %v488_v38 = vsel %vm2744_vm15, %v2362_v27, -inf  ;;  %vm2751_vm7 = vmmov %vm2749_vm2 }
 0x327   : > { %478 = vmax.xlane.f32.xlu0 %v477_v32  ;;  %v474_v33 = vpop.f32.mrb[6].mxu1  ;;  %vm2752_vm14 = vmmov %vm2749_vm2 }
 0x328   : > { %v1842_v34 = vpop.f32.mrb[7].mxu1  ;;  %494 = vperm.xlu1 %1970, %v2362_v27   ;;  %v484_v59 = vsel %vm2752_vm14, %v2362_v27, -inf  ;;  %vm2753_vm15 = vmmov %vm2747_vm0 }
 0x32b   : > { %481 = vmax.xlane.f32.xlu0 %v480_v35 }
 0x32d   : > { %v2369_v36 = vpop.f32.mrb[8].mxu1 }
 0x32e   : > { %v1853_v37 = vpop.f32.mrb[9].mxu1  ;;  %v658_v40 = vsel %vm2745_vm10, %v2369_v36, -inf  ;;  %v661_v43 = vsel %vm2746_vm11, %v2369_v36, -inf  ;;  %v669_v46 = vsel %vm2747_vm0, %v2369_v36, -inf  ;;  %vm2754_vm10 = vmmov %vm2750_vm3 }
 0x32f   : > { %489 = vmax.xlane.f32.xlu0 %v488_v38  ;;  %v655_v39 = vpop.f32.mrb[10].mxu1  ;;  %vm2755_vm11 = vmmov %vm2749_vm2 }
 0x330   : > { %v1854_v17 = vpop.f32.mrb[11].mxu1  ;;  %v665_v10 = vsel %vm2755_vm11, %v2369_v36, -inf  ;;  %vm2756_vm0 = vmmov %vm2748_vm1  ;;  %vm2764_vm11 = vcmask 27648  }
 0x333   : > { %659 = vmax.xlane.f32.xlu0 %v658_v40 }
 0x335   : > { %v2375_v41 = vpop.f32.mrb[12].mxu1 }
 0x336   : > { %v1865_v42 = vpop.f32.mrb[13].mxu1  ;;  %v842_v48 = vsel %vm2748_vm1, %v2375_v41, -inf  ;;  %v846_v54 = vsel %vm2749_vm2, %v2375_v41, -inf  ;;  %v839_v19 = vsel %vm2750_vm3, %v2375_v41, -inf  ;;  %vm2757_vm1 = vmmov %vm2749_vm2 }
 0x337   : > { %662 = vmax.xlane.f32.xlu0 %v661_v43  ;;  %v836_v44 = vpop.f32.mrb[14].mxu1  ;;  %vm2758_vm2 = vmmov %vm2753_vm15 }
 0x338   : > { %v1866_v45 = vpop.f32.mrb[15].mxu1  ;;  %vm2759_vm3 = vmmov %vm2756_vm0 }
 0x339   : > { %vm2761_vm14 = vmmov %vm2758_vm2 }
 0x33b   : > { %670 = vmax.xlane.f32.xlu0 %v669_v46 }
 0x33d   : > { %v2381_v47 = vpop.f32.mrb[16].mxu1 }
 0x33e   : > { %v1877_v50 = vpop.f32.mrb[17].mxu1  ;;  %v1010_v58 = vsel %vm2751_vm7, %v2381_v47, -inf  ;;  %v1014_v60 = vsel %vm2753_vm15, %v2381_v47, -inf  ;;  %v1003_v2 = vsel %vm2754_vm10, %v2381_v47, -inf  ;;  %vm2760_vm7 = vmmov %vm2757_vm1 }
 0x33f   : > { %843 = vmax.xlane.f32.xlu0 %v842_v48  ;;  %v1000_v51 = vpop.f32.mrb[18].mxu1  ;;  %vm2762_vm15 = vmmov %vm2758_vm2  ;;  %v1006_v48 = vsel %vm2759_vm3, %v2381_v47, -inf }
 0x340   : > { %v1878_v53 = vpop.f32.mrb[19].mxu1  ;;  %v850_v24 = vsel %vm2762_vm15, %v2375_v41, -inf  ;;  %vm2763_vm10 = vmmov %vm2758_vm2 }
 0x343   : > { %847 = vmax.xlane.f32.xlu0 %v846_v54 }
 0x345   : > { %v2387_v55 = vpop.f32.mrb[20].mxu1 }
 0x346   : > { %v1889_v56 = vpop.f32.mrb[21].mxu1  ;;  %v1172_v13 = vsel %vm2756_vm0, %v2387_v55, -inf  ;;  %v1176_v14 = vsel %vm2757_vm1, %v2387_v55, -inf  ;;  %v1180_v16 = vsel %vm2758_vm2, %v2387_v55, -inf }
 0x347   : > { %840 = vmax.xlane.f32.xlu0 %v839_v19  ;;  %v1166_v21 = vpop.f32.mrb[22].mxu1 }
 0x348   : > { %v1890_v52 = vpop.f32.mrb[23].mxu1 }
 0x34b   : > { %1011 = vmax.xlane.f32.xlu0 %v1010_v58 }
 0x34c   : > { %485 = vmax.xlane.f32.xlu1 %v484_v59 }
 0x34d   : > { %v2397_v61 = vpop.f32.mrb[24].mxu1 }
 0x34e   : > { %v1901_v62 = vpop.f32.mrb[25].mxu1  ;;  %v1352_v20 = vsel %vm2759_vm3, %v2397_v61, -inf  ;;  %v1356_v22 = vsel %vm2760_vm7, %v2397_v61, -inf  ;;  %v1360_v23 = vsel %vm2761_vm14, %v2397_v61, -inf  ;;  %vm2765_vm7 = vmmov %vm2764_vm11 }
 0x34f   : > { %1015 = vmax.xlane.f32.xlu0 %v1014_v60  ;;  %v1346_v0 = vpop.f32.mrb[26].mxu1  ;;  %v1169_v51 = vsel %vm2765_vm7, %v2387_v55, -inf  ;;  %vm2766_vm14 = vmmov %vm2765_vm7 }
 0x350   : > { %v1902_v1 = vpop.f32.mrb[27].mxu1  ;;  %vm2767_vm15 = vmmov %vm2765_vm7 }
 0x351   : > { %v1349_v54 = vsel %vm2767_vm15, %v2397_v61, -inf }
 0x353   : > { %1004 = vmax.xlane.f32.xlu0 %v1003_v2 }
 0x355   : > { %v2401_v4 = vpop.f32.mrb[28].mxu1 }
 0x356   : > { %v1913_v6 = vpop.f32.mrb[29].mxu1  ;;  %v1540_v30 = vsel %vm2763_vm10, %v2401_v4, -inf  ;;  %v1529_v32 = vsel %vm2764_vm11, %v2401_v4, -inf  ;;  %vm2768_vm10 = vmmov %vm2759_vm3  ;;  %vm2769_vm11 = vcmask 19464  }
 0x357   : > { %v1526_v8 = vpop.f32.mrb[30].mxu1  ;;  %v1532_v19 = vsel %vm2768_vm10, %v2401_v4, -inf  ;;  %v1536_v21 = vsel %vm2769_vm11, %v2401_v4, -inf }
 0x358   : > { %v1914_v9 = vpop.f32.mrb[31].mxu1 }
 0x35d   : > { %675 = vperm.xlu1 %1970, %v2369_v36  }
 0x361   : > { %v2423_v25 = vpop.permute.xlu1 %696 }
 0x369   : > { %1186 = vperm.xlu0 %1954, %v2387_v55  }
 0x381   : > { %666 = vmax.xlane.f32.xlu1 %v665_v10 }
 0x388   : > { %1173 = vmax.xlane.f32.xlu0 %v1172_v13 }
 0x38c   : > { %1177 = vmax.xlane.f32.xlu0 %v1176_v14 }
 0x390   : > { %1181 = vmax.xlane.f32.xlu0 %v1180_v16 }
 0x392   : > { %856 = vperm.xlu1 %1970, %v2375_v41  }
 0x394   : > { %1353 = vmax.xlane.f32.xlu0 %v1352_v20 }
 0x398   : > { %1357 = vmax.xlane.f32.xlu0 %v1356_v22 }
 0x39c   : > { %1361 = vmax.xlane.f32.xlu0 %v1360_v23 }
 0x3a0   : > { %v770_v26 = vpop.xlane.xlu1 %769 }
 0x3a1   : > { %v1756_v10 = vmul.f32 -0.03125, %v770_v26 }
 0x3a3   : > { %v773_v20 = vmul.f32 1.442695, %v1756_v10 }
 0x3a4   : > { %v2426_v29 = vpop.xlane.xlu1 %1099 }
 0x3a8   : > { %v495_v33 = vpop.permute.xlu1 %494 }
 0x3b2   : > { %1546 = vperm.xlu0 %1954, %v2401_v4  }
 0x3b4   : > { %v479_v28 = vpop.xlane.xlu0 %478 }
 0x3b5   : > { %vm499_vm0 = vcmp.ge.f32.partialorder %v2362_v27, %v479_v28 }
 0x3b6   : > { %851 = vmax.xlane.f32.xlu1 %v850_v24 }
 0x3b8   : > { %v482_v31 = vpop.xlane.xlu0 %481 }
 0x3b9   : > { %v483_v35 = vsel %vm2215_vm6, %v482_v31, -inf }
 0x3bc   : > { %v490_v34 = vpop.xlane.xlu0 %489 }
 0x3c0   : > { %v660_v40 = vpop.xlane.xlu0 %659 }
 0x3c4   : > { %v663_v45 = vpop.xlane.xlu0 %662 }
 0x3c5   : > { %v664_v0 = vsel %vm2215_vm6, %v663_v45, -inf }
 0x3c7   : > { %1020 = vperm.xlu1 %1970, %v2381_v47  }
 0x3c8   : > { %v671_v46 = vpop.xlane.xlu0 %670 }
 0x3cc   : > { %v2449_v53 = vpop.xlane.xlu0 %843 }
 0x3d0   : > { %v2455_v56 = vpop.xlane.xlu0 %847 }
 0x3d1   : > { %1541 = vmax.xlane.f32.xlu0 %v1540_v30 }
 0x3d4   : > { %v2461_v52 = vpop.xlane.xlu0 %840 }
 0x3d5   : > { %1530 = vmax.xlane.f32.xlu0 %v1529_v32  ;;  %vm861_vm11 = vcmp.ge.f32.partialorder %v2375_v41, %v2461_v52 }
 0x3d8   : > { %v2463_v58 = vpop.xlane.xlu0 %1011 }
 0x3d9   : > { %v486_v37 = vpop.xlane.xlu1 %485 }
 0x3da   : > { %v487_v38 = vsel %vm2220_vm9, %v486_v37, %v483_v35 }
 0x3db   : > { %v491_v39 = vsel %vm2228_vm12, %v490_v34, %v487_v38 }
 0x3dc   : > { %v497_v17 = vsel %vm2232_vm5, %v495_v33, %v491_v39  ;;  %v2465_v59 = vpop.xlane.xlu0 %1015  ;;  %v1969_v33 = vunpack.i.h.bf16 %v2348_v18 }
 0x3dd   : > { %vm498_vm1 = vcmp.ge.f32.partialorder %v2362_v27, %v497_v17  ;;  %v676_v60 = vpop.permute.xlu1 %675 }
 0x3de   : > { %vm500_vm2 = vmand %vm498_vm1, %vm499_vm0  ;;  %vm680_vm0 = vcmp.ge.f32.partialorder %v2369_v36, %v660_v40 }
 0x3df   : > { %v501_v42 = vsel %vm500_vm2, %v2362_v27, -1e+09 }
 0x3e0   : > { %v502_v43 = vsub.f32 %v501_v42, %v479_v28  ;;  %v2468_v62 = vpop.xlane.xlu0 %1004 }
 0x3e2   : > { %v503_v44 = vmul.f32 1.442695, %v502_v43  ;;  %v1964_v43 = vunpack.i.h.bf16 %v2267_v15  ;;  %v845_v15 = vsel %vm2215_vm6, %v2449_v53, -inf }
 0x3e4   : > { %1987 = vpow2.f32 %v503_v44 }
 0x3e8   : > { %v1187_v8 = vpop.permute.xlu0 %1186 }
 0x3eb   : > { %1007 = vmax.xlane.f32.xlu1 %v1006_v48 }
 0x3ee   : > { %v2445_v50 = vpop.eup %1987 }
 0x3ef   : > { %1170 = vmax.xlane.f32.xlu1 %v1169_v51  ;;  %v505_v27 = vsel %vm2766_vm14, %v2445_v50, 0.0  ;;  %vm2770_vm14 = vcmask 257024  }
 0x3f0   : > { %506 = vadd.xlane.f32.xlu0 %v505_v27  ;;  %vm2771_vm15 = vmmov %vm2770_vm14 }
 0x3f1   : > { %v1278_v44 = vsel %vm2771_vm15, %v1964_v43, 0.0  ;;  %vm2772_vm10 = vmmov %vm2770_vm14 }
 0x3f2   : > { %v945_v45 = vsel %vm2772_vm10, %v944_v49, 0.0 }
 0x3f3   : > { %1350 = vmax.xlane.f32.xlu1 %v1349_v54 }
 0x3f7   : > { %1533 = vmax.xlane.f32.xlu1 %v1532_v19 }
 0x3fb   : > { %1537 = vmax.xlane.f32.xlu1 %v1536_v21  ;;  %v849_v21 = vsel %vm2220_vm9, %v2455_v56, %v845_v15 }
 0x40c   : > { %1366 = vperm.xlu1 %1970, %v2397_v61  }
 0x40e   : > { %v667_v1 = vpop.xlane.xlu1 %666 }
 0x40f   : > { %v668_v2 = vsel %vm2220_vm9, %v667_v1, %v664_v0 }
 0x410   : > { %v672_v6 = vsel %vm2228_vm12, %v671_v46, %v668_v2  ;;  %v1755_v46 = vld [vmem:[%s2124_s26 + $0x8] sm:$0x3] }
 0x411   : > { %v678_v9 = vsel %vm2232_vm5, %v676_v60, %v672_v6  ;;  %v872_v48 = vunpack.c.l.bf16 %v1755_v46 }
 0x412   : > { %vm679_vm1 = vcmp.ge.f32.partialorder %v2369_v36, %v678_v9  ;;  %v857_v19 = vpop.permute.xlu1 %856 }
 0x413   : > { %vm681_vm2 = vmand %vm679_vm1, %vm680_vm0 }
 0x414   : > { %v682_v13 = vsel %vm681_vm2, %v2369_v36, -1e+09  ;;  %vm2773_vm2 = vmmov %vm2765_vm7 }
 0x415   : > { %v683_v14 = vsub.f32 %v682_v13, %v660_v40  ;;  %v1174_v16 = vpop.xlane.xlu0 %1173  ;;  %v1458_v40 = vsel %vm2770_vm14, %v1969_v33, 0.0  ;;  %v1769_v13 = vmul.f32 -0.03125, %v2426_v29  ;;  %vm1025_vm14 = vcmp.ge.f32.partialorder %v2381_v47, %v2468_v62 }
 0x416   : > { %v1175_v23 = vsel %vm2215_vm6, %v1174_v16, -inf }
 0x417   : > { %v684_v22 = vmul.f32 1.442695, %v683_v14 }
 0x419   : > { %1989 = vpow2.f32 %v684_v22  ;;  %v1178_v24 = vpop.xlane.xlu0 %1177 }
 0x41a   : > { %v1179_v28 = vsel %vm2220_vm9, %v1178_v24, %v1175_v23  ;;  %1991 = vpow2.f32 %v773_v20 }
 0x41d   : > { %v1182_v30 = vpop.xlane.xlu0 %1181 }
 0x41e   : > { %v1183_v26 = vsel %vm2228_vm12, %v1182_v30, %v1179_v28 }
 0x41f   : > { %v2489_v36 = vsel %vm2232_vm5, %v1187_v8, %v1183_v26 }
 0x420   : > { %vm1190_vm3 = vcmp.ge.f32.partialorder %v2387_v55, %v2489_v36 }
 0x421   : > { %v1354_v31 = vpop.xlane.xlu0 %1353 }
 0x422   : > { %v1355_v37 = vsel %vm2215_vm6, %v1354_v31, -inf }
 0x423   : > { %v2493_v32 = vpop.eup %1989 }
 0x424   : > { %v686_v34 = vsel %vm2765_vm7, %v2493_v32, 0.0  ;;  %v1992_v35 = vpop.eup %1991 }
 0x425   : > { %v1358_v38 = vpop.xlane.xlu0 %1357  ;;  %687 = vadd.xlane.f32.xlu0 %v686_v34  ;;  %v775_v17 = vadd.f32 1.0, %v1992_v35 }
 0x426   : > { %v2502_v39 = vsel %vm2220_vm9, %v1358_v38, %v1355_v37 }
 0x427   : > { %1993 = vrcp.f32 %v775_v17 }
 0x429   : > { %v2505_v42 = vpop.xlane.xlu0 %1361  ;;  %1459 = vadd.xlane.f32.xlu0 %v1458_v40 }
 0x42a   : > { %v1363_v18 = vsel %vm2228_vm12, %v2505_v42, %v2502_v39  ;;  %v1768_v42 = vld [vmem:[%s2124_s26 + $0xa] sm:$0x3] }
 0x430   : > { %1279 = vadd.xlane.f32.xlu1 %v1278_v44 }
 0x431   : > { %v1994_v51 = vpop.eup %1993  ;;  %v1547_v6 = vpop.permute.xlu0 %1546 }
 0x432   : > { %v873_v27 = vmul.f32 %v1994_v51, %v872_v48 }
 0x434   : > { %946 = vadd.xlane.f32.xlu1 %v945_v45  ;;  %v874_v54 = vpack.c.bf16 %v873_v27, %v873_v27 }
 0x43f   : > { %877 = vrot.lane.b32.xlu0 %v874_v54, %s2063_s29 }
 0x443   : > { %v852_v57 = vpop.xlane.xlu1 %851 }
 0x444   : > { %v853_v49 = vsel %vm2228_vm12, %v852_v57, %v849_v21 }
 0x445   : > { %v859_v60 = vsel %vm2232_vm5, %v857_v19, %v853_v49 }
 0x446   : > { %vm860_vm0 = vcmp.ge.f32.partialorder %v2375_v41, %v859_v60 }
 0x447   : > { %vm862_vm1 = vmand %vm860_vm0, %vm861_vm11  ;;  %v1021_v10 = vpop.permute.xlu1 %1020 }
 0x448   : > { %v863_v0 = vsel %vm862_vm1, %v2375_v41, -1e+09  ;;  %v1103_v41 = vmul.f32 1.442695, %v1769_v13 }
 0x449   : > { %v864_v53 = vsub.f32 %v863_v0, %v2461_v52 }
 0x44b   : > { %v865_v1 = vmul.f32 1.442695, %v864_v53 }
 0x44d   : > { %1995 = vpow2.f32 %v865_v1 }
 0x44e   : > { %1997 = vpow2.f32 %v1103_v41 }
 0x457   : > { %v2533_v56 = vpop.eup %1995 }
 0x458   : > { %v867_v2 = vsel %vm2773_vm2, %v2533_v56, 0.0  ;;  %v1998_v33 = vpop.eup %1997 }
 0x459   : > { %868 = vadd.xlane.f32.xlu1 %v867_v2 }
 0x45e   : > { %v1542_v8 = vpop.xlane.xlu0 %1541 }
 0x462   : > { %v1531_v9 = vpop.xlane.xlu0 %1530 }
 0x463   : > { %vm1551_vm7 = vcmp.ge.f32.partialorder %v2401_v4, %v1531_v9 }
 0x478   : > { %v1008_v14 = vpop.xlane.xlu1 %1007 }
 0x479   : > { %v1009_v52 = vsel %vm2215_vm6, %v1008_v14, -inf }
 0x47a   : > { %v1013_v16 = vsel %vm2220_vm9, %v2463_v58, %v1009_v52 }
 0x47b   : > { %v1017_v20 = vsel %vm2228_vm12, %v2465_v59, %v1013_v16 }
 0x47c   : > { %v1023_v22 = vsel %vm2232_vm5, %v1021_v10, %v1017_v20  ;;  %v1171_v23 = vpop.xlane.xlu1 %1170 }
 0x47d   : > { %vm1024_vm15 = vcmp.ge.f32.partialorder %v2381_v47, %v1023_v22  ;;  %vm1191_vm10 = vcmp.ge.f32.partialorder %v2387_v55, %v1171_v23  ;;  %v507_v29 = vpop.xlane.xlu0 %506 }
 0x47e   : > { %vm1026_vm11 = vmand %vm1024_vm15, %vm1025_vm14  ;;  %1999 = vrcp.f32 %v507_v29  ;;  %v1782_v29 = vld [vmem:[%s2124_s26 + $0xa] sm:$0x3] }
 0x47f   : > { %v1027_v58 = vsel %vm1026_vm11, %v2381_v47, -1e+09  ;;  %vm2557_vm0 = vmand %vm1190_vm3, %vm1191_vm10  ;;  %v1562_v59 = vunpack.c.l.bf16 %v1782_v29 }
 0x480   : > { %v1028_v24 = vsub.f32 %v1027_v58, %v2468_v62  ;;  %v1193_v28 = vsel %vm2557_vm0, %v2387_v55, -1e+09  ;;  %v1351_v30 = vpop.xlane.xlu1 %1350  ;;  %v1105_v62 = vadd.f32 1.0, %v1998_v33  ;;  %vm2776_vm3 = vmmov %vm2773_vm2  ;;  %v1775_v58 = vld [vmem:[%s2124_s26 + $0xa] sm:$0x3] }
 0x481   : > { %vm2778_vm14 = vmmov %vm2776_vm3  ;;  %v1194_v45 = vsub.f32 %v1193_v28, %v1171_v23  ;;  %v1382_v28 = vunpack.c.l.bf16 %v1775_v58 }
 0x482   : > { %v1029_v26 = vmul.f32 1.442695, %v1028_v24  ;;  %vm2781_vm10 = vmmov %vm2776_vm3 }
 0x483   : > { %v1195_v51 = vmul.f32 1.442695, %v1194_v45  ;;  %vm2782_vm11 = vmmov %vm2776_vm3 }
 0x484   : > { %v1534_v31 = vpop.xlane.xlu1 %1533  ;;  %2001 = vpow2.f32 %v1029_v26  ;;  %vm2783_vm0 = vmmov %vm2776_vm3 }
 0x485   : > { %v1535_v36 = vsel %vm2215_vm6, %v1534_v31, -inf  ;;  %vm2777_vm6 = vcmask 1041408   ;;  %2003 = vrcp.f32 %v1105_v62 }
 0x486   : > { %v702_v40 = vsel %vm2777_vm6, %v2423_v25, 0  ;;  %vm2780_vm15 = vmmov %vm2777_vm6 }
 0x488   : > { %v2000_v47 = vpop.eup %1999  ;;  %v1538_v34 = vpop.xlane.xlu1 %1537 }
 0x489   : > { %v509_v35 = vmul.f32 %v2000_v47, %v2445_v50  ;;  %v1539_v37 = vsel %vm2220_vm9, %v1538_v34, %v1535_v36  ;;  %vm1371_vm9 = vcmp.ge.f32.partialorder %v2397_v61, %v1351_v30 }
 0x48a   : > { %v1543_v38 = vsel %vm2228_vm12, %v1542_v8, %v1539_v37 }
 0x48b   : > { %1746 = vst.msk [vmem:[%s2279_s5 + $0x4] sm:$0xf] %vm2776_vm3, %v509_v35  ;;  %v1549_v55 = vsel %vm2232_vm5, %v1547_v6, %v1543_v38  ;;  %v513_v17 = vpack.c.bf16 %v509_v35, %v509_v35  ;;  %v1762_v35 = vld [vmem:[%s2124_s26 + $0xa] sm:$0x3] }
 0x48c   : > { %vm1550_vm1 = vcmp.ge.f32.partialorder %v2401_v4, %v1549_v55  ;;  %v1367_v5 = vpop.permute.xlu1 %1366  ;;  %v1036_v62 = vunpack.c.l.bf16 %v1762_v35 }
 0x48d   : > { %vm1552_vm2 = vmand %vm1550_vm1, %vm1551_vm7  ;;  %v1369_v7 = vsel %vm2232_vm5, %v1367_v5, %v1363_v18  ;;  %1846 = vmatmul.mubr.msk.bf16.vlgmr.msra.gmra.mrb[4].mxu0 %vm346_vm13, %v513_v17  ;;  %v1202_v18 = vunpack.c.l.bf16 %v1768_v42 }
 0x48e   : > { %v2589_v50 = vpop.eup %2001  ;;  %v1553_v25 = vsel %vm1552_vm2, %v2401_v4, -1e+09  ;;  %vm1370_vm7 = vcmp.ge.f32.partialorder %v2397_v61, %v1369_v7  ;;  %1856 = vmatpush3.bf16.msra.mxu0 %v702_v40  ;;  %1857 = vmatprep.mubr.msk.bf16.mxu0 %vm2726_vm8, %v2059_v3  ;;  %vm2779_vm5 = vmmov %vm2776_vm3 }
 0x48f   : > { %v1554_v11 = vsub.f32 %v1553_v25, %v1531_v9  ;;  %vm1372_vm12 = vmand %vm1370_vm7, %vm1371_vm9  ;;  %v1031_v12 = vsel %vm2778_vm14, %v2589_v50, 0.0  ;;  %1867 = vmatprep.subr.bf16.mxu0 %v2059_v3  ;;  %v2004_v43 = vpop.eup %2003 }
 0x490   : > { %v1373_v39 = vsel %vm1372_vm12, %v2397_v61, -1e+09  ;;  %1032 = vadd.xlane.f32.xlu1 %v1031_v12  ;;  %v1203_v4 = vmul.f32 %v2004_v43, %v1202_v18  ;;  %vm2784_vm3 = vmmov %vm2783_vm0 }
 0x491   : > { %v1374_v46 = vsub.f32 %v1373_v39, %v1351_v30  ;;  %v1555_v61 = vmul.f32 1.442695, %v1554_v11  ;;  %vm2785_vm1 = vmmov %vm2777_vm6 }
 0x492   : > { %v1204_v44 = vpack.c.bf16 %v1203_v4, %v1203_v4  ;;  %vm2786_vm6 = vmmov %vm2783_vm0 }
 0x493   : > { %v1375_v27 = vmul.f32 1.442695, %v1374_v46  ;;  %vm2787_vm2 = vmmov %vm2785_vm1 }
 0x494   : > { %vm2788_vm9 = vmmov %vm2783_vm0 }
 0x495   : > { %vm2789_vm7 = vmmov %vm2785_vm1 }
 0x496   : > { %vm2790_vm12 = vmmov %vm2783_vm0 }
 0x497   : > { %vm2791_vm14 = vmmov %vm2783_vm0 }
 0x4a1   : > { %1207 = vrot.lane.b32.xlu1 %v1204_v44, %s2061_s27 }
 0x4b2   : > { %v688_v48 = vpop.xlane.xlu0 %687 }
 0x4b3   : > { %2005 = vrcp.f32 %v688_v48 }
 0x4b4   : > { %2007 = vpow2.f32 %v1195_v51 }
 0x4b5   : > { %2009 = vpow2.f32 %v1375_v27 }
 0x4b6   : > { %v1460_v54 = vpop.xlane.xlu0 %1459 }
 0x4b7   : > { %v1783_v19 = vmul.f32 -0.03125, %v1460_v54 }
 0x4b9   : > { %v1463_v15 = vmul.f32 1.442695, %v1783_v19 }
 0x4ba   : > { %v878_v0 = vpop.permute.xlu0 %877 }
 0x4bb   : > { %2011 = vpow2.f32 %v1463_v15  ;;  %v883_v6 = vsel %vm2780_vm15, %v878_v0, 0 }
 0x4bc   : > { %2013 = vpow2.f32 %v1555_v61 }
 0x4bd   : > { %v2006_v21 = vpop.eup %2005  ;;  %v1280_v57 = vpop.xlane.xlu1 %1279 }
 0x4be   : > { %v690_v49 = vmul.f32 %v2006_v21, %v2493_v32  ;;  %v1776_v60 = vmul.f32 -0.03125, %v1280_v57  ;;  %v2605_v2 = vpop.eup %2007 }
 0x4bf   : > { %v2611_v8 = vpop.eup %2009  ;;  %v1197_v32 = vsel %vm2781_vm10, %v2605_v2, 0.0 }
 0x4c0   : > { %1753 = vst.msk [vmem:[%s2279_s5 + $0x8] sm:$0xf] %vm2779_vm5, %v690_v49  ;;  %v1283_v53 = vmul.f32 1.442695, %v1776_v60  ;;  %v694_v1 = vpack.c.bf16 %v690_v49, %v690_v49  ;;  %v1377_v41 = vsel %vm2782_vm11, %v2611_v8, 0.0  ;;  %vm2792_vm5 = vmmov %vm2785_vm1 }
 0x4c1   : > { %v947_v10 = vpop.xlane.xlu1 %946 }
 0x4c2   : > { %2015 = vpow2.f32 %v1283_v53  ;;  %1858 = vmatmul.mubr.msk.bf16.vlgmr.msra.gmra.mrb[8].mxu0 %vm346_vm13, %v694_v1  ;;  %v1763_v13 = vmul.f32 -0.03125, %v947_v10 }
 0x4c3   : > { %1868 = vmatpush3.bf16.msra.mxu0 %v883_v6  ;;  %1869 = vmatprep.mubr.msk.bf16.mxu0 %vm2726_vm8, %v2059_v3 }
 0x4c4   : > { %1879 = vmatprep.subr.bf16.mxu0 %v2059_v3  ;;  %v950_v16 = vmul.f32 1.442695, %v1763_v13 }
 0x4c5   : > { %v2012_v9 = vpop.eup %2011  ;;  %1198 = vadd.xlane.f32.xlu1 %v1197_v32 }
 0x4c6   : > { %v1465_v14 = vadd.f32 1.0, %v2012_v9  ;;  %v2618_v52 = vpop.eup %2013 }
 0x4c7   : > { %v1557_v22 = vsel %vm2783_vm0, %v2618_v52, 0.0 }
 0x4c8   : > { %2017 = vrcp.f32 %v1465_v14 }
 0x4c9   : > { %1378 = vadd.xlane.f32.xlu1 %v1377_v41  ;;  %2019 = vpow2.f32 %v950_v16 }
 0x4cc   : > { %v2016_v20 = vpop.eup %2015 }
 0x4cd   : > { %v1285_v23 = vadd.f32 1.0, %v2016_v20  ;;  %1558 = vadd.xlane.f32.xlu1 %v1557_v22 }
 0x4cf   : > { %2021 = vrcp.f32 %v1285_v23 }
 0x4d2   : > { %v2018_v24 = vpop.eup %2017 }
 0x4d3   : > { %v2020_v30 = vpop.eup %2019  ;;  %v1563_v26 = vmul.f32 %v2018_v24, %v1562_v59 }
 0x4d4   : > { %v952_v47 = vadd.f32 1.0, %v2020_v30 }
 0x4d5   : > { %v1564_v36 = vpack.c.bf16 %v1563_v26, %v1563_v26 }
 0x4d6   : > { %2023 = vrcp.f32 %v952_v47 }
 0x4d9   : > { %v2022_v31 = vpop.eup %2021 }
 0x4da   : > { %v1383_v33 = vmul.f32 %v2022_v31, %v1382_v28 }
 0x4dc   : > { %v1384_v34 = vpack.c.bf16 %v1383_v33, %v1383_v33 }
 0x4de   : > { %1567 = vrot.lane.b32.xlu1 %v1564_v36, %s2063_s29  ;;  %1387 = vrot.lane.b32.xlu0 %v1384_v34, %s2062_s28 }
 0x4e0   : > { %v2024_v38 = vpop.eup %2023 }
 0x4e1   : > { %v1037_v55 = vmul.f32 %v2024_v38, %v1036_v62 }
 0x4e3   : > { %v1038_v17 = vpack.c.bf16 %v1037_v55, %v1037_v55 }
 0x4e5   : > { %v1044_v25 = vsel %vm2785_vm1, %v1038_v17, 0 }
 0x4e6   : > { %v869_v37 = vpop.xlane.xlu1 %868 }
 0x4e7   : > { %2025 = vrcp.f32 %v869_v37 }
 0x4f1   : > { %v2026_v5 = vpop.eup %2025 }
 0x4f2   : > { %v871_v40 = vmul.f32 %v2026_v5, %v2533_v56 }
 0x4f4   : > { %1760 = vst.msk [vmem:[%s2279_s5 + $0xc] sm:$0xf] %vm2784_vm3, %v871_v40  ;;  %v875_v7 = vpack.c.bf16 %v871_v40, %v871_v40 }
 0x4f6   : > { %1870 = vmatmul.mubr.msk.bf16.vlgmr.msra.gmra.mrb[12].mxu0 %vm346_vm13, %v875_v7 }
 0x4f7   : > { %1880 = vmatpush3.bf16.msra.mxu0 %v1044_v25  ;;  %1881 = vmatprep.mubr.msk.bf16.mxu0 %vm2726_vm8, %v2059_v3 }
 0x4f8   : > { %1891 = vmatprep.subr.bf16.mxu0 %v2059_v3 }
 0x51d   : > { %v1033_v11 = vpop.xlane.xlu1 %1032 }
 0x51e   : > { %2027 = vrcp.f32 %v1033_v11 }
 0x521   : > { %v1208_v42 = vpop.permute.xlu1 %1207 }
 0x522   : > { %v1213_v18 = vsel %vm2787_vm2, %v1208_v42, 0 }
 0x528   : > { %v2028_v12 = vpop.eup %2027 }
 0x529   : > { %v1035_v39 = vmul.f32 %v2028_v12, %v2589_v50  ;;  %v2065_v50 = vmov 1983009808  }
 0x52a   : > { %v566_v44 = vunpack.c.l.s4 %v2065_v50 }
 0x52b   : > { %1766 = vst.msk [vmem:[%s2279_s5 + $0x10] sm:$0xf] %vm2786_vm6, %v1035_v39  ;;  %v1039_v56 = vpack.c.bf16 %v1035_v39, %v1035_v39 }
 0x52c   : > { %v567_v46 = vunpack.c.0.s8 %v566_v44 }
 0x52d   : > { %1882 = vmatmul.mubr.msk.bf16.vlgmr.msra.gmra.mrb[16].mxu0 %vm346_vm13, %v1039_v56 }
 0x52e   : > { %1892 = vmatpush3.bf16.msra.mxu0 %v1213_v18  ;;  %1893 = vmatprep.mubr.msk.bf16.mxu0 %vm2726_vm8, %v2059_v3  ;;  %v2645_v54 = vsub.s32 %v567_v46, %v2204_v63 }
 0x52f   : > { %1903 = vmatprep.subr.bf16.mxu0 %v2059_v3 }
 0x550   : > { %v1388_v27 = vpop.permute.xlu0 %1387 }
 0x551   : > { %v1393_v49 = vsel %vm2789_vm7, %v1388_v27, 0 }
 0x552   : > { %v1199_v43 = vpop.xlane.xlu1 %1198 }
 0x553   : > { %2029 = vrcp.f32 %v1199_v43 }
 0x556   : > { %v1379_v4 = vpop.xlane.xlu1 %1378 }
 0x557   : > { %2031 = vrcp.f32 %v1379_v4 }
 0x55a   : > { %v1559_v45 = vpop.xlane.xlu1 %1558 }
 0x55b   : > { %2033 = vrcp.f32 %v1559_v45 }
 0x55d   : > { %v2030_v48 = vpop.eup %2029 }
 0x55e   : > { %v1201_v51 = vmul.f32 %v2030_v48, %v2605_v2  ;;  %v1568_v6 = vpop.permute.xlu1 %1567 }
 0x55f   : > { %v1573_v32 = vsel %vm2792_vm5, %v1568_v6, 0 }
 0x560   : > { %1773 = vst.msk [vmem:[%s2279_s5 + $0x14] sm:$0xf] %vm2788_vm9, %v1201_v51  ;;  %v557_v19 = vpop.f32.mrb[4].mxu0  ;;  %v1205_v15 = vpack.c.bf16 %v1201_v51, %v1201_v51 }
 0x561   : > { %v2032_v61 = vpop.eup %2031  ;;  %v563_v21 = vpack.c.bf16 %v557_v19, %v557_v19  ;;  %v1847_v57 = vpop.f32.mrb[5].mxu0 }
 0x562   : > { %v1381_v60 = vmul.f32 %v2032_v61, %v2611_v8  ;;  %v560_v0 = vpop.f32.mrb[6].mxu0  ;;  %1894 = vmatmul.mubr.msk.bf16.vlgmr.msra.gmra.mrb[20].mxu0 %vm346_vm13, %v1205_v15 }
 0x563   : > { %v571_v53 = vrot.slane %v563_v21, %v2645_v54  ;;  %1904 = vmatpush3.bf16.msra.mxu0 %v1393_v49  ;;  %v1848_v63 = vpop.f32.mrb[7].mxu0  ;;  %1905 = vmatprep.mubr.msk.bf16.mxu0 %vm2726_vm8, %v2059_v3 }
 0x564   : > { %1780 = vst.msk [vmem:[%s2279_s5 + $0x18] sm:$0xf] %vm2790_vm12, %v1381_v60  ;;  %1915 = vmatprep.subr.bf16.mxu0 %v2059_v3  ;;  %v1385_v8 = vpack.c.bf16 %v1381_v60, %v1381_v60 }
 0x565   : > { %v2034_v1 = vpop.eup %2033  ;;  %572 = vrot.lane.b32.xlu1 %v571_v53, %s2063_s29 }
 0x566   : > { %v1561_v2 = vmul.f32 %v2034_v1, %v2618_v52 }
 0x568   : > { %1787 = vst.msk [vmem:[%s2279_s5 + $0x1c] sm:$0xf] %vm2791_vm14, %v1561_v2  ;;  %v1565_v9 = vpack.c.bf16 %v1561_v2, %v1561_v2 }
 0x56a   : > { %1906 = vmatmul.mubr.msk.bf16.vlgmr.msra.gmra.mrb[24].mxu0 %vm346_vm13, %v1385_v8 }
 0x56b   : > { %1916 = vmatpush3.bf16.msra.mxu0 %v1573_v32  ;;  %1917 = vmatprep.mubr.msk.bf16.mxu0 %vm2726_vm8, %v2059_v3  ;;  %vm756_vm8 = vcmask 779776  }
 0x572   : > { %1918 = vmatmul.mubr.msk.bf16.vlgmr.msra.gmra.mrb[28].mxu0 %vm346_vm13, %v1565_v9  ;;  %vm575_vm13 = vcmask 517376  }
 0x595   : > { %v738_v10 = vpop.f32.mrb[8].mxu0 }
 0x596   : > { %v744_v13 = vpack.c.bf16 %v738_v10, %v738_v10  ;;  %v1859_v14 = vpop.f32.mrb[9].mxu0 }
 0x597   : > { %v741_v41 = vpop.f32.mrb[10].mxu0 }
 0x598   : > { %v752_v52 = vrot.slane %v744_v13, %v2645_v54  ;;  %v1860_v16 = vpop.f32.mrb[11].mxu0 }
 0x59a   : > { %753 = vrot.lane.b32.xlu1 %v752_v52, %s2062_s28 }
 0x5c9   : > { %v919_v20 = vpop.f32.mrb[12].mxu0 }
 0x5ca   : > { %v925_v22 = vpack.c.bf16 %v919_v20, %v919_v20  ;;  %v1871_v23 = vpop.f32.mrb[13].mxu0 }
 0x5cb   : > { %v922_v29 = vpop.f32.mrb[14].mxu0 }
 0x5cc   : > { %v933_v3 = vrot.slane %v925_v22, %v2645_v54  ;;  %v1872_v58 = vpop.f32.mrb[15].mxu0 }
 0x5ce   : > { %934 = vrot.lane.b32.xlu0 %v933_v3, %s2061_s27 }
 0x5d7   : > { %v573_v59 = vpop.permute.xlu1 %572 }
 0x5d8   : > { %576 = vst.msk [vmem:[%s2358_s9] sm:$0x3] %vm575_vm13, %v573_v59 }
 0x600   : > { %v1080_v24 = vpop.f32.mrb[16].mxu0 }
 0x601   : > { %v1086_v28 = vpack.c.bf16 %v1080_v24, %v1080_v24  ;;  %v1883_v30 = vpop.f32.mrb[17].mxu0 }
 0x602   : > { %v1083_v26 = vpop.f32.mrb[18].mxu0 }
 0x603   : > { %1087 = vst.msk [vmem:[%s2358_s9 + $0x2] sm:$0x3] %vm395_vm4, %v1086_v28  ;;  %v1884_v31 = vpop.f32.mrb[19].mxu0  ;;  %vm937_vm4 = vcmask 1042176  }
 0x60c   : > { %v754_v33 = vpop.permute.xlu1 %753 }
 0x60d   : > { %757 = vst.msk [vmem:[%s2358_s9] sm:$0x3] %vm756_vm8, %v754_v33 }
 0x635   : > { %v1249_v47 = vpop.f32.mrb[20].mxu0 }
 0x636   : > { %v1255_v36 = vpack.c.bf16 %v1249_v47, %v1249_v47  ;;  %v1895_v34 = vpop.f32.mrb[21].mxu0 }
 0x637   : > { %v1252_v35 = vpop.f32.mrb[22].mxu0 }
 0x638   : > { %v1263_v37 = vrot.slane %v1255_v36, %v2645_v54  ;;  %v1896_v62 = vpop.f32.mrb[23].mxu0 }
 0x63a   : > { %1264 = vrot.lane.b32.xlu1 %v1263_v37, %s2063_s29 }
 0x63d   : > { %v1429_v38 = vpop.f32.mrb[24].mxu0 }
 0x63e   : > { %v1435_v55 = vpack.c.bf16 %v1429_v38, %v1429_v38  ;;  %v1907_v17 = vpop.f32.mrb[25].mxu0 }
 0x63f   : > { %v1432_v5 = vpop.f32.mrb[26].mxu0 }
 0x640   : > { %v1443_v40 = vrot.slane %v1435_v55, %v2645_v54  ;;  %v935_v7 = vpop.permute.xlu0 %934  ;;  %v1908_v25 = vpop.f32.mrb[27].mxu0 }
 0x641   : > { %938 = vst.msk [vmem:[%s2358_s9] sm:$0x3] %vm937_vm4, %v935_v7 }
 0x642   : > { %1444 = vrot.lane.b32.xlu0 %v1443_v40, %s2062_s28 }
 0x645   : > { %v1609_v11 = vpop.f32.mrb[28].mxu0 }
 0x646   : > { %v1615_v12 = vpack.c.bf16 %v1609_v11, %v1609_v11  ;;  %v1919_v39 = vpop.f32.mrb[29].mxu0 }
 0x647   : > { %v1612_v42 = vpop.f32.mrb[30].mxu0 }
 0x648   : > { %v1623_v56 = vrot.slane %v1615_v12, %v2645_v54  ;;  %v1920_v18 = vpop.f32.mrb[31].mxu0 }
 0x64a   : > { %1624 = vrot.lane.b32.xlu1 %v1623_v56, %s2061_s27 }
 0x6ac   : > { %v1265_v43 = vpop.permute.xlu1 %1264 }
 0x6ad   : > { %1267 = vst.msk [vmem:[%s2358_s9 + $0x2] sm:$0x3] %vm575_vm13, %v1265_v43 }
 0x6b4   : > { %v1445_v4 = vpop.permute.xlu0 %1444 }
 0x6b5   : > { %1447 = vst.msk [vmem:[%s2358_s9 + $0x2] sm:$0x3] %vm756_vm8, %v1445_v4 }
 0x6bc   : > { %v1625_v50 = vpop.permute.xlu1 %1624 }
 0x6bd   : > { %1627 = vst.msk [vmem:[%s2358_s9 + $0x2] sm:$0x3] %vm937_vm4, %v1625_v50 }
 0x6be PF: > { %p10_p9 = scmp.ge.s32.totalorder %s2098_s13, 4   ;;  %s2793_s9 = smov %s2053_s10 }
 0x6bf   : > { %s2794_s10 = smov %s2107_s16  ;;  %s2795_s11 = smov %s2098_s13 }
 0x6c0   :  { %12 = sbr.rel (!%p10_p9) target bundleno = 2 (0x2), region = 121 }

</bundles_post_ra>
